<compile_context>
chip_gen: v5e
topology: v5e:2x2
jax: 0.10.0
libtpu: 0.0.40
codegen_flags: <defaults>
</compile_context>

<pallas_src>
import functools

import jax
import jax.numpy as jnp
import numpy as np
from jax.experimental import pallas as pl
from jax.experimental.pallas import tpu as pltpu

EPS = 1e-5          # nn.BatchNorm2d default eps
NEG_SLOPE = 0.01    # nn.LeakyReLU default negative_slope
LANE = 128


def _round_up(x, m):
    return (x + m - 1) // m * m


def _leaky(y):
    return jnp.where(y > 0, y, NEG_SLOPE * y)


def _pad_ring(x3d):
    """Zero 1-pixel spatial ring around an (h, w, c) block, built as a value."""
    h, w, c = x3d.shape
    zr = jnp.zeros((1, w, c), x3d.dtype)
    x3d = jnp.concatenate([zr, x3d, zr], axis=0)           # (h+2, w, c)
    zc = jnp.zeros((h + 2, 1, c), x3d.dtype)
    return jnp.concatenate([zc, x3d, zc], axis=1)          # (h+2, w+2, c)


def _im2col_packed(xpad, h, w, k_pad):
    """(h+2, w+2, c) -> (h*w, k_pad): 9 taps packed into K (tap-major,
    channel-minor), K zero-padded to k_pad, single reshape at the end."""
    c = xpad.shape[-1]
    taps = [xpad[dy:dy + h, dx:dx + w, :] for dy in range(3) for dx in range(3)]
    if 9 * c < k_pad:
        taps.append(jnp.zeros((h, w, k_pad - 9 * c), xpad.dtype))
    return jnp.concatenate(taps, axis=-1).reshape(h * w, k_pad)


def _fold_bn(st_all, g, be, m_total):
    """Fold batch-stat BN into a per-channel (scale, shift); rsqrt -> EUP.
    NOTE: var = E[x^2] - mean^2 in one f32 pass; fine at these sizes.
    TODO(synk): shifted / two-pass variance if the block is scaled up a lot."""
    s = jnp.sum(st_all, axis=0)                            # (2, cout)
    mean = s[0:1, :] * (1.0 / m_total)
    var = s[1:2, :] * (1.0 / m_total) - mean * mean
    scale = g * jax.lax.rsqrt(var + EPS)
    shift = be - mean * scale
    return scale, shift


# ----------------------------- Pallas kernels ------------------------------

def _stage1_kernel(x_ref, w13_ref, b3_ref, y1_ref, res_ref, st1_ref,
                   *, h, w, cout, cout_p, k_pad):
    """conv1 (3x3, bias dropped: cancelled by batch-stat BN) and the 1x1
    residual conv in ONE K-packed matmul, plus per-image BN1 partial stats."""
    xpad = _pad_ring(x_ref[0])                             # (h+2, w+2, cin) bf16
    slab = _im2col_packed(xpad, h, w, k_pad)               # (hw, k_pad) bf16
    acc = jnp.dot(slab, w13_ref[...],
                  preferred_element_type=jnp.float32)      # (hw, 2*cout_p) f32
    conv1 = acc[:, :cout]
    res = acc[:, cout_p:cout_p + cout] + b3_ref[...]
    st1_ref[0, 0:1, :] = jnp.sum(conv1, axis=0, keepdims=True)
    st1_ref[0, 1:2, :] = jnp.sum(conv1 * conv1, axis=0, keepdims=True)
    y1_ref[0] = conv1.astype(jnp.bfloat16)
    res_ref[0] = res.astype(jnp.bfloat16)


def _stage2_kernel(y1_ref, st1_ref, g1_ref, be1_ref, w2_ref, y2_ref, st2_ref,
                   *, h, w, cout, k_pad, m_total):
    """h1 = LeakyReLU(BN1(y1)) with BN1 folded in-kernel from global batch
    stats; y2 = conv2(h1) as one K-packed matmul; per-image BN2 partial stats."""
    scale, shift = _fold_bn(st1_ref[...], g1_ref[...], be1_ref[...], m_total)
    h1 = _leaky(y1_ref[0].astype(jnp.float32) * scale + shift)
    h1 = h1.astype(jnp.bfloat16).reshape(h, w, cout)
    slab = _im2col_packed(_pad_ring(h1), h, w, k_pad)      # (hw, k_pad) bf16
    acc = jnp.dot(slab, w2_ref[...],
                  preferred_element_type=jnp.float32)      # (hw, cout_p) f32
    conv2 = acc[:, :cout]
    st2_ref[0, 0:1, :] = jnp.sum(conv2, axis=0, keepdims=True)
    st2_ref[0, 1:2, :] = jnp.sum(conv2 * conv2, axis=0, keepdims=True)
    y2_ref[0] = conv2.astype(jnp.bfloat16)


def _finalize_kernel(y2_ref, res_ref, st2_ref, g2_ref, be2_ref, o_ref,
                     *, m_total):
    """out = LeakyReLU(BN2(y2) + res); BN2 folded in-kernel; M-tiled."""
    scale, shift = _fold_bn(st2_ref[...], g2_ref[...], be2_ref[...], m_total)
    y = (y2_ref[...].astype(jnp.float32) * scale + shift
         + res_ref[...].astype(jnp.float32))
    o_ref[...] = _leaky(y)


# ------------------------------ small helpers -------------------------------

def _padded_vmem_bytes(shape, dtype):
    item = jnp.dtype(dtype).itemsize
    sub = {4: 8, 2: 16, 1: 32}.get(item, 8)
    s = [1, 1] + [int(d) for d in shape]
    s[-1] = _round_up(s[-1], LANE)
    s[-2] = _round_up(s[-2], sub)
    n = 1
    for d in s:
        n *= d
    return n * item


def _compiler_params(blocks, extra_bytes=0):
    """Derive vmem_limit_bytes from the actual (double-buffered) block sizes
    plus in-kernel temporaries; clamped so it also fits v7x's 64 MiB VMEM."""
    total = 2 * sum(_padded_vmem_bytes(s, d) for s, d in blocks) + extra_bytes
    vmem = int(min(max(2 * total, 8 << 20), 32 << 20))
    return pltpu.CompilerParams(dimension_semantics=("parallel",),
                                vmem_limit_bytes=vmem)


def _pick_tm(m):
    """Pass-3 row tile: large (>=128-row) tiles, >=4 grid steps when possible
    (keeps both v7x TensorCores busy), always dividing M."""
    for tm in (1024, 512, 256, 128):
        if m % tm == 0 and m // tm >= 4:
            return tm
    for tm in (1024, 512, 256, 128, 64, 32, 16, 8):
        if m % tm == 0 and m // tm >= 2:
            return tm
    return m   # TODO(synk): pad M when it has no small multiple-of-8 divisor.


# ------------------------------- wrapper -------------------------------------

def residual_block_pallas(x_nchw, p):
    N, Cin, H, W = x_nchw.shape
    Cout = p["w1"].shape[0]
    HW = H * W
    M = N * HW
    Cout_p = _round_up(Cout, LANE)
    K1, K2 = 9 * Cin, 9 * Cout
    # TODO(synk): per-tap accumulation fallback when 9*channels > 128.
    assert K1 <= LANE and K2 <= LANE, "K-packed conv path needs 9*channels <= 128"
    K1p = K2p = LANE

    # NHWC, channel-compact bf16 input; no lane pad / no spatial ring in HBM.
    xb = jnp.transpose(x_nchw, (0, 2, 3, 1)).astype(jnp.bfloat16)   # (N,H,W,Cin)

    # conv1 (9 taps) and the 1x1 residual conv share one K-packed weight:
    #   columns [0, Cout_p)        -> conv1
    #   columns [Cout_p, 2*Cout_p) -> conv3 (weights live on the centre-tap rows)
    w1m = jnp.transpose(p["w1"], (2, 3, 1, 0)).reshape(K1, Cout)
    w1m = jnp.pad(w1m, ((0, K1p - K1), (0, Cout_p - Cout)))
    w3m = jnp.transpose(p["w3"][:, :, 0, 0], (1, 0))                # (Cin, Cout)
    w3f = jnp.zeros((K1p, Cout_p), jnp.float32)
    w3f = w3f.at[4 * Cin:5 * Cin, :Cout].set(w3m)                   # tap (1,1)
    w13 = jnp.concatenate([w1m, w3f], axis=1).astype(jnp.bfloat16)  # (K1p, 2*Cout_p)

    w2m = jnp.transpose(p["w2"], (2, 3, 1, 0)).reshape(K2, Cout)
    w2m = jnp.pad(w2m, ((0, K2p - K2), (0, Cout_p - Cout))).astype(jnp.bfloat16)

    b3r = p["b3"].reshape(1, Cout).astype(jnp.float32)
    g1r = p["g1"].reshape(1, Cout).astype(jnp.float32)
    be1r = p["be1"].reshape(1, Cout).astype(jnp.float32)
    g2r = p["g2"].reshape(1, Cout).astype(jnp.float32)
    be2r = p["be2"].reshape(1, Cout).astype(jnp.float32)

    # ---- stage 1: K-packed conv1 + 1x1 residual conv + BN1 partial stats ----
    cp1 = _compiler_params(
        [((1, H, W, Cin), jnp.bfloat16), ((K1p, 2 * Cout_p), jnp.bfloat16),
         ((1, Cout), jnp.float32), ((1, HW, Cout), jnp.bfloat16),
         ((1, HW, Cout), jnp.bfloat16), ((1, 2, Cout), jnp.float32)],
        extra_bytes=4 * _padded_vmem_bytes((HW, K1p), jnp.bfloat16)
        + 2 * _padded_vmem_bytes((HW, 2 * Cout_p), jnp.float32))
    y1, res, st1 = pl.pallas_call(
        functools.partial(_stage1_kernel, h=H, w=W, cout=Cout,
                          cout_p=Cout_p, k_pad=K1p),
        grid=(N,),
        in_specs=[
            pl.BlockSpec((1, H, W, Cin), lambda n: (n, 0, 0, 0)),
            pl.BlockSpec((K1p, 2 * Cout_p), lambda n: (0, 0)),
            pl.BlockSpec((1, Cout), lambda n: (0, 0)),
        ],
        out_specs=(
            pl.BlockSpec((1, HW, Cout), lambda n: (n, 0, 0)),
            pl.BlockSpec((1, HW, Cout), lambda n: (n, 0, 0)),
            pl.BlockSpec((1, 2, Cout), lambda n: (n, 0, 0)),
        ),
        out_shape=(
            jax.ShapeDtypeStruct((N, HW, Cout), jnp.bfloat16),
            jax.ShapeDtypeStruct((N, HW, Cout), jnp.bfloat16),
            jax.ShapeDtypeStruct((N, 2, Cout), jnp.float32),
        ),
        compiler_params=cp1,
        cost_estimate=pl.CostEstimate(
            flops=int(2 * M * K1p * 2 * Cout_p), transcendentals=0,
            bytes_accessed=int(xb.size * 2 + w13.size * 2
                               + 2 * M * Cout * 2 + N * 2 * Cout * 4)),
    )(xb, w13, b3r)

    # ---- stage 2: fused BN1+LeakyReLU + K-packed conv2 + BN2 partial stats ----
    cp2 = _compiler_params(
        [((1, HW, Cout), jnp.bfloat16), ((N, 2, Cout), jnp.float32),
         ((1, Cout), jnp.float32), ((1, Cout), jnp.float32),
         ((K2p, Cout_p), jnp.bfloat16), ((1, HW, Cout), jnp.bfloat16),
         ((1, 2, Cout), jnp.float32)],
        extra_bytes=4 * _padded_vmem_bytes((HW, K2p), jnp.bfloat16)
        + 2 * _padded_vmem_bytes((HW, Cout_p), jnp.float32))
    y2, st2 = pl.pallas_call(
        functools.partial(_stage2_kernel, h=H, w=W, cout=Cout,
                          k_pad=K2p, m_total=float(M)),
        grid=(N,),
        in_specs=[
            pl.BlockSpec((1, HW, Cout), lambda n: (n, 0, 0)),
            pl.BlockSpec((N, 2, Cout), lambda n: (0, 0, 0)),
            pl.BlockSpec((1, Cout), lambda n: (0, 0)),
            pl.BlockSpec((1, Cout), lambda n: (0, 0)),
            pl.BlockSpec((K2p, Cout_p), lambda n: (0, 0)),
        ],
        out_specs=(
            pl.BlockSpec((1, HW, Cout), lambda n: (n, 0, 0)),
            pl.BlockSpec((1, 2, Cout), lambda n: (n, 0, 0)),
        ),
        out_shape=(
            jax.ShapeDtypeStruct((N, HW, Cout), jnp.bfloat16),
            jax.ShapeDtypeStruct((N, 2, Cout), jnp.float32),
        ),
        compiler_params=cp2,
        cost_estimate=pl.CostEstimate(
            flops=int(2 * M * K2p * Cout_p), transcendentals=0,
            bytes_accessed=int(2 * M * Cout * 2 + w2m.size * 2
                               + 2 * N * 2 * Cout * 4)),
    )(y1, st1, g1r, be1r, w2m)

    # ---- pass 3: BN2 fold + normalize + residual add + LeakyReLU, M-tiled ----
    TM = _pick_tm(M)
    cp3 = _compiler_params(
        [((TM, Cout), jnp.bfloat16), ((TM, Cout), jnp.bfloat16),
         ((N, 2, Cout), jnp.float32), ((1, Cout), jnp.float32),
         ((1, Cout), jnp.float32), ((TM, Cout), jnp.float32)],
        extra_bytes=2 * _padded_vmem_bytes((TM, Cout), jnp.float32))
    out2d = pl.pallas_call(
        functools.partial(_finalize_kernel, m_total=float(M)),
        grid=(M // TM,),
        in_specs=[
            pl.BlockSpec((TM, Cout), lambda i: (i, 0)),
            pl.BlockSpec((TM, Cout), lambda i: (i, 0)),
            pl.BlockSpec((N, 2, Cout), lambda i: (0, 0, 0)),
            pl.BlockSpec((1, Cout), lambda i: (0, 0)),
            pl.BlockSpec((1, Cout), lambda i: (0, 0)),
        ],
        out_specs=pl.BlockSpec((TM, Cout), lambda i: (i, 0)),
        out_shape=jax.ShapeDtypeStruct((M, Cout), jnp.float32),
        compiler_params=cp3,
        cost_estimate=pl.CostEstimate(
            flops=int(6 * M * Cout), transcendentals=0,
            bytes_accessed=int(2 * M * Cout * 2 + M * Cout * 4)),
    )(y2.reshape(M, Cout), res.reshape(M, Cout), st2, g2r, be2r)

    out = out2d.reshape(N, H, W, Cout)          # compact channels, then NCHW
    return jnp.transpose(out, (0, 3, 1, 2))


# ---------------------- pure-JAX reference (for check) ----------------------

def residual_block_ref(x, p):
    def conv(x, w, b, pad):
        y = jax.lax.conv_general_dilated(
            x, w, (1, 1), [(pad, pad), (pad, pad)],
            dimension_numbers=("NCHW", "OIHW", "NCHW"),
            precision=jax.lax.Precision.HIGHEST)
        return y + b.reshape(1, -1, 1, 1)

    def bn(x, g, be):
        mean = x.mean(axis=(0, 2, 3), keepdims=True)
        var = ((x - mean) ** 2).mean(axis=(0, 2, 3), keepdims=True)
        return ((x - mean) * jax.lax.rsqrt(var + EPS)
                * g.reshape(1, -1, 1, 1) + be.reshape(1, -1, 1, 1))

    out = _leaky(bn(conv(x, p["w1"], p["b1"], 1), p["g1"], p["be1"]))
    out = bn(conv(out, p["w2"], p["b2"], 1), p["g2"], p["be2"])
    out = out + conv(x, p["w3"], p["b3"], 0)
    return _leaky(out)


# ---------------------------------- main ------------------------------------

if __name__ == "__main__":
    N, Cin, Cout, H, W = 2, 4, 8, 16, 16

    key = jax.random.PRNGKey(0)
    keys = jax.random.split(key, 12)
    params = {
        "w1": 0.1 * jax.random.normal(keys[0], (Cout, Cin, 3, 3), jnp.float32),
        "b1": 0.1 * jax.random.normal(keys[1], (Cout,), jnp.float32),
        "w2": 0.1 * jax.random.normal(keys[2], (Cout, Cout, 3, 3), jnp.float32),
        "b2": 0.1 * jax.random.normal(keys[3], (Cout,), jnp.float32),
        "w3": 0.1 * jax.random.normal(keys[4], (Cout, Cin, 1, 1), jnp.float32),
        "b3": 0.1 * jax.random.normal(keys[5], (Cout,), jnp.float32),
        "g1": 1.0 + 0.1 * jax.random.normal(keys[6], (Cout,), jnp.float32),
        "be1": 0.1 * jax.random.normal(keys[7], (Cout,), jnp.float32),
        "g2": 1.0 + 0.1 * jax.random.normal(keys[8], (Cout,), jnp.float32),
        "be2": 0.1 * jax.random.normal(keys[9], (Cout,), jnp.float32),
    }

    x = jax.random.normal(keys[10], (N, Cin, H, W), jnp.float32)

    fwd = jax.jit(residual_block_pallas)
    out = jax.block_until_ready(fwd(x, params))
    ref = jax.block_until_ready(residual_block_ref(x, params))

    assert out.shape == (N, Cout, H, W)
    # bf16 MXU operands + bf16 inter-pass tensors (f32 stats/accumulation)
    # vs. an f32 HIGHEST-precision reference -> bf16-level tolerance.
    np.testing.assert_allclose(np.asarray(out), np.asarray(ref),
                               rtol=3e-2, atol=3e-2)
    print("KERNEL_OK")
</pallas_src>

<mosaic_0001>
module attributes {stable_mosaic.version = 11 : i64} {
  func.func @_finalize_kernel(%arg0: i32, %arg1: memref<128x8xbf16, #tpu.memory_space<vmem>>, %arg2: memref<128x8xbf16, #tpu.memory_space<vmem>>, %arg3: memref<2x2x8xf32, #tpu.memory_space<vmem>>, %arg4: memref<1x8xf32, #tpu.memory_space<vmem>>, %arg5: memref<1x8xf32, #tpu.memory_space<vmem>>, %arg6: memref<128x8xf32, #tpu.memory_space<vmem>>) attributes {dimension_semantics = [#tpu.dimension_semantics<parallel>], iteration_bounds = array<i64: 4>, scalar_prefetch = 0 : i64, scratch_operands = 0 : i64, tpu.core_type = #tpu.core_type<tc>, window_params = [{transform_indices = @transform_0, window_bounds = array<i64: 128, 8>}, {transform_indices = @transform_1, window_bounds = array<i64: 128, 8>}, {pipeline_mode = #tpu.pipeline_mode<synchronous>, transform_indices = @transform_2, window_bounds = array<i64: 2, 2, 8>}, {pipeline_mode = #tpu.pipeline_mode<synchronous>, transform_indices = @transform_3, window_bounds = array<i64: 1, 8>}, {pipeline_mode = #tpu.pipeline_mode<synchronous>, transform_indices = @transform_4, window_bounds = array<i64: 1, 8>}, {transform_indices = @transform_5, window_bounds = array<i64: 128, 8>}]} {
    %c0 = arith.constant 0 : index
    %c0_0 = arith.constant 0 : index
    %c0_1 = arith.constant 0 : index
    %0 = vector.load %arg3[%c0, %c0_0, %c0_1] : memref<2x2x8xf32, #tpu.memory_space<vmem>>, vector<2x2x8xf32>
    %c0_2 = arith.constant 0 : index
    %c0_3 = arith.constant 0 : index
    %1 = vector.load %arg4[%c0_2, %c0_3] : memref<1x8xf32, #tpu.memory_space<vmem>>, vector<1x8xf32>
    %c0_4 = arith.constant 0 : index
    %c0_5 = arith.constant 0 : index
    %2 = vector.load %arg5[%c0_4, %c0_5] : memref<1x8xf32, #tpu.memory_space<vmem>>, vector<1x8xf32>
    %cst = arith.constant dense<0.000000e+00> : vector<2x8xf32>
    %3 = vector.multi_reduction <add>, %0, %cst [0] : vector<2x2x8xf32> to vector<2x8xf32>
    %4 = vector.extract_strided_slice %3 {offsets = [0, 0], sizes = [1, 8], strides = [1, 1]} : vector<2x8xf32> to vector<1x8xf32>
    %cst_6 = arith.constant 0.001953125 : f32
    %5 = vector.broadcast %cst_6 : f32 to vector<1x8xf32>
    %6 = arith.mulf %4, %5 : vector<1x8xf32>
    %7 = vector.extract_strided_slice %3 {offsets = [1, 0], sizes = [1, 8], strides = [1, 1]} : vector<2x8xf32> to vector<1x8xf32>
    %cst_7 = arith.constant 0.001953125 : f32
    %8 = vector.broadcast %cst_7 : f32 to vector<1x8xf32>
    %9 = arith.mulf %7, %8 : vector<1x8xf32>
    %10 = arith.mulf %6, %6 : vector<1x8xf32>
    %11 = arith.subf %9, %10 : vector<1x8xf32>
    %cst_8 = arith.constant 9.99999974E-6 : f32
    %12 = vector.broadcast %cst_8 : f32 to vector<1x8xf32>
    %13 = arith.addf %11, %12 : vector<1x8xf32>
    %14 = math.rsqrt %13 : vector<1x8xf32>
    %15 = arith.mulf %1, %14 : vector<1x8xf32>
    %16 = arith.mulf %6, %15 : vector<1x8xf32>
    %17 = arith.subf %2, %16 : vector<1x8xf32>
    %c0_9 = arith.constant 0 : index
    %c0_10 = arith.constant 0 : index
    %18 = vector.load %arg1[%c0_9, %c0_10] : memref<128x8xbf16, #tpu.memory_space<vmem>>, vector<128x8xbf16>
    %19 = arith.extf %18 : vector<128x8xbf16> to vector<128x8xf32>
    %20 = vector.broadcast %15 : vector<1x8xf32> to vector<128x8xf32>
    %21 = arith.mulf %19, %20 : vector<128x8xf32>
    %22 = vector.broadcast %17 : vector<1x8xf32> to vector<128x8xf32>
    %23 = arith.addf %21, %22 : vector<128x8xf32>
    %c0_11 = arith.constant 0 : index
    %c0_12 = arith.constant 0 : index
    %24 = vector.load %arg2[%c0_11, %c0_12] : memref<128x8xbf16, #tpu.memory_space<vmem>>, vector<128x8xbf16>
    %25 = arith.extf %24 : vector<128x8xbf16> to vector<128x8xf32>
    %26 = arith.addf %23, %25 : vector<128x8xf32>
    %cst_13 = arith.constant 0.000000e+00 : f32
    %27 = vector.broadcast %cst_13 : f32 to vector<128x8xf32>
    %28 = arith.cmpf ogt, %26, %27 : vector<128x8xf32>
    %cst_14 = arith.constant 0.00999999977 : f32
    %29 = vector.broadcast %cst_14 : f32 to vector<128x8xf32>
    %30 = arith.mulf %29, %26 : vector<128x8xf32>
    %31 = arith.select %28, %26, %30 : vector<128x8xi1>, vector<128x8xf32>
    %c0_15 = arith.constant 0 : index
    %c0_16 = arith.constant 0 : index
    %32 = vector.load %arg6[%c0_15, %c0_16] : memref<128x8xf32, #tpu.memory_space<vmem>>, vector<128x8xf32>
    tpu.vector_store %arg6[%c0_15, %c0_16], %31 {strides = array<i32>} : memref<128x8xf32, #tpu.memory_space<vmem>>, vector<128x8xf32>,
    return
  }
  func.func @transform_0(%arg0: i32) -> (i32, i32) {
    %c0_i32 = arith.constant 0 : i32
    %c0_i32_0 = arith.constant 0 : i32
    return %arg0, %c0_i32 : i32, i32
  }
  func.func @transform_1(%arg0: i32) -> (i32, i32) {
    %c0_i32 = arith.constant 0 : i32
    %c0_i32_0 = arith.constant 0 : i32
    return %arg0, %c0_i32 : i32, i32
  }
  func.func @transform_2(%arg0: i32) -> (i32, i32, i32) {
    %c0_i32 = arith.constant 0 : i32
    %c0_i32_0 = arith.constant 0 : i32
    %c0_i32_1 = arith.constant 0 : i32
    %c0_i32_2 = arith.constant 0 : i32
    return %c0_i32, %c0_i32_0, %c0_i32_1 : i32, i32, i32
  }
  func.func @transform_3(%arg0: i32) -> (i32, i32) {
    %c0_i32 = arith.constant 0 : i32
    %c0_i32_0 = arith.constant 0 : i32
    %c0_i32_1 = arith.constant 0 : i32
    return %c0_i32, %c0_i32_0 : i32, i32
  }
  func.func @transform_4(%arg0: i32) -> (i32, i32) {
    %c0_i32 = arith.constant 0 : i32
    %c0_i32_0 = arith.constant 0 : i32
    %c0_i32_1 = arith.constant 0 : i32
    return %c0_i32, %c0_i32_0 : i32, i32
  }
  func.func @transform_5(%arg0: i32) -> (i32, i32) {
    %c0_i32 = arith.constant 0 : i32
    %c0_i32_0 = arith.constant 0 : i32
    return %arg0, %c0_i32 : i32, i32
  }
}

module attributes {stable_mosaic.version = 11 : i64} {
  func.func @_stage1_kernel(%arg0: i32, %arg1: memref<1x16x16x4xbf16, #tpu.memory_space<vmem>>, %arg2: memref<128x256xbf16, #tpu.memory_space<vmem>>, %arg3: memref<1x8xf32, #tpu.memory_space<vmem>>, %arg4: memref<1x256x8xbf16, #tpu.memory_space<vmem>>, %arg5: memref<1x256x8xbf16, #tpu.memory_space<vmem>>, %arg6: memref<1x2x8xf32, #tpu.memory_space<vmem>>) attributes {dimension_semantics = [#tpu.dimension_semantics<parallel>], iteration_bounds = array<i64: 2>, scalar_prefetch = 0 : i64, scratch_operands = 0 : i64, tpu.core_type = #tpu.core_type<tc>, window_params = [{transform_indices = @transform_0, window_bounds = array<i64: 1, 16, 16, 4>}, {pipeline_mode = #tpu.pipeline_mode<synchronous>, transform_indices = @transform_1, window_bounds = array<i64: 128, 256>}, {pipeline_mode = #tpu.pipeline_mode<synchronous>, transform_indices = @transform_2, window_bounds = array<i64: 1, 8>}, {transform_indices = @transform_3, window_bounds = array<i64: 1, 256, 8>}, {transform_indices = @transform_4, window_bounds = array<i64: 1, 256, 8>}, {transform_indices = @transform_5, window_bounds = array<i64: 1, 2, 8>}]} {
    %c0 = arith.constant 0 : index
    %c0_0 = arith.constant 0 : index
    %c0_1 = arith.constant 0 : index
    %c0_2 = arith.constant 0 : index
    %0 = vector.load %arg1[%c0, %c0_0, %c0_1, %c0_2] : memref<1x16x16x4xbf16, #tpu.memory_space<vmem>>, vector<1x16x16x4xbf16>
    %1 = vector.shape_cast %0 : vector<1x16x16x4xbf16> to vector<16x16x4xbf16>
    %cst = arith.constant 0.000000e+00 : bf16
    %2 = vector.broadcast %cst : bf16 to vector<1x16x4xbf16>
    %3 = tpu.concatenate %2, %1, %2 in 0 : vector<1x16x4xbf16>, vector<16x16x4xbf16>, vector<1x16x4xbf16> -> vector<18x16x4xbf16>
    %cst_3 = arith.constant 0.000000e+00 : bf16
    %4 = vector.broadcast %cst_3 : bf16 to vector<18x1x4xbf16>
    %5 = tpu.concatenate %4, %3, %4 in 1 : vector<18x1x4xbf16>, vector<18x16x4xbf16>, vector<18x1x4xbf16> -> vector<18x18x4xbf16>
    %6 = vector.extract_strided_slice %5 {offsets = [0, 0, 0], sizes = [16, 16, 4], strides = [1, 1, 1]} : vector<18x18x4xbf16> to vector<16x16x4xbf16>
    %7 = vector.extract_strided_slice %5 {offsets = [0, 1, 0], sizes = [16, 16, 4], strides = [1, 1, 1]} : vector<18x18x4xbf16> to vector<16x16x4xbf16>
    %8 = vector.extract_strided_slice %5 {offsets = [0, 2, 0], sizes = [16, 16, 4], strides = [1, 1, 1]} : vector<18x18x4xbf16> to vector<16x16x4xbf16>
    %9 = vector.extract_strided_slice %5 {offsets = [1, 0, 0], sizes = [16, 16, 4], strides = [1, 1, 1]} : vector<18x18x4xbf16> to vector<16x16x4xbf16>
    %10 = vector.extract_strided_slice %5 {offsets = [1, 1, 0], sizes = [16, 16, 4], strides = [1, 1, 1]} : vector<18x18x4xbf16> to vector<16x16x4xbf16>
    %11 = vector.extract_strided_slice %5 {offsets = [1, 2, 0], sizes = [16, 16, 4], strides = [1, 1, 1]} : vector<18x18x4xbf16> to vector<16x16x4xbf16>
    %12 = vector.extract_strided_slice %5 {offsets = [2, 0, 0], sizes = [16, 16, 4], strides = [1, 1, 1]} : vector<18x18x4xbf16> to vector<16x16x4xbf16>
    %13 = vector.extract_strided_slice %5 {offsets = [2, 1, 0], sizes = [16, 16, 4], strides = [1, 1, 1]} : vector<18x18x4xbf16> to vector<16x16x4xbf16>
    %14 = vector.extract_strided_slice %5 {offsets = [2, 2, 0], sizes = [16, 16, 4], strides = [1, 1, 1]} : vector<18x18x4xbf16> to vector<16x16x4xbf16>
    %cst_4 = arith.constant 0.000000e+00 : bf16
    %15 = vector.broadcast %cst_4 : bf16 to vector<16x16x92xbf16>
    %16 = tpu.concatenate %6, %7, %8, %9, %10, %11, %12, %13, %14, %15 in 2 : vector<16x16x4xbf16>, vector<16x16x4xbf16>, vector<16x16x4xbf16>, vector<16x16x4xbf16>, vector<16x16x4xbf16>, vector<16x16x4xbf16>, vector<16x16x4xbf16>, vector<16x16x4xbf16>, vector<16x16x4xbf16>, vector<16x16x92xbf16> -> vector<16x16x128xbf16>
    %17 = vector.shape_cast %16 : vector<16x16x128xbf16> to vector<256x128xbf16>
    %c0_5 = arith.constant 0 : index
    %c0_6 = arith.constant 0 : index
    %18 = vector.load %arg2[%c0_5, %c0_6] : memref<128x256xbf16, #tpu.memory_space<vmem>>, vector<128x256xbf16>
    %cst_7 = arith.constant dense<0.000000e+00> : vector<256x256xf32>
    %19 = tpu.matmul %17, %18, %cst_7 {dimension_numbers = #tpu.dot_dimension_numbers<[1], [0], [0], [1], [0, 0, 1, 1], [], []>} : vector<256x128xbf16>, vector<128x256xbf16>, vector<256x256xf32> -> vector<256x256xf32>
    %20 = vector.extract_strided_slice %19 {offsets = [0, 0], sizes = [256, 8], strides = [1, 1]} : vector<256x256xf32> to vector<256x8xf32>
    %21 = vector.extract_strided_slice %19 {offsets = [0, 128], sizes = [256, 8], strides = [1, 1]} : vector<256x256xf32> to vector<256x8xf32>
    %c0_8 = arith.constant 0 : index
    %c0_9 = arith.constant 0 : index
    %22 = vector.load %arg3[%c0_8, %c0_9] : memref<1x8xf32, #tpu.memory_space<vmem>>, vector<1x8xf32>
    %23 = vector.broadcast %22 : vector<1x8xf32> to vector<256x8xf32>
    %24 = arith.addf %21, %23 : vector<256x8xf32>
    %cst_10 = arith.constant dense<0.000000e+00> : vector<8xf32>
    %25 = vector.multi_reduction <add>, %20, %cst_10 [0] : vector<256x8xf32> to vector<8xf32>
    %26 = vector.shape_cast %25 : vector<8xf32> to vector<1x8xf32>
    %c0_11 = arith.constant 0 : index
    %c0_12 = arith.constant 0 : index
    %c0_13 = arith.constant 0 : index
    %27 = vector.load %arg6[%c0_11, %c0_12, %c0_13] : memref<1x2x8xf32, #tpu.memory_space<vmem>>, vector<1x1x8xf32>
    %28 = vector.shape_cast %27 : vector<1x1x8xf32> to vector<1x8xf32>
    %29 = vector.shape_cast %26 : vector<1x8xf32> to vector<1x1x8xf32>
    tpu.vector_store %arg6[%c0_11, %c0_12, %c0_13], %29 {strides = array<i32>} : memref<1x2x8xf32, #tpu.memory_space<vmem>>, vector<1x1x8xf32>,
    %30 = arith.mulf %20, %20 : vector<256x8xf32>
    %cst_14 = arith.constant dense<0.000000e+00> : vector<8xf32>
    %31 = vector.multi_reduction <add>, %30, %cst_14 [0] : vector<256x8xf32> to vector<8xf32>
    %32 = vector.shape_cast %31 : vector<8xf32> to vector<1x8xf32>
    %c0_15 = arith.constant 0 : index
    %c1 = arith.constant 1 : index
    %c0_16 = arith.constant 0 : index
    %33 = vector.load %arg6[%c0_15, %c1, %c0_16] : memref<1x2x8xf32, #tpu.memory_space<vmem>>, vector<1x1x8xf32>
    %34 = vector.shape_cast %33 : vector<1x1x8xf32> to vector<1x8xf32>
    %35 = vector.shape_cast %32 : vector<1x8xf32> to vector<1x1x8xf32>
    tpu.vector_store %arg6[%c0_15, %c1, %c0_16], %35 {strides = array<i32>} : memref<1x2x8xf32, #tpu.memory_space<vmem>>, vector<1x1x8xf32>,
    %36 = arith.truncf %20 : vector<256x8xf32> to vector<256x8xbf16>
    %c0_17 = arith.constant 0 : index
    %c0_18 = arith.constant 0 : index
    %c0_19 = arith.constant 0 : index
    %37 = vector.load %arg4[%c0_17, %c0_18, %c0_19] : memref<1x256x8xbf16, #tpu.memory_space<vmem>>, vector<1x256x8xbf16>
    %38 = vector.shape_cast %37 : vector<1x256x8xbf16> to vector<256x8xbf16>
    %39 = vector.shape_cast %36 : vector<256x8xbf16> to vector<1x256x8xbf16>
    tpu.vector_store %arg4[%c0_17, %c0_18, %c0_19], %39 {strides = array<i32>} : memref<1x256x8xbf16, #tpu.memory_space<vmem>>, vector<1x256x8xbf16>,
    %40 = arith.truncf %24 : vector<256x8xf32> to vector<256x8xbf16>
    %c0_20 = arith.constant 0 : index
    %c0_21 = arith.constant 0 : index
    %c0_22 = arith.constant 0 : index
    %41 = vector.load %arg5[%c0_20, %c0_21, %c0_22] : memref<1x256x8xbf16, #tpu.memory_space<vmem>>, vector<1x256x8xbf16>
    %42 = vector.shape_cast %41 : vector<1x256x8xbf16> to vector<256x8xbf16>
    %43 = vector.shape_cast %40 : vector<256x8xbf16> to vector<1x256x8xbf16>
    tpu.vector_store %arg5[%c0_20, %c0_21, %c0_22], %43 {strides = array<i32>} : memref<1x256x8xbf16, #tpu.memory_space<vmem>>, vector<1x256x8xbf16>,
    return
  }
  func.func @transform_0(%arg0: i32) -> (i32, i32, i32, i32) {
    %c0_i32 = arith.constant 0 : i32
    %c0_i32_0 = arith.constant 0 : i32
    %c0_i32_1 = arith.constant 0 : i32
    %c0_i32_2 = arith.constant 0 : i32
    return %arg0, %c0_i32, %c0_i32_0, %c0_i32_1 : i32, i32, i32, i32
  }
  func.func @transform_1(%arg0: i32) -> (i32, i32) {
    %c0_i32 = arith.constant 0 : i32
    %c0_i32_0 = arith.constant 0 : i32
    %c0_i32_1 = arith.constant 0 : i32
    return %c0_i32, %c0_i32_0 : i32, i32
  }
  func.func @transform_2(%arg0: i32) -> (i32, i32) {
    %c0_i32 = arith.constant 0 : i32
    %c0_i32_0 = arith.constant 0 : i32
    %c0_i32_1 = arith.constant 0 : i32
    return %c0_i32, %c0_i32_0 : i32, i32
  }
  func.func @transform_3(%arg0: i32) -> (i32, i32, i32) {
    %c0_i32 = arith.constant 0 : i32
    %c0_i32_0 = arith.constant 0 : i32
    %c0_i32_1 = arith.constant 0 : i32
    return %arg0, %c0_i32, %c0_i32_0 : i32, i32, i32
  }
  func.func @transform_4(%arg0: i32) -> (i32, i32, i32) {
    %c0_i32 = arith.constant 0 : i32
    %c0_i32_0 = arith.constant 0 : i32
    %c0_i32_1 = arith.constant 0 : i32
    return %arg0, %c0_i32, %c0_i32_0 : i32, i32, i32
  }
  func.func @transform_5(%arg0: i32) -> (i32, i32, i32) {
    %c0_i32 = arith.constant 0 : i32
    %c0_i32_0 = arith.constant 0 : i32
    %c0_i32_1 = arith.constant 0 : i32
    return %arg0, %c0_i32, %c0_i32_0 : i32, i32, i32
  }
}

module attributes {stable_mosaic.version = 11 : i64} {
  func.func @_stage2_kernel(%arg0: i32, %arg1: memref<1x256x8xbf16, #tpu.memory_space<vmem>>, %arg2: memref<2x2x8xf32, #tpu.memory_space<vmem>>, %arg3: memref<1x8xf32, #tpu.memory_space<vmem>>, %arg4: memref<1x8xf32, #tpu.memory_space<vmem>>, %arg5: memref<128x128xbf16, #tpu.memory_space<vmem>>, %arg6: memref<1x256x8xbf16, #tpu.memory_space<vmem>>, %arg7: memref<1x2x8xf32, #tpu.memory_space<vmem>>) attributes {dimension_semantics = [#tpu.dimension_semantics<parallel>], iteration_bounds = array<i64: 2>, scalar_prefetch = 0 : i64, scratch_operands = 0 : i64, tpu.core_type = #tpu.core_type<tc>, window_params = [{transform_indices = @transform_0, window_bounds = array<i64: 1, 256, 8>}, {pipeline_mode = #tpu.pipeline_mode<synchronous>, transform_indices = @transform_1, window_bounds = array<i64: 2, 2, 8>}, {pipeline_mode = #tpu.pipeline_mode<synchronous>, transform_indices = @transform_2, window_bounds = array<i64: 1, 8>}, {pipeline_mode = #tpu.pipeline_mode<synchronous>, transform_indices = @transform_3, window_bounds = array<i64: 1, 8>}, {pipeline_mode = #tpu.pipeline_mode<synchronous>, transform_indices = @transform_4, window_bounds = array<i64: 128, 128>}, {transform_indices = @transform_5, window_bounds = array<i64: 1, 256, 8>}, {transform_indices = @transform_6, window_bounds = array<i64: 1, 2, 8>}]} {
    %c0 = arith.constant 0 : index
    %c0_0 = arith.constant 0 : index
    %c0_1 = arith.constant 0 : index
    %0 = vector.load %arg2[%c0, %c0_0, %c0_1] : memref<2x2x8xf32, #tpu.memory_space<vmem>>, vector<2x2x8xf32>
    %c0_2 = arith.constant 0 : index
    %c0_3 = arith.constant 0 : index
    %1 = vector.load %arg3[%c0_2, %c0_3] : memref<1x8xf32, #tpu.memory_space<vmem>>, vector<1x8xf32>
    %c0_4 = arith.constant 0 : index
    %c0_5 = arith.constant 0 : index
    %2 = vector.load %arg4[%c0_4, %c0_5] : memref<1x8xf32, #tpu.memory_space<vmem>>, vector<1x8xf32>
    %cst = arith.constant dense<0.000000e+00> : vector<2x8xf32>
    %3 = vector.multi_reduction <add>, %0, %cst [0] : vector<2x2x8xf32> to vector<2x8xf32>
    %4 = vector.extract_strided_slice %3 {offsets = [0, 0], sizes = [1, 8], strides = [1, 1]} : vector<2x8xf32> to vector<1x8xf32>
    %cst_6 = arith.constant 0.001953125 : f32
    %5 = vector.broadcast %cst_6 : f32 to vector<1x8xf32>
    %6 = arith.mulf %4, %5 : vector<1x8xf32>
    %7 = vector.extract_strided_slice %3 {offsets = [1, 0], sizes = [1, 8], strides = [1, 1]} : vector<2x8xf32> to vector<1x8xf32>
    %cst_7 = arith.constant 0.001953125 : f32
    %8 = vector.broadcast %cst_7 : f32 to vector<1x8xf32>
    %9 = arith.mulf %7, %8 : vector<1x8xf32>
    %10 = arith.mulf %6, %6 : vector<1x8xf32>
    %11 = arith.subf %9, %10 : vector<1x8xf32>
    %cst_8 = arith.constant 9.99999974E-6 : f32
    %12 = vector.broadcast %cst_8 : f32 to vector<1x8xf32>
    %13 = arith.addf %11, %12 : vector<1x8xf32>
    %14 = math.rsqrt %13 : vector<1x8xf32>
    %15 = arith.mulf %1, %14 : vector<1x8xf32>
    %16 = arith.mulf %6, %15 : vector<1x8xf32>
    %17 = arith.subf %2, %16 : vector<1x8xf32>
    %c0_9 = arith.constant 0 : index
    %c0_10 = arith.constant 0 : index
    %c0_11 = arith.constant 0 : index
    %18 = vector.load %arg1[%c0_9, %c0_10, %c0_11] : memref<1x256x8xbf16, #tpu.memory_space<vmem>>, vector<1x256x8xbf16>
    %19 = vector.shape_cast %18 : vector<1x256x8xbf16> to vector<256x8xbf16>
    %20 = arith.extf %19 : vector<256x8xbf16> to vector<256x8xf32>
    %21 = vector.broadcast %15 : vector<1x8xf32> to vector<256x8xf32>
    %22 = arith.mulf %20, %21 : vector<256x8xf32>
    %23 = vector.broadcast %17 : vector<1x8xf32> to vector<256x8xf32>
    %24 = arith.addf %22, %23 : vector<256x8xf32>
    %cst_12 = arith.constant 0.000000e+00 : f32
    %25 = vector.broadcast %cst_12 : f32 to vector<256x8xf32>
    %26 = arith.cmpf ogt, %24, %25 : vector<256x8xf32>
    %cst_13 = arith.constant 0.00999999977 : f32
    %27 = vector.broadcast %cst_13 : f32 to vector<256x8xf32>
    %28 = arith.mulf %27, %24 : vector<256x8xf32>
    %29 = arith.select %26, %24, %28 : vector<256x8xi1>, vector<256x8xf32>
    %30 = arith.truncf %29 : vector<256x8xf32> to vector<256x8xbf16>
    %31 = vector.shape_cast %30 : vector<256x8xbf16> to vector<16x16x8xbf16>
    %cst_14 = arith.constant 0.000000e+00 : bf16
    %32 = vector.broadcast %cst_14 : bf16 to vector<1x16x8xbf16>
    %33 = tpu.concatenate %32, %31, %32 in 0 : vector<1x16x8xbf16>, vector<16x16x8xbf16>, vector<1x16x8xbf16> -> vector<18x16x8xbf16>
    %cst_15 = arith.constant 0.000000e+00 : bf16
    %34 = vector.broadcast %cst_15 : bf16 to vector<18x1x8xbf16>
    %35 = tpu.concatenate %34, %33, %34 in 1 : vector<18x1x8xbf16>, vector<18x16x8xbf16>, vector<18x1x8xbf16> -> vector<18x18x8xbf16>
    %36 = vector.extract_strided_slice %35 {offsets = [0, 0, 0], sizes = [16, 16, 8], strides = [1, 1, 1]} : vector<18x18x8xbf16> to vector<16x16x8xbf16>
    %37 = vector.extract_strided_slice %35 {offsets = [0, 1, 0], sizes = [16, 16, 8], strides = [1, 1, 1]} : vector<18x18x8xbf16> to vector<16x16x8xbf16>
    %38 = vector.extract_strided_slice %35 {offsets = [0, 2, 0], sizes = [16, 16, 8], strides = [1, 1, 1]} : vector<18x18x8xbf16> to vector<16x16x8xbf16>
    %39 = vector.extract_strided_slice %35 {offsets = [1, 0, 0], sizes = [16, 16, 8], strides = [1, 1, 1]} : vector<18x18x8xbf16> to vector<16x16x8xbf16>
    %40 = vector.extract_strided_slice %35 {offsets = [1, 1, 0], sizes = [16, 16, 8], strides = [1, 1, 1]} : vector<18x18x8xbf16> to vector<16x16x8xbf16>
    %41 = vector.extract_strided_slice %35 {offsets = [1, 2, 0], sizes = [16, 16, 8], strides = [1, 1, 1]} : vector<18x18x8xbf16> to vector<16x16x8xbf16>
    %42 = vector.extract_strided_slice %35 {offsets = [2, 0, 0], sizes = [16, 16, 8], strides = [1, 1, 1]} : vector<18x18x8xbf16> to vector<16x16x8xbf16>
    %43 = vector.extract_strided_slice %35 {offsets = [2, 1, 0], sizes = [16, 16, 8], strides = [1, 1, 1]} : vector<18x18x8xbf16> to vector<16x16x8xbf16>
    %44 = vector.extract_strided_slice %35 {offsets = [2, 2, 0], sizes = [16, 16, 8], strides = [1, 1, 1]} : vector<18x18x8xbf16> to vector<16x16x8xbf16>
    %cst_16 = arith.constant 0.000000e+00 : bf16
    %45 = vector.broadcast %cst_16 : bf16 to vector<16x16x56xbf16>
    %46 = tpu.concatenate %36, %37, %38, %39, %40, %41, %42, %43, %44, %45 in 2 : vector<16x16x8xbf16>, vector<16x16x8xbf16>, vector<16x16x8xbf16>, vector<16x16x8xbf16>, vector<16x16x8xbf16>, vector<16x16x8xbf16>, vector<16x16x8xbf16>, vector<16x16x8xbf16>, vector<16x16x8xbf16>, vector<16x16x56xbf16> -> vector<16x16x128xbf16>
    %47 = vector.shape_cast %46 : vector<16x16x128xbf16> to vector<256x128xbf16>
    %c0_17 = arith.constant 0 : index
    %c0_18 = arith.constant 0 : index
    %48 = vector.load %arg5[%c0_17, %c0_18] : memref<128x128xbf16, #tpu.memory_space<vmem>>, vector<128x128xbf16>
    %cst_19 = arith.constant dense<0.000000e+00> : vector<256x128xf32>
    %49 = tpu.matmul %47, %48, %cst_19 {dimension_numbers = #tpu.dot_dimension_numbers<[1], [0], [0], [1], [0, 0, 1, 1], [], []>} : vector<256x128xbf16>, vector<128x128xbf16>, vector<256x128xf32> -> vector<256x128xf32>
    %50 = vector.extract_strided_slice %49 {offsets = [0, 0], sizes = [256, 8], strides = [1, 1]} : vector<256x128xf32> to vector<256x8xf32>
    %cst_20 = arith.constant dense<0.000000e+00> : vector<8xf32>
    %51 = vector.multi_reduction <add>, %50, %cst_20 [0] : vector<256x8xf32> to vector<8xf32>
    %52 = vector.shape_cast %51 : vector<8xf32> to vector<1x8xf32>
    %c0_21 = arith.constant 0 : index
    %c0_22 = arith.constant 0 : index
    %c0_23 = arith.constant 0 : index
    %53 = vector.load %arg7[%c0_21, %c0_22, %c0_23] : memref<1x2x8xf32, #tpu.memory_space<vmem>>, vector<1x1x8xf32>
    %54 = vector.shape_cast %53 : vector<1x1x8xf32> to vector<1x8xf32>
    %55 = vector.shape_cast %52 : vector<1x8xf32> to vector<1x1x8xf32>
    tpu.vector_store %arg7[%c0_21, %c0_22, %c0_23], %55 {strides = array<i32>} : memref<1x2x8xf32, #tpu.memory_space<vmem>>, vector<1x1x8xf32>,
    %56 = arith.mulf %50, %50 : vector<256x8xf32>
    %cst_24 = arith.constant dense<0.000000e+00> : vector<8xf32>
    %57 = vector.multi_reduction <add>, %56, %cst_24 [0] : vector<256x8xf32> to vector<8xf32>
    %58 = vector.shape_cast %57 : vector<8xf32> to vector<1x8xf32>
    %c0_25 = arith.constant 0 : index
    %c1 = arith.constant 1 : index
    %c0_26 = arith.constant 0 : index
    %59 = vector.load %arg7[%c0_25, %c1, %c0_26] : memref<1x2x8xf32, #tpu.memory_space<vmem>>, vector<1x1x8xf32>
    %60 = vector.shape_cast %59 : vector<1x1x8xf32> to vector<1x8xf32>
    %61 = vector.shape_cast %58 : vector<1x8xf32> to vector<1x1x8xf32>
    tpu.vector_store %arg7[%c0_25, %c1, %c0_26], %61 {strides = array<i32>} : memref<1x2x8xf32, #tpu.memory_space<vmem>>, vector<1x1x8xf32>,
    %62 = arith.truncf %50 : vector<256x8xf32> to vector<256x8xbf16>
    %c0_27 = arith.constant 0 : index
    %c0_28 = arith.constant 0 : index
    %c0_29 = arith.constant 0 : index
    %63 = vector.load %arg6[%c0_27, %c0_28, %c0_29] : memref<1x256x8xbf16, #tpu.memory_space<vmem>>, vector<1x256x8xbf16>
    %64 = vector.shape_cast %63 : vector<1x256x8xbf16> to vector<256x8xbf16>
    %65 = vector.shape_cast %62 : vector<256x8xbf16> to vector<1x256x8xbf16>
    tpu.vector_store %arg6[%c0_27, %c0_28, %c0_29], %65 {strides = array<i32>} : memref<1x256x8xbf16, #tpu.memory_space<vmem>>, vector<1x256x8xbf16>,
    return
  }
  func.func @transform_0(%arg0: i32) -> (i32, i32, i32) {
    %c0_i32 = arith.constant 0 : i32
    %c0_i32_0 = arith.constant 0 : i32
    %c0_i32_1 = arith.constant 0 : i32
    return %arg0, %c0_i32, %c0_i32_0 : i32, i32, i32
  }
  func.func @transform_1(%arg0: i32) -> (i32, i32, i32) {
    %c0_i32 = arith.constant 0 : i32
    %c0_i32_0 = arith.constant 0 : i32
    %c0_i32_1 = arith.constant 0 : i32
    %c0_i32_2 = arith.constant 0 : i32
    return %c0_i32, %c0_i32_0, %c0_i32_1 : i32, i32, i32
  }
  func.func @transform_2(%arg0: i32) -> (i32, i32) {
    %c0_i32 = arith.constant 0 : i32
    %c0_i32_0 = arith.constant 0 : i32
    %c0_i32_1 = arith.constant 0 : i32
    return %c0_i32, %c0_i32_0 : i32, i32
  }
  func.func @transform_3(%arg0: i32) -> (i32, i32) {
    %c0_i32 = arith.constant 0 : i32
    %c0_i32_0 = arith.constant 0 : i32
    %c0_i32_1 = arith.constant 0 : i32
    return %c0_i32, %c0_i32_0 : i32, i32
  }
  func.func @transform_4(%arg0: i32) -> (i32, i32) {
    %c0_i32 = arith.constant 0 : i32
    %c0_i32_0 = arith.constant 0 : i32
    %c0_i32_1 = arith.constant 0 : i32
    return %c0_i32, %c0_i32_0 : i32, i32
  }
  func.func @transform_5(%arg0: i32) -> (i32, i32, i32) {
    %c0_i32 = arith.constant 0 : i32
    %c0_i32_0 = arith.constant 0 : i32
    %c0_i32_1 = arith.constant 0 : i32
    return %arg0, %c0_i32, %c0_i32_0 : i32, i32, i32
  }
  func.func @transform_6(%arg0: i32) -> (i32, i32, i32) {
    %c0_i32 = arith.constant 0 : i32
    %c0_i32_0 = arith.constant 0 : i32
    %c0_i32_1 = arith.constant 0 : i32
    return %arg0, %c0_i32, %c0_i32_0 : i32, i32, i32
  }
}

</mosaic_0001>

<bundles_post_ra>
// kernel: residual_block_pallas.5
= control target key start
LH: loop header
LB: loop body
LE: loop exit
PB: predicated region body
PF: predicated region fallthrough
CT: control target
= control target key end

     0   :  { %s673_s18 = smov 0   ;;  %s861_s0 = inlined_call_operand.vmem [shape: bf16[512,8], index: 0, kind: input, shape index: {}]   ;;  %s862_s1 = inlined_call_operand.vmem [shape: bf16[512,8], index: 1, kind: input, shape index: {}]   ;;  %s863_s2 = inlined_call_operand.vmem [shape: f32[2,2,8], index: 2, kind: input, shape index: {}]   ;;  %s864_s3 = inlined_call_operand.vmem [shape: f32[1,8], index: 3, kind: input, shape index: {}]   ;;  %s865_s4 = inlined_call_operand.vmem [shape: f32[1,8], index: 4, kind: input, shape index: {}]   ;;  %s866_s5 = inlined_call_operand.vmem [shape: f32[512,8], index: 5, kind: output, shape index: {}]  }
   0x1 LB: > { %s534_s19 = sadd.s32 4294967295, %s641_s18   ;;  %p538_p0 = scmp.ge.s32.totalorder %s641_s18, 1  ;;  %s641_s18 = sphi %s673_s18, %s15_s18  }
   0x2   : > { %p199_p1 = scmp.lt.s32.totalorder %s641_s18, 5 }
   0x4   : > { %p200_p2 = pnand %p538_p0, %p199_p1 }
   0x5   : > { %s539_s24 = sshll.u32 (!%p200_p2), %s534_s19, 4 }
   0x6   : > { %203 = sbr.rel (%p200_p2) target bundleno = 86 (0x56), region = 40  ;;  %p233_p3 = scmp.lt.s32.totalorder (!%p200_p2), %s539_s24, 63 }
   0xb   : > { %v250_v0 = vld [vmem:[%s863_s2] sm:$0x3]  ;;  %v251_v1 = vld [vmem:[%s863_s2 + $0x2] sm:$0x3]  ;;  %vm254_vm0 = vcmask 58368   ;;  %s868_s24 = smov (!%p233_p3, %s539_s24), 63 }
   0xc   : > { %v255_v2 = vsel %vm254_vm0, %v250_v0, 0.0  ;;  %v256_v3 = vsel %vm254_vm0, %v251_v1, 0.0  ;;  %s540_s25 = sshll.u32 %s868_s24, 2  ;;  %v252_v34 = vld [vmem:[%s864_s3] sm:$0x1]  ;;  %vm449_vm4 = vcmask 64512  }
   0xd   : > { %v257_v4 = vadd.f32 %v256_v3, %v255_v2  ;;  %s698_s28 = scalar_lea.vmem %s861_s0, %s540_s25  ;;  %s703_s6 = scalar_lea.vmem %s862_s1, %s540_s25  ;;  %v253_v58 = vld [vmem:[%s865_s4] sm:$0x1] }
   0xe   : > { %v548_v17 = vld [vmem:[%s698_s28] sm:$0xff]   ;;  %v611_v18 = vld [vmem:[%s698_s28 + $0x8] sm:$0xff]   ;;  %v612_v19 = vld [vmem:[%s698_s28 + $0x10] sm:$0xff]   ;;  %s544_s11 = sshll.u32 %s868_s24, 3 }
   0xf   : > { %v687_v5 = vmul.f32 0.001953125, %v257_v4  ;;  %v613_v20 = vld [vmem:[%s698_s28 + $0x18] sm:$0xff]   ;;  %v710_v21 = vld [vmem:[%s703_s6] sm:$0xff]   ;;  %v713_v22 = vld [vmem:[%s703_s6 + $0x8] sm:$0xff]   ;;  %v549_v23 = vunpack.c.l.bf16 %v548_v17  ;;  %v550_v24 = vunpack.c.h.bf16 %v548_v17  ;;  %v553_v25 = vunpack.c.l.bf16 %v611_v18  ;;  %s794_s14 = scalar_lea.vmem %s866_s5, %s544_s11 }
  0x10   : > { %v716_v26 = vld [vmem:[%s703_s6 + $0x10] sm:$0xff]   ;;  %v614_v27 = vld [vmem:[%s698_s28 + $0x20] sm:$0xff]   ;;  %v554_v28 = vunpack.c.h.bf16 %v611_v18  ;;  %v557_v29 = vunpack.c.l.bf16 %v612_v19  ;;  %v558_v30 = vunpack.c.h.bf16 %v612_v19  ;;  %v561_v31 = vunpack.c.l.bf16 %v613_v20  ;;  %v720_v32 = vld [vmem:[%s703_s6 + $0x18] sm:$0xff]  }
  0x11   : > { %v259_v6 = vmul.f32 %v687_v5, %v687_v5  ;;  %v615_v33 = vld [vmem:[%s698_s28 + $0x28] sm:$0xff]   ;;  %v581_v35 = vunpack.c.l.bf16 %v710_v21  ;;  %v582_v36 = vunpack.c.h.bf16 %v710_v21  ;;  %v585_v37 = vunpack.c.l.bf16 %v713_v22  ;;  %v616_v39 = vld [vmem:[%s698_s28 + $0x30] sm:$0xff]   ;;  %v733_v43 = vld [vmem:[%s703_s6 + $0x20] sm:$0xff]  }
  0x12   : > { %v562_v38 = vunpack.c.h.bf16 %v613_v20  ;;  %v586_v40 = vunpack.c.h.bf16 %v713_v22  ;;  %v589_v41 = vunpack.c.l.bf16 %v716_v26  ;;  %v565_v42 = vunpack.c.l.bf16 %v614_v27  ;;  %v736_v45 = vld [vmem:[%s703_s6 + $0x28] sm:$0xff]   ;;  %v739_v46 = vld [vmem:[%s698_s28 + $0x38] sm:$0xff]   ;;  %v745_v55 = vld [vmem:[%s703_s6 + $0x30] sm:$0xff]  }
  0x13   : > { %v261_v7 = vrot.slane %v259_v6, 7  ;;  %v566_v44 = vunpack.c.h.bf16 %v614_v27  ;;  %v590_v48 = vunpack.c.h.bf16 %v716_v26  ;;  %v593_v49 = vunpack.c.l.bf16 %v720_v32  ;;  %v748_v57 = vld [vmem:[%s703_s6 + $0x38] sm:$0xff]  }
  0x14   : > { %v569_v50 = vunpack.c.l.bf16 %v615_v33  ;;  %v570_v51 = vunpack.c.h.bf16 %v615_v33  ;;  %v594_v53 = vunpack.c.h.bf16 %v720_v32  ;;  %v573_v54 = vunpack.c.l.bf16 %v616_v39 }
  0x15   : > { %v263_v8 = vsub.f32 %v687_v5, %v261_v7  ;;  %v574_v56 = vunpack.c.h.bf16 %v616_v39  ;;  %v597_v59 = vunpack.c.l.bf16 %v733_v43  ;;  %v598_v60 = vunpack.c.h.bf16 %v733_v43 }
  0x16   : > { %v601_v61 = vunpack.c.l.bf16 %v736_v45  ;;  %v577_v62 = vunpack.c.l.bf16 %v739_v46  ;;  %v602_v1 = vunpack.c.h.bf16 %v736_v45  ;;  %v578_v2 = vunpack.c.h.bf16 %v739_v46 }
  0x17   : > { %v264_v9 = vadd.f32 1e-05, %v263_v8  ;;  %v605_v3 = vunpack.c.l.bf16 %v745_v55  ;;  %v606_v4 = vunpack.c.h.bf16 %v745_v55  ;;  %v609_v6 = vunpack.c.l.bf16 %v748_v57 }
  0x18   : > { %v610_v7 = vunpack.c.h.bf16 %v748_v57 }
  0x19   : > { %633 = vrsqrt.f32 %v264_v9  ;;  %vm271_vm1 = vweird.f32 %v264_v9 }
  0x1f   : > { %v634_v10 = vpop.eup %633 }
  0x20   : > { %v266_v11 = vmul.f32 %v634_v10, %v264_v9  ;;  %vm272_vm2 = vweird.f32 %v634_v10 }
  0x21   : > { %vm273_vm3 = vmor %vm271_vm1, %vm272_vm2 }
  0x22   : > { %v267_v12 = vmul.f32 %v634_v10, %v266_v11 }
  0x24   : > { %v268_v13 = vmul.f32 0.5, %v267_v12 }
  0x26   : > { %v269_v14 = vsub.f32 1.5, %v268_v13 }
  0x28   : > { %v270_v15 = vmul.f32 %v634_v10, %v269_v14 }
  0x2a   : > { %v274_v16 = vsel %vm273_vm3, %v634_v10, %v270_v15 }
  0x2b   : > { %276 = vst [vmem:[#allocation1] sm:$0xff] %v274_v16 }
  0x32   : > { %v278_v47 = vld [vmem:[#allocation1 + $0x1] ss:$9 sm:$0xff] }
  0x33   : > { %v280_v52 = vmul.f32 %v278_v47, %v252_v34 }
  0x35   : > { %v281_v63 = vmul.f32 %v280_v52, %v687_v5  ;;  %v758_v0 = vperm.slane %v280_v52, 0 }
  0x37   : > { %v282_v8 = vsub.f32 %v253_v58, %v281_v63  ;;  %v318_v9 = vmul.f32 %v549_v23, %v758_v0  ;;  %v319_v5 = vmul.f32 %v550_v24, %v758_v0  ;;  %v320_v10 = vmul.f32 %v553_v25, %v758_v0 }
  0x38   : > { %v321_v11 = vmul.f32 %v554_v28, %v758_v0  ;;  %v322_v12 = vmul.f32 %v557_v29, %v758_v0  ;;  %v323_v13 = vmul.f32 %v558_v30, %v758_v0  ;;  %v324_v14 = vmul.f32 %v561_v31, %v758_v0 }
  0x39   : > { %v773_v15 = vperm.slane %v282_v8, 0  ;;  %v325_v16 = vmul.f32 %v562_v38, %v758_v0  ;;  %v326_v17 = vmul.f32 %v565_v42, %v758_v0  ;;  %v327_v18 = vmul.f32 %v566_v44, %v758_v0 }
  0x3a   : > { %v328_v19 = vmul.f32 %v569_v50, %v758_v0  ;;  %v329_v20 = vmul.f32 %v570_v51, %v758_v0  ;;  %v330_v21 = vmul.f32 %v573_v54, %v758_v0  ;;  %v331_v22 = vmul.f32 %v574_v56, %v758_v0 }
  0x3b   : > { %v337_v23 = vadd.f32 %v773_v15, %v318_v9  ;;  %v338_v24 = vadd.f32 %v773_v15, %v319_v5  ;;  %v339_v25 = vadd.f32 %v773_v15, %v320_v10  ;;  %v340_v26 = vadd.f32 %v773_v15, %v321_v11 }
  0x3c   : > { %v341_v27 = vadd.f32 %v773_v15, %v322_v12  ;;  %v342_v28 = vadd.f32 %v773_v15, %v323_v13  ;;  %v343_v29 = vadd.f32 %v773_v15, %v324_v14  ;;  %v344_v30 = vadd.f32 %v773_v15, %v325_v16 }
  0x3d   : > { %v385_v31 = vadd.f32 %v581_v35, %v337_v23  ;;  %v386_v32 = vadd.f32 %v582_v36, %v338_v24  ;;  %v387_v33 = vadd.f32 %v585_v37, %v339_v25  ;;  %v388_v34 = vadd.f32 %v586_v40, %v340_v26 }
  0x3e   : > { %v389_v38 = vadd.f32 %v589_v41, %v341_v27  ;;  %v390_v39 = vadd.f32 %v590_v48, %v342_v28  ;;  %v391_v42 = vadd.f32 %v593_v49, %v343_v29  ;;  %v392_v44 = vadd.f32 %v594_v53, %v344_v30 }
  0x3f   : > { %vm401_vm5 = vcmp.gt.f32.partialorder %v385_v31, 0.0  ;;  %v417_v47 = vmul.f32 0.01, %v385_v31  ;;  %vm402_vm6 = vcmp.gt.f32.partialorder %v386_v32, 0.0  ;;  %v418_v50 = vmul.f32 0.01, %v386_v32 }
  0x40   : > { %vm403_vm7 = vcmp.gt.f32.partialorder %v387_v33, 0.0  ;;  %v419_v35 = vmul.f32 0.01, %v387_v33  ;;  %vm404_vm8 = vcmp.gt.f32.partialorder %v388_v34, 0.0  ;;  %v420_v36 = vmul.f32 0.01, %v388_v34 }
  0x41   : > { %v433_v37 = vsel %vm401_vm5, %v385_v31, %v417_v47  ;;  %v434_v40 = vsel %vm402_vm6, %v386_v32, %v418_v50  ;;  %vm405_vm9 = vcmp.gt.f32.partialorder %v389_v38, 0.0  ;;  %v421_v41 = vmul.f32 0.01, %v389_v38 }
  0x42   : > { %450 = vst.msk [vmem:[%s794_s14] sm:$0xff] %vm449_vm4, %v433_v37  ;;  %v435_v48 = vsel %vm403_vm7, %v387_v33, %v419_v35  ;;  %v436_v49 = vsel %vm404_vm8, %v388_v34, %v420_v36  ;;  %vm406_vm10 = vcmp.gt.f32.partialorder %v390_v39, 0.0  ;;  %v422_v51 = vmul.f32 0.01, %v390_v39 }
  0x43   : > { %451 = vst.msk [vmem:[%s794_s14 + $0x8] sm:$0xff] %vm449_vm4, %v434_v40  ;;  %v437_v52 = vsel %vm405_vm9, %v389_v38, %v421_v41  ;;  %vm407_vm11 = vcmp.gt.f32.partialorder %v391_v42, 0.0  ;;  %v423_v53 = vmul.f32 0.01, %v391_v42  ;;  %vm408_vm12 = vcmp.gt.f32.partialorder %v392_v44, 0.0 }
  0x44   : > { %452 = vst.msk [vmem:[%s794_s14 + $0x10] sm:$0xff] %vm449_vm4, %v435_v48  ;;  %v438_v54 = vsel %vm406_vm10, %v390_v39, %v422_v51  ;;  %v424_v56 = vmul.f32 0.01, %v392_v44  ;;  %v345_v58 = vadd.f32 %v773_v15, %v326_v17  ;;  %v346_v63 = vadd.f32 %v773_v15, %v327_v18 }
  0x45   : > { %453 = vst.msk [vmem:[%s794_s14 + $0x18] sm:$0xff] %vm449_vm4, %v436_v49  ;;  %v439_v8 = vsel %vm407_vm11, %v391_v42, %v423_v53  ;;  %v347_v9 = vadd.f32 %v773_v15, %v328_v19  ;;  %v348_v5 = vadd.f32 %v773_v15, %v329_v20  ;;  %v349_v10 = vadd.f32 %v773_v15, %v330_v21 }
  0x46   : > { %454 = vst.msk [vmem:[%s794_s14 + $0x20] sm:$0xff] %vm449_vm4, %v437_v52  ;;  %v440_v11 = vsel %vm408_vm12, %v392_v44, %v424_v56  ;;  %v393_v12 = vadd.f32 %v597_v59, %v345_v58  ;;  %v394_v13 = vadd.f32 %v598_v60, %v346_v63  ;;  %v350_v14 = vadd.f32 %v773_v15, %v331_v22 }
  0x47   : > { %455 = vst.msk [vmem:[%s794_s14 + $0x28] sm:$0xff] %vm449_vm4, %v438_v54  ;;  %v395_v16 = vadd.f32 %v601_v61, %v347_v9  ;;  %v396_v17 = vadd.f32 %v602_v1, %v348_v5  ;;  %v397_v18 = vadd.f32 %v605_v3, %v349_v10  ;;  %v332_v59 = vmul.f32 %v577_v62, %v758_v0 }
  0x48   : > { %456 = vst.msk [vmem:[%s794_s14 + $0x30] sm:$0xff] %vm449_vm4, %v439_v8  ;;  %vm409_vm13 = vcmp.gt.f32.partialorder %v393_v12, 0.0  ;;  %v425_v43 = vmul.f32 0.01, %v393_v12  ;;  %vm410_vm14 = vcmp.gt.f32.partialorder %v394_v13, 0.0  ;;  %v398_v60 = vadd.f32 %v606_v4, %v350_v14 }
  0x49   : > { %457 = vst.msk [vmem:[%s794_s14 + $0x38] sm:$0xff] %vm449_vm4, %v440_v11  ;;  %v426_v45 = vmul.f32 0.01, %v394_v13  ;;  %vm411_vm15 = vcmp.gt.f32.partialorder %v395_v16, 0.0  ;;  %v427_v61 = vmul.f32 0.01, %v395_v16  ;;  %v351_v1 = vadd.f32 %v773_v15, %v332_v59 }
  0x4a   : > { %v441_v3 = vsel %vm409_vm13, %v393_v12, %v425_v43  ;;  %vm412_vm0 = vcmp.gt.f32.partialorder %v396_v17, 0.0  ;;  %v428_v62 = vmul.f32 0.01, %v396_v17  ;;  %vm413_vm1 = vcmp.gt.f32.partialorder %v397_v18, 0.0 }
  0x4b   : > { %458 = vst.msk [vmem:[%s794_s14 + $0x40] sm:$0xff] %vm449_vm4, %v441_v3  ;;  %v442_v19 = vsel %vm410_vm14, %v394_v13, %v426_v45  ;;  %v443_v55 = vsel %vm411_vm15, %v395_v16, %v427_v61  ;;  %v429_v4 = vmul.f32 0.01, %v397_v18  ;;  %vm414_vm2 = vcmp.gt.f32.partialorder %v398_v60, 0.0 }
  0x4c   : > { %459 = vst.msk [vmem:[%s794_s14 + $0x48] sm:$0xff] %vm449_vm4, %v442_v19  ;;  %v444_v20 = vsel %vm412_vm0, %v396_v17, %v428_v62  ;;  %v430_v21 = vmul.f32 0.01, %v398_v60  ;;  %v399_v22 = vadd.f32 %v609_v6, %v351_v1  ;;  %v333_v23 = vmul.f32 %v578_v2, %v758_v0 }
  0x4d   : > { %460 = vst.msk [vmem:[%s794_s14 + $0x50] sm:$0xff] %vm449_vm4, %v443_v55  ;;  %v445_v24 = vsel %vm413_vm1, %v397_v18, %v429_v4 }
  0x4e   : > { %461 = vst.msk [vmem:[%s794_s14 + $0x58] sm:$0xff] %vm449_vm4, %v444_v20  ;;  %v446_v25 = vsel %vm414_vm2, %v398_v60, %v430_v21  ;;  %vm415_vm3 = vcmp.gt.f32.partialorder %v399_v22, 0.0  ;;  %v431_v26 = vmul.f32 0.01, %v399_v22  ;;  %v352_v27 = vadd.f32 %v773_v15, %v333_v23 }
  0x4f   : > { %462 = vst.msk [vmem:[%s794_s14 + $0x60] sm:$0xff] %vm449_vm4, %v445_v24 }
  0x50   : > { %463 = vst.msk [vmem:[%s794_s14 + $0x68] sm:$0xff] %vm449_vm4, %v446_v25  ;;  %v447_v6 = vsel %vm415_vm3, %v399_v22, %v431_v26  ;;  %v400_v46 = vadd.f32 %v610_v7, %v352_v27 }
  0x51   : > { %464 = vst.msk [vmem:[%s794_s14 + $0x70] sm:$0xff] %vm449_vm4, %v447_v6 }
  0x52   : > { %vm416_vm5 = vcmp.gt.f32.partialorder %v400_v46, 0.0  ;;  %v432_v0 = vmul.f32 0.01, %v400_v46 }
  0x54   : > { %v448_v2 = vsel %vm416_vm5, %v400_v46, %v432_v0 }
  0x55   : > { %465 = vst.msk [vmem:[%s794_s14 + $0x78] sm:$0xff] %vm449_vm4, %v448_v2 }
  0x56 PF: > { %s15_s18 = sadd.s32 1, %s641_s18  }
  0x57   : > { %p12_p4 = scmp.ge.s32.totalorder %s15_s18, 6  }
  0x59   :  { %14 = sbr.rel (!%p12_p4) target bundleno = 1 (0x1), region = 74 }

// kernel: residual_block_pallas.4
= control target key start
LH: loop header
LB: loop body
LE: loop exit
PB: predicated region body
PF: predicated region fallthrough
CT: control target
= control target key end

     0   :  { %s2394_s21 = smov 0   ;;  %s3595_s0 = inlined_call_operand.vmem [shape: bf16[2,256,8], index: 0, kind: input, shape index: {}]   ;;  %s3596_s1 = inlined_call_operand.vmem [shape: f32[2,2,8], index: 1, kind: input, shape index: {}]   ;;  %s3597_s2 = inlined_call_operand.vmem [shape: f32[1,8], index: 2, kind: input, shape index: {}]   ;;  %s3598_s3 = inlined_call_operand.vmem [shape: f32[1,8], index: 3, kind: input, shape index: {}]   ;;  %s3599_s4 = inlined_call_operand.vmem [shape: bf16[128,128], index: 4, kind: input, shape index: {}]   ;;  %s3600_s5 = inlined_call_operand.vmem [shape: bf16[2,256,8], index: 5, kind: output, shape index: {0}]   ;;  %s3601_s6 = inlined_call_operand.vmem [shape: f32[2,2,8], index: 6, kind: output, shape index: {1}]  }
   0x1 LB: > { %s2150_s22 = sadd.s32 4294967295, %s2348_s21   ;;  %p2154_p0 = scmp.ge.s32.totalorder %s2348_s21, 1  ;;  %s2348_s21 = sphi %s2394_s21, %s17_s21  }
   0x2   : > { %p215_p1 = scmp.lt.s32.totalorder %s2348_s21, 3 }
   0x4   : > { %p216_p2 = pnand %p2154_p0, %p215_p1 }
   0x6   : > { %219 = sbr.rel (%p216_p2) target bundleno = 723 (0x2d3), region = 40 }
   0xb   : > { %vm792_vm0 = vcmask 1040384   ;;  %vm793_vm1 = vsmask.f32 256  ;;  %v2350_v0 = vmov 0   ;;  %vm268_vm3 = vcmask 58368   ;;  %s2351_s27 = smov 16  }
   0xc   : > { %v642_v1 = vrot.slane %v2350_v0, 7  ;;  %vm2402_vm2 = vmand %vm792_vm0, %vm793_vm1  ;;  %v264_v3 = vld [vmem:[%s3596_s1] sm:$0x3]  ;;  %v265_v4 = vld [vmem:[%s3596_s1 + $0x2] sm:$0x3]  ;;  %vm1086_vm4 = vcmask 1046528  }
   0xd   : > { %v269_v7 = vsel %vm268_vm3, %v264_v3, 0.0  ;;  %v270_v13 = vsel %vm268_vm3, %v265_v4, 0.0  ;;  %vm829_vm5 = vsmask.f32 7424  ;;  %s2352_s28 = smov 8   ;;  %p249_p3 = scmp.lt.s32.totalorder %s2150_s22, 1 }
   0xe   : > { %v2414_v5 = vsel %vm2402_vm2, 0, %v642_v1  ;;  %v812_v6 = vsel %vm2402_vm2, %v642_v1, 0  ;;  %v271_v16 = vadd.f32 %v270_v13, %v269_v7  ;;  %v266_v34 = vld [vmem:[%s3597_s2] sm:$0x1]  ;;  %s2353_s13 = smov 24   ;;  %s2354_s14 = smov 48  }
   0xf   : > { %v1087_v8 = vrot.slane %v2414_v5, 1  ;;  %v1088_v9 = vrot.slane %v812_v6, 1  ;;  %v831_v10 = vshrl.u32 %v2414_v5, 16  ;;  %v833_v11 = vshll.u32 %v2414_v5, 16  ;;  %s3619_s22 = smov (!%p249_p3, %s2150_s22), 1  ;;  %s2355_s15 = smov 32  }
  0x10   : > { %v838_v12 = vshll.u32 %v812_v6, 16  ;;  %v272_v19 = vmul.f32 0.001953125, %v271_v16  ;;  %s2210_s29 = sshll.u32 %s3619_s22, 7  ;;  %v267_v47 = vld [vmem:[%s3598_s3] sm:$0x1]  ;;  %s2356_s16 = smov 40  }
  0x11   : > { %v2422_v14 = vsel %vm1086_vm4, %v1087_v8, %v1088_v9  ;;  %v835_v15 = vrot.slane %v833_v11, 1  ;;  %s2443_s8 = scalar_lea.vmem %s3595_s0, %s2210_s29  ;;  %s2357_s17 = smov 56  }
  0x12   : > { %3610 = vst [vmem:[#allocation2_spill] sm:$0xff] %v2422_v14  ;;  %1135 = vrot.lane.b32.xlu1 %v2422_v14, %s2351_s27  ;;  %v840_v17 = vrot.slane %v838_v12, 1  ;;  %v273_v21 = vmul.f32 %v272_v19, %v272_v19  ;;  %v2285_v32 = vld [vmem:[%s2443_s8 + $0x10] sm:$0xff]   ;;  %v2284_v33 = vld [vmem:[%s2443_s8 + $0x8] sm:$0xff]   ;;  %v2221_v35 = vld [vmem:[%s2443_s8] sm:$0xff]   ;;  %s2358_s18 = smov 64  }
  0x13   : > { %v836_v18 = vor.u32 %v835_v15, %v831_v10  ;;  %v2288_v36 = vld [vmem:[%s2443_s8 + $0x28] sm:$0xff]   ;;  %v2287_v37 = vld [vmem:[%s2443_s8 + $0x20] sm:$0xff]   ;;  %v2230_v39 = vunpack.c.l.bf16 %v2285_v32  ;;  %v2231_v40 = vunpack.c.h.bf16 %v2285_v32  ;;  %v2226_v41 = vunpack.c.l.bf16 %v2284_v33  ;;  %v2286_v42 = vld [vmem:[%s2443_s8 + $0x18] sm:$0xff]  }
  0x14   : > { %v275_v22 = vrot.slane %v273_v21, 7  ;;  %v2227_v44 = vunpack.c.h.bf16 %v2284_v33  ;;  %v2222_v45 = vunpack.c.l.bf16 %v2221_v35  ;;  %v2223_v46 = vunpack.c.h.bf16 %v2221_v35  ;;  %v2291_v56 = vld [vmem:[%s2443_s8 + $0x40] sm:$0xff]   ;;  %v2461_v57 = vld [vmem:[%s2443_s8 + $0x38] sm:$0xff]  }
  0x15   : > { %v2427_v20 = vsel %vm829_vm5, %v836_v18, %v840_v17  ;;  %v2242_v48 = vunpack.c.l.bf16 %v2288_v36  ;;  %v2243_v49 = vunpack.c.h.bf16 %v2288_v36  ;;  %v2238_v50 = vunpack.c.l.bf16 %v2287_v37 }
  0x16   : > { %3611 = vst [vmem:[#allocation3_spill] sm:$0xff] %v2427_v20  ;;  %1022 = vrot.lane.b32.xlu0 %v2427_v20, %s2352_s28  ;;  %v277_v23 = vsub.f32 %v272_v19, %v275_v22  ;;  %v2239_v51 = vunpack.c.h.bf16 %v2287_v37  ;;  %v2234_v54 = vunpack.c.l.bf16 %v2286_v42  ;;  %v2235_v55 = vunpack.c.h.bf16 %v2286_v42 }
  0x17   : > { %v2254_v58 = vunpack.c.l.bf16 %v2291_v56  ;;  %v2255_v59 = vunpack.c.h.bf16 %v2291_v56  ;;  %v2250_v60 = vunpack.c.l.bf16 %v2461_v57  ;;  %v2251_v61 = vunpack.c.h.bf16 %v2461_v57 }
  0x18   : > { %v278_v24 = vadd.f32 1e-05, %v277_v23 }
  0x1a   : > { %2340 = vrsqrt.f32 %v278_v24  ;;  %vm285_vm6 = vweird.f32 %v278_v24 }
  0x20   : > { %v2341_v25 = vpop.eup %2340 }
  0x21   : > { %v280_v26 = vmul.f32 %v2341_v25, %v278_v24  ;;  %vm286_vm7 = vweird.f32 %v2341_v25 }
  0x22   : > { %vm287_vm8 = vmor %vm285_vm6, %vm286_vm7 }
  0x23   : > { %v281_v27 = vmul.f32 %v2341_v25, %v280_v26 }
  0x25   : > { %v282_v28 = vmul.f32 0.5, %v281_v27 }
  0x27   : > { %v283_v29 = vsub.f32 1.5, %v282_v28 }
  0x29   : > { %v284_v30 = vmul.f32 %v2341_v25, %v283_v29 }
  0x2b   : > { %v288_v31 = vsel %vm287_vm8, %v2341_v25, %v284_v30 }
  0x2c   : > { %290 = vst [vmem:[#allocation1] sm:$0xff] %v288_v31 }
  0x33   : > { %v292_v38 = vld [vmem:[#allocation1 + $0x1] ss:$9 sm:$0xff] }
  0x34   : > { %v294_v43 = vmul.f32 %v292_v38, %v266_v34 }
  0x36   : > { %v295_v52 = vmul.f32 %v294_v43, %v272_v19  ;;  %v2457_v53 = vperm.slane %v294_v43, 0 }
  0x38   : > { %v296_v62 = vsub.f32 %v267_v47, %v295_v52  ;;  %v368_v63 = vmul.f32 %v2230_v39, %v2457_v53  ;;  %v369_v0 = vmul.f32 %v2231_v40, %v2457_v53  ;;  %v366_v1 = vmul.f32 %v2226_v41, %v2457_v53 }
  0x39   : > { %v367_v3 = vmul.f32 %v2227_v44, %v2457_v53  ;;  %v364_v4 = vmul.f32 %v2222_v45, %v2457_v53  ;;  %v365_v6 = vmul.f32 %v2223_v46, %v2457_v53  ;;  %v374_v7 = vmul.f32 %v2242_v48, %v2457_v53 }
  0x3a   : > { %v2472_v8 = vperm.slane %v296_v62, 0  ;;  %v375_v9 = vmul.f32 %v2243_v49, %v2457_v53  ;;  %v372_v10 = vmul.f32 %v2238_v50, %v2457_v53  ;;  %v373_v11 = vmul.f32 %v2239_v51, %v2457_v53 }
  0x3b   : > { %v2478_v12 = vmul.f32 %v2234_v54, %v2457_v53  ;;  %v2481_v13 = vmul.f32 %v2235_v55, %v2457_v53  ;;  %v2484_v15 = vmul.f32 %v2254_v58, %v2457_v53  ;;  %v2487_v16 = vmul.f32 %v2255_v59, %v2457_v53 }
  0x3c   : > { %v403_v17 = vadd.f32 %v2472_v8, %v368_v63  ;;  %v404_v18 = vadd.f32 %v2472_v8, %v369_v0  ;;  %v401_v19 = vadd.f32 %v2472_v8, %v366_v1  ;;  %v402_v21 = vadd.f32 %v2472_v8, %v367_v3 }
  0x3d   : > { %v399_v22 = vadd.f32 %v2472_v8, %v364_v4  ;;  %v400_v23 = vadd.f32 %v2472_v8, %v365_v6  ;;  %v409_v24 = vadd.f32 %v2472_v8, %v374_v7  ;;  %v410_v25 = vadd.f32 %v2472_v8, %v375_v9 }
  0x3e   : > { %vm435_vm9 = vcmp.gt.f32.partialorder %v403_v17, 0.0  ;;  %vm436_vm10 = vcmp.gt.f32.partialorder %v404_v18, 0.0  ;;  %v467_v26 = vmul.f32 0.01, %v403_v17  ;;  %v468_v27 = vmul.f32 0.01, %v404_v18 }
  0x3f   : > { %vm433_vm11 = vcmp.gt.f32.partialorder %v401_v19, 0.0  ;;  %vm434_vm12 = vcmp.gt.f32.partialorder %v402_v21, 0.0  ;;  %v465_v28 = vmul.f32 0.01, %v401_v19  ;;  %v466_v29 = vmul.f32 0.01, %v402_v21 }
  0x40   : > { %v499_v30 = vsel %vm435_vm9, %v403_v17, %v467_v26  ;;  %v500_v31 = vsel %vm436_vm10, %v404_v18, %v468_v27  ;;  %vm431_vm13 = vcmp.gt.f32.partialorder %v399_v22, 0.0  ;;  %vm432_vm14 = vcmp.gt.f32.partialorder %v400_v23, 0.0 }
  0x41   : > { %v531_v32 = vpack.c.bf16 %v499_v30, %v499_v30  ;;  %v532_v33 = vpack.c.bf16 %v500_v31, %v500_v31  ;;  %v497_v34 = vsel %vm433_vm11, %v401_v19, %v465_v28  ;;  %v498_v35 = vsel %vm434_vm12, %v402_v21, %v466_v29 }
  0x42   : > { %v529_v36 = vpack.c.bf16 %v497_v34, %v497_v34  ;;  %v530_v37 = vpack.c.bf16 %v498_v35, %v498_v35  ;;  %v463_v38 = vmul.f32 0.01, %v399_v22  ;;  %v464_v39 = vmul.f32 0.01, %v400_v23 }
  0x43   : > { %v595_v40 = vunpack.c.l.b16 %v531_v32  ;;  %v596_v41 = vunpack.c.l.b16 %v532_v33  ;;  %vm441_vm15 = vcmp.gt.f32.partialorder %v409_v24, 0.0  ;;  %vm442_vm0 = vcmp.gt.f32.partialorder %v410_v25, 0.0 }
  0x44   : > { %v593_v42 = vunpack.c.l.b16 %v529_v36  ;;  %v594_v43 = vunpack.c.l.b16 %v530_v37  ;;  %v495_v44 = vsel %vm431_vm13, %v399_v22, %v463_v38  ;;  %v496_v45 = vsel %vm432_vm14, %v400_v23, %v464_v39 }
  0x45   : > { %v625_v46 = vpack.c.b16 %v596_v41, %v595_v40  ;;  %v527_v47 = vpack.c.bf16 %v495_v44, %v495_v44  ;;  %v528_v48 = vpack.c.bf16 %v496_v45, %v496_v45  ;;  %v473_v49 = vmul.f32 0.01, %v409_v24 }
  0x46   : > { %v624_v50 = vpack.c.b16 %v594_v43, %v593_v42  ;;  %v474_v51 = vmul.f32 0.01, %v410_v25  ;;  %v407_v52 = vadd.f32 %v2472_v8, %v372_v10  ;;  %v408_v54 = vadd.f32 %v2472_v8, %v373_v11 }
  0x47   : > { %v661_v55 = vshrl.u32 %v625_v46, 16  ;;  %v664_v56 = vshll.u32 %v625_v46, 16  ;;  %v591_v58 = vunpack.c.l.b16 %v527_v47  ;;  %v592_v59 = vunpack.c.l.b16 %v528_v48 }
  0x48   : > { %v654_v62 = vshrl.u32 %v624_v50, 16  ;;  %v657_v63 = vshll.u32 %v624_v50, 16  ;;  %v505_v0 = vsel %vm441_vm15, %v409_v24, %v473_v49  ;;  %v506_v1 = vsel %vm442_vm0, %v410_v25, %v474_v51 }
  0x49   : > { %v663_v3 = vrot.slane %v661_v55, 7  ;;  %v623_v4 = vpack.c.b16 %v592_v59, %v591_v58  ;;  %v537_v6 = vpack.c.bf16 %v505_v0, %v505_v0  ;;  %v538_v7 = vpack.c.bf16 %v506_v1, %v506_v1 }
  0x4a   : > { %v656_v9 = vrot.slane %v654_v62, 7  ;;  %vm439_vm1 = vcmp.gt.f32.partialorder %v407_v52, 0.0  ;;  %vm440_vm3 = vcmp.gt.f32.partialorder %v408_v54, 0.0  ;;  %v471_v10 = vmul.f32 0.01, %v407_v52 }
  0x4b   : > { %v666_v17 = vor.u32 %v664_v56, %v663_v3  ;;  %v2505_v11 = vsel %vm2402_vm2, %v663_v3, 0  ;;  %v647_v18 = vshrl.u32 %v623_v4, 16  ;;  %v650_v19 = vshll.u32 %v623_v4, 16 }
  0x4c   : > { %v1097_v21 = vrot.slane %v2505_v11, 1  ;;  %v659_v22 = vor.u32 %v657_v63, %v656_v9  ;;  %v2510_v23 = vsel %vm2402_vm2, %v656_v9, 0  ;;  %v601_v24 = vunpack.c.l.b16 %v537_v6 }
  0x4d   : > { %v2514_v25 = vsel %vm2402_vm2, 0, %v666_v17  ;;  %v1094_v26 = vrot.slane %v2510_v23, 1  ;;  %v649_v27 = vrot.slane %v647_v18, 7  ;;  %v602_v28 = vunpack.c.l.b16 %v538_v7  ;;  %v2289_v7 = vld [vmem:[%s2443_s8 + $0x30] sm:$0xff]  }
  0x4e   : > { %v1096_v29 = vrot.slane %v2514_v25, 1  ;;  %v2520_v30 = vsel %vm2402_vm2, 0, %v659_v22  ;;  %v472_v31 = vmul.f32 0.01, %v408_v54  ;;  %v503_v32 = vsel %vm439_vm1, %v407_v52, %v471_v10 }
  0x4f   : > { %v1093_v33 = vrot.slane %v2520_v30, 1  ;;  %v652_v34 = vor.u32 %v650_v19, %v649_v27  ;;  %v2526_v35 = vsel %vm2402_vm2, %v649_v27, 0  ;;  %v628_v36 = vpack.c.b16 %v602_v28, %v601_v24 }
  0x50   : > { %v2529_v37 = vsel %vm1086_vm4, %v1096_v29, %v1097_v21  ;;  %v1091_v38 = vrot.slane %v2526_v35, 1  ;;  %v504_v39 = vsel %vm440_vm3, %v408_v54, %v472_v31  ;;  %v535_v40 = vpack.c.bf16 %v503_v32, %v503_v32 }
  0x51   : > { %1141 = vrot.lane.b32.xlu1 %v2529_v37, %s2351_s27  ;;  %v2536_v41 = vsel %vm1086_vm4, %v1093_v33, %v1094_v26  ;;  %v2540_v42 = vsel %vm2402_vm2, 0, %v652_v34  ;;  %v682_v43 = vshrl.u32 %v628_v36, 16  ;;  %v685_v44 = vshll.u32 %v628_v36, 16 }
  0x52   : > { %1139 = vrot.lane.b32.xlu0 %v2536_v41, %s2351_s27  ;;  %v1090_v45 = vrot.slane %v2540_v42, 1  ;;  %v536_v46 = vpack.c.bf16 %v504_v39, %v504_v39  ;;  %v599_v47 = vunpack.c.l.b16 %v535_v40  ;;  %v405_v48 = vadd.f32 %v2472_v8, %v2478_v12 }
  0x53   : > { %v684_v49 = vrot.slane %v682_v43, 7  ;;  %v406_v50 = vadd.f32 %v2472_v8, %v2481_v13  ;;  %v415_v51 = vadd.f32 %v2472_v8, %v2484_v15  ;;  %v416_v52 = vadd.f32 %v2472_v8, %v2487_v16  ;;  %v2294_v43 = vld [vmem:[%s2443_s8 + $0x58] sm:$0xff]  }
  0x54   : > { %v2554_v54 = vsel %vm1086_vm4, %v1090_v45, %v1091_v38  ;;  %v600_v55 = vunpack.c.l.b16 %v536_v46  ;;  %vm437_vm6 = vcmp.gt.f32.partialorder %v405_v48, 0.0  ;;  %v469_v56 = vmul.f32 0.01, %v405_v48 }
  0x55   : > { %1137 = vrot.lane.b32.xlu2 %v2554_v54, %s2351_s27  ;;  %v687_v12 = vor.u32 %v685_v44, %v684_v49  ;;  %v2560_v13 = vsel %vm2402_vm2, %v684_v49, 0  ;;  %vm438_vm7 = vcmp.gt.f32.partialorder %v406_v50, 0.0  ;;  %v470_v15 = vmul.f32 0.01, %v406_v50 }
  0x56   : > { %v1106_v58 = vrot.slane %v2560_v13, 1  ;;  %v627_v16 = vpack.c.b16 %v600_v55, %v599_v47  ;;  %v501_v59 = vsel %vm437_vm6, %v405_v48, %v469_v56  ;;  %vm447_vm8 = vcmp.gt.f32.partialorder %v415_v51, 0.0 }
  0x57   : > { %v2565_v62 = vsel %vm2402_vm2, 0, %v687_v12  ;;  %v502_v63 = vsel %vm438_vm7, %v406_v50, %v470_v15  ;;  %v533_v0 = vpack.c.bf16 %v501_v59, %v501_v59  ;;  %vm448_vm9 = vcmp.gt.f32.partialorder %v416_v52, 0.0 }
  0x58   : > { %v1105_v1 = vrot.slane %v2565_v62, 1  ;;  %v675_v3 = vshrl.u32 %v627_v16, 16  ;;  %v678_v4 = vshll.u32 %v627_v16, 16  ;;  %v534_v6 = vpack.c.bf16 %v502_v63, %v502_v63 }
  0x59   : > { %v597_v9 = vunpack.c.l.b16 %v533_v0  ;;  %v479_v10 = vmul.f32 0.01, %v415_v51  ;;  %v480_v17 = vmul.f32 0.01, %v416_v52  ;;  %v378_v18 = vmul.f32 %v2250_v60, %v2457_v53 }
  0x5a   : > { %v2573_v19 = vsel %vm1086_vm4, %v1105_v1, %v1106_v58  ;;  %v677_v21 = vrot.slane %v675_v3, 7  ;;  %v598_v22 = vunpack.c.l.b16 %v534_v6  ;;  %v379_v24 = vmul.f32 %v2251_v61, %v2457_v53 }
  0x5b   : > { %1147 = vrot.lane.b32.xlu1 %v2573_v19, %s2351_s27  ;;  %v511_v26 = vsel %vm447_vm8, %v415_v51, %v479_v10  ;;  %v512_v27 = vsel %vm448_vm9, %v416_v52, %v480_v17  ;;  %v413_v28 = vadd.f32 %v2472_v8, %v378_v18  ;;  %v2246_v60 = vunpack.c.l.bf16 %v2289_v7 }
  0x5c   : > { %v680_v29 = vor.u32 %v678_v4, %v677_v21  ;;  %v2585_v31 = vsel %vm2402_vm2, %v677_v21, 0  ;;  %v626_v32 = vpack.c.b16 %v598_v22, %v597_v9  ;;  %v543_v33 = vpack.c.bf16 %v511_v26, %v511_v26 }
  0x5d   : > { %v1103_v57 = vrot.slane %v2585_v31, 1  ;;  %v544_v61 = vpack.c.bf16 %v512_v27, %v512_v27  ;;  %v414_v34 = vadd.f32 %v2472_v8, %v379_v24  ;;  %vm445_vm10 = vcmp.gt.f32.partialorder %v413_v28, 0.0 }
  0x5e   : > { %v2591_v36 = vsel %vm2402_vm2, 0, %v680_v29  ;;  %v668_v38 = vshrl.u32 %v626_v32, 16  ;;  %v671_v39 = vshll.u32 %v626_v32, 16  ;;  %v607_v40 = vunpack.c.l.b16 %v543_v33 }
  0x5f   : > { %v1102_v44 = vrot.slane %v2591_v36, 1  ;;  %v608_v45 = vunpack.c.l.b16 %v544_v61  ;;  %vm446_vm11 = vcmp.gt.f32.partialorder %v414_v34, 0.0  ;;  %v477_v46 = vmul.f32 0.01, %v413_v28 }
  0x60   : > { %v670_v47 = vrot.slane %v668_v38, 7  ;;  %v478_v48 = vmul.f32 0.01, %v414_v34  ;;  %v2247_v49 = vunpack.c.h.bf16 %v2289_v7  ;;  %v376_v50 = vmul.f32 %v2246_v60, %v2457_v53 }
  0x61   : > { %v2597_v51 = vsel %vm1086_vm4, %v1102_v44, %v1103_v57  ;;  %v631_v52 = vpack.c.b16 %v608_v45, %v607_v40  ;;  %v509_v55 = vsel %vm445_vm10, %v413_v28, %v477_v46  ;;  %v2266_v56 = vunpack.c.l.bf16 %v2294_v43  ;;  %v2293_v57 = vld [vmem:[%s2443_s8 + $0x50] sm:$0xff]  }
  0x62   : > { %1145 = vrot.lane.b32.xlu0 %v2597_v51, %s2351_s27  ;;  %v673_v12 = vor.u32 %v671_v39, %v670_v47  ;;  %v2604_v15 = vsel %vm2402_vm2, %v670_v47, 0  ;;  %v510_v58 = vsel %vm446_vm11, %v414_v34, %v478_v48  ;;  %v541_v16 = vpack.c.bf16 %v509_v55, %v509_v55 }
  0x63   : > { %v1100_v59 = vrot.slane %v2604_v15, 1  ;;  %v703_v63 = vshrl.u32 %v631_v52, 16  ;;  %v706_v0 = vshll.u32 %v631_v52, 16  ;;  %v542_v1 = vpack.c.bf16 %v510_v58, %v510_v58 }
  0x64   : > { %v2609_v3 = vsel %vm2402_vm2, 0, %v673_v12  ;;  %v605_v4 = vunpack.c.l.b16 %v541_v16  ;;  %v377_v6 = vmul.f32 %v2247_v49, %v2457_v53  ;;  %v411_v7 = vadd.f32 %v2472_v8, %v376_v50 }
  0x65   : > { %v1099_v9 = vrot.slane %v2609_v3, 1  ;;  %v705_v10 = vrot.slane %v703_v63, 7  ;;  %v606_v17 = vunpack.c.l.b16 %v542_v1  ;;  %v2267_v18 = vunpack.c.h.bf16 %v2294_v43 }
  0x66   : > { %v412_v21 = vadd.f32 %v2472_v8, %v377_v6  ;;  %vm443_vm12 = vcmp.gt.f32.partialorder %v411_v7, 0.0  ;;  %v475_v22 = vmul.f32 0.01, %v411_v7  ;;  %v386_v24 = vmul.f32 %v2266_v56, %v2457_v53 }
  0x67   : > { %v2617_v26 = vsel %vm1086_vm4, %v1099_v9, %v1100_v59  ;;  %v708_v27 = vor.u32 %v706_v0, %v705_v10  ;;  %v2621_v28 = vsel %vm2402_vm2, %v705_v10, 0  ;;  %v630_v60 = vpack.c.b16 %v606_v17, %v605_v4  ;;  %v2292_v59 = vld [vmem:[%s2443_s8 + $0x48] sm:$0xff]  }
  0x68   : > { %1143 = vrot.lane.b32.xlu2 %v2617_v26, %s2351_s27  ;;  %v1115_v29 = vrot.slane %v2621_v28, 1  ;;  %vm444_vm13 = vcmp.gt.f32.partialorder %v412_v21, 0.0  ;;  %v476_v32 = vmul.f32 0.01, %v412_v21  ;;  %v507_v33 = vsel %vm443_vm12, %v411_v7, %v475_v22 }
  0x69   : > { %v2629_v61 = vsel %vm2402_vm2, 0, %v708_v27  ;;  %v696_v34 = vshrl.u32 %v630_v60, 16  ;;  %v699_v38 = vshll.u32 %v630_v60, 16  ;;  %v539_v39 = vpack.c.bf16 %v507_v33, %v507_v33 }
  0x6a   : > { %v1114_v40 = vrot.slane %v2629_v61, 1  ;;  %v508_v43 = vsel %vm444_vm13, %v412_v21, %v476_v32  ;;  %v387_v44 = vmul.f32 %v2267_v18, %v2457_v53  ;;  %v421_v45 = vadd.f32 %v2472_v8, %v386_v24 }
  0x6b   : > { %v698_v46 = vrot.slane %v696_v34, 7  ;;  %v540_v47 = vpack.c.bf16 %v508_v43, %v508_v43  ;;  %v603_v48 = vunpack.c.l.b16 %v539_v39  ;;  %v2262_v49 = vunpack.c.l.bf16 %v2293_v57 }
  0x6c   : > { %v2635_v50 = vsel %vm1086_vm4, %v1114_v40, %v1115_v29  ;;  %v422_v52 = vadd.f32 %v2472_v8, %v387_v44  ;;  %vm453_vm14 = vcmp.gt.f32.partialorder %v421_v45, 0.0  ;;  %v485_v55 = vmul.f32 0.01, %v421_v45 }
  0x6d   : > { %1153 = vrot.lane.b32.xlu1 %v2635_v50, %s2351_s27  ;;  %v701_v56 = vor.u32 %v699_v38, %v698_v46  ;;  %v2642_v12 = vsel %vm2402_vm2, %v698_v46, 0  ;;  %v604_v58 = vunpack.c.l.b16 %v540_v47  ;;  %v2263_v16 = vunpack.c.h.bf16 %v2293_v57 }
  0x6e   : > { %v1112_v63 = vrot.slane %v2642_v12, 1  ;;  %vm454_vm15 = vcmp.gt.f32.partialorder %v422_v52, 0.0  ;;  %v486_v0 = vmul.f32 0.01, %v422_v52  ;;  %v517_v1 = vsel %vm453_vm14, %v421_v45, %v485_v55 }
  0x6f   : > { %v2648_v4 = vsel %vm2402_vm2, 0, %v701_v56  ;;  %v629_v6 = vpack.c.b16 %v604_v58, %v603_v48  ;;  %v549_v7 = vpack.c.bf16 %v517_v1, %v517_v1  ;;  %v384_v9 = vmul.f32 %v2262_v49, %v2457_v53 }
  0x70   : > { %v1111_v10 = vrot.slane %v2648_v4, 1  ;;  %v518_v17 = vsel %vm454_vm15, %v422_v52, %v486_v0  ;;  %v385_v18 = vmul.f32 %v2263_v16, %v2457_v53  ;;  %v2258_v21 = vunpack.c.l.bf16 %v2292_v59 }
  0x71   : > { %v689_v22 = vshrl.u32 %v629_v6, 16  ;;  %v692_v24 = vshll.u32 %v629_v6, 16  ;;  %v550_v27 = vpack.c.bf16 %v518_v17, %v518_v17  ;;  %v613_v60 = vunpack.c.l.b16 %v549_v7 }
  0x72   : > { %v2654_v29 = vsel %vm1086_vm4, %v1111_v10, %v1112_v63  ;;  %v419_v32 = vadd.f32 %v2472_v8, %v384_v9  ;;  %v420_v33 = vadd.f32 %v2472_v8, %v385_v18  ;;  %v2259_v57 = vunpack.c.h.bf16 %v2292_v59 }
  0x73   : > { %1151 = vrot.lane.b32.xlu0 %v2654_v29, %s2351_s27  ;;  %v691_v34 = vrot.slane %v689_v22, 7  ;;  %v614_v38 = vunpack.c.l.b16 %v550_v27  ;;  %v382_v39 = vmul.f32 %v2258_v21, %v2457_v53  ;;  %v855_v40 = vshrl.u32 %v2520_v30, 16 }
  0x74   : > { %vm451_vm0 = vcmp.gt.f32.partialorder %v419_v32, 0.0  ;;  %vm452_vm1 = vcmp.gt.f32.partialorder %v420_v33, 0.0  ;;  %v483_v43 = vmul.f32 0.01, %v419_v32  ;;  %v484_v44 = vmul.f32 0.01, %v420_v33 }
  0x75   : > { %v694_v45 = vor.u32 %v692_v24, %v691_v34  ;;  %v2664_v46 = vsel %vm2402_vm2, %v691_v34, 0  ;;  %v634_v47 = vpack.c.b16 %v614_v38, %v613_v60  ;;  %v383_v48 = vmul.f32 %v2259_v57, %v2457_v53 }
  0x76   : > { %v1109_v49 = vrot.slane %v2664_v46, 1  ;;  %v515_v52 = vsel %vm451_vm0, %v419_v32, %v483_v43  ;;  %v516_v55 = vsel %vm452_vm1, %v420_v33, %v484_v44  ;;  %v417_v56 = vadd.f32 %v2472_v8, %v382_v39  ;;  %v2295_v39 = vld [vmem:[%s2443_s8 + $0x60] sm:$0xff]  }
  0x77   : > { %v2671_v58 = vsel %vm2402_vm2, 0, %v694_v45  ;;  %v724_v16 = vshrl.u32 %v634_v47, 16  ;;  %v727_v59 = vshll.u32 %v634_v47, 16  ;;  %v547_v63 = vpack.c.bf16 %v515_v52, %v515_v52 }
  0x78   : > { %v1108_v0 = vrot.slane %v2671_v58, 1  ;;  %v548_v1 = vpack.c.bf16 %v516_v55, %v516_v55  ;;  %v418_v6 = vadd.f32 %v2472_v8, %v383_v48  ;;  %vm449_vm3 = vcmp.gt.f32.partialorder %v417_v56, 0.0 }
  0x79   : > { %v726_v7 = vrot.slane %v724_v16, 7  ;;  %v611_v9 = vunpack.c.l.b16 %v547_v63  ;;  %v481_v10 = vmul.f32 0.01, %v417_v56  ;;  %v857_v17 = vshll.u32 %v2520_v30, 16 }
  0x7a   : > { %v2677_v18 = vsel %vm1086_vm4, %v1108_v0, %v1109_v49  ;;  %v612_v21 = vunpack.c.l.b16 %v548_v1  ;;  %vm450_vm6 = vcmp.gt.f32.partialorder %v418_v6, 0.0  ;;  %v482_v22 = vmul.f32 0.01, %v418_v6 }
  0x7b   : > { %1149 = vrot.lane.b32.xlu2 %v2677_v18, %s2351_s27  ;;  %v729_v24 = vor.u32 %v727_v59, %v726_v7  ;;  %v2683_v27 = vsel %vm2402_vm2, %v726_v7, 0  ;;  %v513_v60 = vsel %vm449_vm3, %v417_v56, %v481_v10  ;;  %v859_v32 = vrot.slane %v857_v17, 1 }
  0x7c   : > { %v1124_v33 = vrot.slane %v2683_v27, 1  ;;  %v633_v57 = vpack.c.b16 %v612_v21, %v611_v9  ;;  %v514_v34 = vsel %vm450_vm6, %v418_v6, %v482_v22  ;;  %v545_v38 = vpack.c.bf16 %v513_v60, %v513_v60 }
  0x7d   : > { %v2689_v43 = vsel %vm2402_vm2, 0, %v729_v24  ;;  %v546_v44 = vpack.c.bf16 %v514_v34, %v514_v34  ;;  %v862_v45 = vshll.u32 %v2510_v23, 16  ;;  %v860_v56 = vor.u32 %v859_v32, %v855_v40 }
  0x7e   : > { %v1123_v47 = vrot.slane %v2689_v43, 1  ;;  %v717_v48 = vshrl.u32 %v633_v57, 16  ;;  %v720_v49 = vshll.u32 %v633_v57, 16  ;;  %v609_v52 = vunpack.c.l.b16 %v545_v38 }
  0x7f   : > { %v610_v55 = vunpack.c.l.b16 %v546_v44  ;;  %v2270_v16 = vunpack.c.l.bf16 %v2295_v39  ;;  %v2271_v59 = vunpack.c.h.bf16 %v2295_v39  ;;  %v864_v1 = vrot.slane %v862_v45, 1 }
  0x80   : > { %v2694_v63 = vsel %vm1086_vm4, %v1123_v47, %v1124_v33  ;;  %v719_v0 = vrot.slane %v717_v48, 7  ;;  %v845_v6 = vshll.u32 %v2540_v42, 16  ;;  %v843_v17 = vshrl.u32 %v2540_v42, 16 }
  0x81   : > { %3612 = vst [vmem:[#allocation4_spill] sm:$0xff] %v2694_v63  ;;  %1159 = vrot.lane.b32.xlu1 %v2694_v63, %s2351_s27  ;;  %v632_v23 = vpack.c.b16 %v610_v55, %v609_v52  ;;  %v388_v7 = vmul.f32 %v2270_v16, %v2457_v53  ;;  %v389_v9 = vmul.f32 %v2271_v59, %v2457_v53  ;;  %v850_v38 = vshll.u32 %v2526_v35, 16 }
  0x82   : > { %v722_v10 = vor.u32 %v720_v49, %v719_v0  ;;  %v2703_v40 = vsel %vm2402_vm2, %v719_v0, 0  ;;  %v847_v21 = vrot.slane %v845_v6, 1  ;;  %v2713_v57 = vsel %vm829_vm5, %v860_v56, %v864_v1 }
  0x83   : > { %v1121_v22 = vrot.slane %v2703_v40, 1  ;;  %v710_v24 = vshrl.u32 %v632_v23, 16  ;;  %v713_v60 = vshll.u32 %v632_v23, 16  ;;  %v423_v32 = vadd.f32 %v2472_v8, %v388_v7 }
  0x84   : > { %v2710_v33 = vsel %vm2402_vm2, 0, %v722_v10  ;;  %v424_v34 = vadd.f32 %v2472_v8, %v389_v9  ;;  %v848_v48 = vor.u32 %v847_v21, %v843_v17  ;;  %v867_v49 = vshrl.u32 %v2514_v25, 16 }
  0x85   : > { %v1120_v39 = vrot.slane %v2710_v33, 1  ;;  %v712_v44 = vrot.slane %v710_v24, 7  ;;  %vm455_vm7 = vcmp.gt.f32.partialorder %v423_v32, 0.0  ;;  %v487_v45 = vmul.f32 0.01, %v423_v32 }
  0x86   : > { %vm456_vm8 = vcmp.gt.f32.partialorder %v424_v34, 0.0  ;;  %v488_v47 = vmul.f32 0.01, %v424_v34  ;;  %v869_v1 = vshll.u32 %v2514_v25, 16  ;;  %v852_v7 = vrot.slane %v850_v38, 1 }
  0x87   : > { %v2720_v52 = vsel %vm1086_vm4, %v1120_v39, %v1121_v22  ;;  %v715_v55 = vor.u32 %v713_v60, %v712_v44  ;;  %v2724_v56 = vsel %vm2402_vm2, %v712_v44, 0  ;;  %v519_v16 = vsel %vm455_vm7, %v423_v32, %v487_v45 }
  0x88   : > { %1157 = vrot.lane.b32.xlu0 %v2720_v52, %s2351_s27  ;;  %v1118_v35 = vrot.slane %v2724_v56, 1  ;;  %v520_v59 = vsel %vm456_vm8, %v424_v34, %v488_v47  ;;  %v551_v0 = vpack.c.bf16 %v519_v16, %v519_v16  ;;  %v874_v9 = vshll.u32 %v2505_v11, 16 }
  0x89   : > { %v2732_v6 = vsel %vm2402_vm2, 0, %v715_v55  ;;  %1026 = vrot.lane.b32.xlu1 %v2713_v57, %s2352_s28  ;;  %v552_v23 = vpack.c.bf16 %v520_v59, %v520_v59  ;;  %v871_v21 = vrot.slane %v869_v1, 1  ;;  %v903_v34 = vshrl.u32 %v2565_v62, 16 }
  0x8a   : > { %v1117_v10 = vrot.slane %v2732_v6, 1  ;;  %v615_v17 = vunpack.c.l.b16 %v551_v0  ;;  %v876_v24 = vrot.slane %v874_v9, 1  ;;  %v905_v39 = vshll.u32 %v2565_v62, 16 }
  0x8b   : > { %v616_v22 = vunpack.c.l.b16 %v552_v23  ;;  %v872_v32 = vor.u32 %v871_v21, %v867_v49  ;;  %v2746_v11 = vsel %vm829_vm5, %v848_v48, %v852_v7  ;;  %v910_v44 = vshll.u32 %v2560_v13, 16 }
  0x8c   : > { %v2739_v60 = vsel %vm1086_vm4, %v1117_v10, %v1118_v35  ;;  %v907_v47 = vrot.slane %v905_v39, 1  ;;  %v915_v55 = vshrl.u32 %v2671_v58, 16  ;;  %v917_v49 = vshll.u32 %v2671_v58, 16 }
  0x8d   : > { %1155 = vrot.lane.b32.xlu2 %v2739_v60, %s2351_s27  ;;  %v635_v38 = vpack.c.b16 %v616_v22, %v615_v17  ;;  %v2750_v45 = vsel %vm829_vm5, %v872_v32, %v876_v24  ;;  %v881_v59 = vshll.u32 %v2609_v3, 16  ;;  %v922_v0 = vshll.u32 %v2664_v46, 16 }
  0x8e   : > { %v908_v48 = vor.u32 %v907_v47, %v903_v34  ;;  %v912_v1 = vrot.slane %v910_v44, 1  ;;  %v919_v13 = vrot.slane %v917_v49, 1  ;;  %v879_v7 = vshrl.u32 %v2609_v3, 16 }
  0x8f   : > { %v731_v16 = vshrl.u32 %v635_v38, 16  ;;  %v734_v35 = vshll.u32 %v635_v38, 16  ;;  %v886_v9 = vshll.u32 %v2604_v15, 16  ;;  %v924_v17 = vrot.slane %v922_v0, 1 }
  0x90   : > { %1024 = vrot.lane.b32.xlu0 %v2746_v11, %s2352_s28  ;;  %v920_v10 = vor.u32 %v919_v13, %v915_v55  ;;  %v941_v21 = vshll.u32 %v2629_v61, 16  ;;  %v883_v24 = vrot.slane %v881_v59, 1  ;;  %v893_v32 = vshll.u32 %v2591_v36, 16 }
  0x91   : > { %v733_v23 = vrot.slane %v731_v16, 7  ;;  %1028 = vrot.lane.b32.xlu1 %v2750_v45, %s2352_s28  ;;  %v2767_v39 = vsel %vm829_vm5, %v908_v48, %v912_v1  ;;  %v939_v38 = vshrl.u32 %v2629_v61, 16  ;;  %v946_v47 = vshll.u32 %v2621_v28, 16 }
  0x92   : > { %v943_v44 = vrot.slane %v941_v21, 1  ;;  %v951_v55 = vshrl.u32 %v2732_v6, 16  ;;  %v953_v49 = vshll.u32 %v2732_v6, 16  ;;  %v958_v59 = vshll.u32 %v2724_v56, 16 }
  0x93   : > { %v736_v22 = vor.u32 %v734_v35, %v733_v23  ;;  %v825_v46 = vsel %vm2402_vm2, %v733_v23, 0  ;;  %v2779_v35 = vsel %vm829_vm5, %v920_v10, %v924_v17  ;;  %v884_v0 = vor.u32 %v883_v24, %v879_v7 }
  0x94   : > { %v1127_v34 = vrot.slane %v825_v46, 1  ;;  %v888_v48 = vrot.slane %v886_v9, 1  ;;  %v891_v1 = vshrl.u32 %v2591_v36, 16  ;;  %v955_v13 = vrot.slane %v953_v49, 1  ;;  %v2296_v49 = vld [vmem:[%s2443_s8 + $0x68] sm:$0xff]  }
  0x95   : > { %v2772_v15 = vsel %vm2402_vm2, 0, %v736_v22  ;;  %v895_v28 = vrot.slane %v893_v32, 1  ;;  %v898_v21 = vshll.u32 %v2585_v31, 16  ;;  %v944_v10 = vor.u32 %v943_v44, %v939_v38  ;;  %v2297_v31 = vld [vmem:[%s2443_s8 + $0x70] sm:$0xff]  }
  0x96   : > { %v1126_v16 = vrot.slane %v2772_v15, 1  ;;  %v948_v56 = vrot.slane %v946_v47, 1  ;;  %v956_v7 = vor.u32 %v955_v13, %v951_v55  ;;  %v960_v9 = vrot.slane %v958_v59, 1 }
  0x97   : > { %v977_v17 = vshll.u32 %v2689_v43, 16  ;;  %v989_v22 = vshll.u32 %v2772_v15, 16  ;;  %v975_v24 = vshrl.u32 %v2689_v43, 16  ;;  %v896_v38 = vor.u32 %v895_v28, %v891_v1 }
  0x98   : > { %v2784_v23 = vsel %vm1086_vm4, %v1126_v16, %v1127_v34  ;;  %1034 = vrot.lane.b32.xlu0 %v2767_v39, %s2352_s28  ;;  %v982_v34 = vshll.u32 %v2683_v27, 16  ;;  %v900_v44 = vrot.slane %v898_v21, 1  ;;  %v2800_v16 = vsel %vm829_vm5, %v884_v0, %v888_v48 }
  0x99   : > { %1161 = vrot.lane.b32.xlu2 %v2784_v23, %s2351_s27  ;;  %1036 = vrot.lane.b32.xlu1 %v2779_v35, %s2352_s28  ;;  %v979_v32 = vrot.slane %v977_v17, 1  ;;  %v2803_v47 = vsel %vm829_vm5, %v944_v10, %v948_v56  ;;  %v2806_v55 = vsel %vm829_vm5, %v956_v7, %v960_v9  ;;  %v987_v59 = vshrl.u32 %v2772_v15, 16 }
  0x9a   : > { %v991_v13 = vrot.slane %v989_v22, 1  ;;  %v994_v20 = vshll.u32 %v825_v46, 16  ;;  %v2278_v17 = vunpack.c.l.bf16 %v2297_v31  ;;  %v2279_v14 = vunpack.c.h.bf16 %v2297_v31 }
  0x9b   : > { %v980_v27 = vor.u32 %v979_v32, %v975_v24  ;;  %v984_v63 = vrot.slane %v982_v34, 1  ;;  %v2274_v1 = vunpack.c.l.bf16 %v2296_v49  ;;  %v2275_v28 = vunpack.c.h.bf16 %v2296_v49 }
  0x9c   : > { %v2810_v21 = vsel %vm829_vm5, %v896_v38, %v900_v44  ;;  %v392_v0 = vmul.f32 %v2278_v17, %v2457_v53  ;;  %v393_v48 = vmul.f32 %v2279_v14, %v2457_v53  ;;  %v927_v46 = vshrl.u32 %v2648_v4, 16 }
  0x9d   : > { %v929_v10 = vshll.u32 %v2648_v4, 16  ;;  %v390_v56 = vmul.f32 %v2274_v1, %v2457_v53  ;;  %v391_v7 = vmul.f32 %v2275_v28, %v2457_v53  ;;  %v992_v9 = vor.u32 %v991_v13, %v987_v59 }
  0x9e   : > { %v996_v22 = vrot.slane %v994_v20, 1  ;;  %v427_v24 = vadd.f32 %v2472_v8, %v392_v0  ;;  %v428_v14 = vadd.f32 %v2472_v8, %v393_v48  ;;  %v934_v32 = vshll.u32 %v2642_v12, 16 }
  0x9f   : > { %v2828_v34 = vsel %vm829_vm5, %v980_v27, %v984_v63  ;;  %v425_v31 = vadd.f32 %v2472_v8, %v390_v56  ;;  %v426_v38 = vadd.f32 %v2472_v8, %v391_v7  ;;  %v931_v13 = vrot.slane %v929_v10, 1 }
  0xa0   : > { %1040 = vrot.lane.b32.xlu0 %v2803_v47, %s2352_s28  ;;  %3613 = vst [vmem:[#allocation5_spill] sm:$0xff] %v2828_v34  ;;  %vm459_vm9 = vcmp.gt.f32.partialorder %v427_v24, 0.0  ;;  %vm460_vm10 = vcmp.gt.f32.partialorder %v428_v14, 0.0  ;;  %v491_v44 = vmul.f32 0.01, %v427_v24  ;;  %v2833_v17 = vsel %vm829_vm5, %v992_v9, %v996_v22 }
  0xa1   : > { %1030 = vrot.lane.b32.xlu2 %v2800_v16, %s2352_s28  ;;  %1042 = vrot.lane.b32.xlu1 %v2806_v55, %s2352_s28  ;;  %v492_v49 = vmul.f32 0.01, %v428_v14  ;;  %vm457_vm11 = vcmp.gt.f32.partialorder %v425_v31, 0.0  ;;  %vm458_vm12 = vcmp.gt.f32.partialorder %v426_v38, 0.0  ;;  %v489_v20 = vmul.f32 0.01, %v425_v31 }
  0xa2   : > { %v490_v59 = vmul.f32 0.01, %v426_v38  ;;  %v523_v12 = vsel %vm459_vm9, %v427_v24, %v491_v44  ;;  %v965_v10 = vshll.u32 %v2710_v33, 16  ;;  %v932_v22 = vor.u32 %v931_v13, %v927_v46 }
  0xa3   : > { %v524_v1 = vsel %vm460_vm10, %v428_v14, %v492_v49  ;;  %v555_v63 = vpack.c.bf16 %v523_v12, %v523_v12  ;;  %v521_v28 = vsel %vm457_vm11, %v425_v31, %v489_v20  ;;  %v936_v24 = vrot.slane %v934_v32, 1 }
  0xa4   : > { %v556_v27 = vpack.c.bf16 %v524_v1, %v524_v1  ;;  %v522_v0 = vsel %vm458_vm12, %v426_v38, %v490_v59  ;;  %v553_v48 = vpack.c.bf16 %v521_v28, %v521_v28  ;;  %v963_v44 = vshrl.u32 %v2710_v33, 16 }
  0xa5   : > { %v554_v56 = vpack.c.bf16 %v522_v0, %v522_v0  ;;  %v619_v7 = vunpack.c.l.b16 %v555_v63  ;;  %v967_v20 = vrot.slane %v965_v10, 1  ;;  %v970_v59 = vshll.u32 %v2703_v40, 16 }
  0xa6   : > { %v620_v9 = vunpack.c.l.b16 %v556_v27  ;;  %v617_v14 = vunpack.c.l.b16 %v553_v48  ;;  %v2845_v28 = vsel %vm829_vm5, %v932_v22, %v936_v24  ;;  %vm1376_vm13 = vcmask 64512  }
  0xa7   : > { %v618_v31 = vunpack.c.l.b16 %v554_v56  ;;  %v968_v46 = vor.u32 %v967_v20, %v963_v44  ;;  %v972_v32 = vrot.slane %v970_v59, 1  ;;  %vm1409_vm14 = vcmask 130048  }
  0xa8   : > { %1046 = vrot.lane.b32.xlu0 %v2828_v34, %s2352_s28  ;;  %v637_v38 = vpack.c.b16 %v620_v9, %v619_v7  ;;  %vm1442_vm15 = vcmask 195584   ;;  %vm1475_vm0 = vcmask 261120   ;;  %vm1508_vm1 = vcmask 326656  }
  0xa9   : > { %1032 = vrot.lane.b32.xlu2 %v2810_v21, %s2352_s28  ;;  %1048 = vrot.lane.b32.xlu1 %v2833_v17, %s2352_s28  ;;  %v636_v49 = vpack.c.b16 %v618_v31, %v617_v14  ;;  %v2869_v14 = vsel %vm829_vm5, %v968_v46, %v972_v32  ;;  %vm1541_vm3 = vcmask 392192   ;;  %vm1574_vm6 = vcmask 457728  }
  0xaa   : > { %v745_v12 = vshrl.u32 %v637_v38, 16  ;;  %v748_v1 = vshll.u32 %v637_v38, 16  ;;  %vm1607_vm7 = vcmask 523264   ;;  %vm1640_vm8 = vcmask 588800  }
  0xab   : > { %v738_v0 = vshrl.u32 %v636_v49, 16  ;;  %v741_v34 = vshll.u32 %v636_v49, 16 }
  0xac   : > { %v747_v63 = vrot.slane %v745_v12, 7 }
  0xad   : > { %v740_v27 = vrot.slane %v738_v0, 7 }
  0xae   : > { %v750_v13 = vor.u32 %v748_v1, %v747_v63  ;;  %v2851_v48 = vsel %vm2402_vm2, %v747_v63, 0 }
  0xaf   : > { %v1018_v40 = vshll.u32 %v2851_v48, 16  ;;  %v743_v56 = vor.u32 %v741_v34, %v740_v27  ;;  %v826_v7 = vsel %vm2402_vm2, %v740_v27, 0 }
  0xb0   : > { %v2858_v10 = vsel %vm2402_vm2, 0, %v750_v13  ;;  %v1006_v49 = vshll.u32 %v826_v7, 16  ;;  %v1130_v27 = vrot.slane %v826_v7, 1  ;;  %v1023_v13 = vpop.permute.xlu0 %1022 }
  0xb1   : > { %1038 = vrot.lane.b32.xlu2 %v2845_v28, %s2352_s28  ;;  %1168 = vrot.lane.b32.xlu1 %v2540_v42, %s2353_s13  ;;  %v1011_v9 = vshrl.u32 %v2858_v10, 16  ;;  %v1013_v22 = vshll.u32 %v2858_v10, 16  ;;  %v2866_v24 = vsel %vm2402_vm2, 0, %v743_v56  ;;  %v1020_v38 = vrot.slane %v1018_v40, 1  ;;  %v1136_v40 = vpop.permute.xlu1 %1135 }
  0xb2   : > { %v1001_v34 = vshll.u32 %v2866_v24, 16  ;;  %v999_v44 = vshrl.u32 %v2866_v24, 16  ;;  %v1008_v0 = vrot.slane %v1006_v49, 1  ;;  %v1129_v63 = vrot.slane %v2866_v24, 1 }
  0xb3   : > { %v1015_v31 = vrot.slane %v1013_v22, 1  ;;  %v1378_v56 = vsel %vm1376_vm13, %v2414_v5, %v1023_v13 }
  0xb4   : > { %v1003_v20 = vrot.slane %v1001_v34, 1  ;;  %v2887_v32 = vsel %vm1086_vm4, %v1129_v63, %v1130_v27  ;;  %v2898_v7 = vsel %vm1409_vm14, %v1378_v56, %v1136_v40 }
  0xb5   : > { %v1016_v59 = vor.u32 %v1015_v31, %v1011_v9  ;;  %v2906_v9 = vpop.permute.xlu2 %1137 }
  0xb6   : > { %v1004_v1 = vor.u32 %v1003_v20, %v999_v44 }
  0xb7   : > { %v2878_v12 = vsel %vm829_vm5, %v1016_v59, %v1020_v38 }
  0xb8   : > { %1052 = vrot.lane.b32.xlu0 %v2878_v12, %s2352_s28  ;;  %v2884_v46 = vsel %vm829_vm5, %v1004_v1, %v1008_v0 }
  0xb9   : > { %1044 = vrot.lane.b32.xlu2 %v2869_v14, %s2352_s28  ;;  %1280 = vrot.lane.b32.xlu1 %v2520_v30, %s2354_s14 }
  0xc0   : > { %1163 = vrot.lane.b32.xlu0 %v2887_v32, %s2351_s27 }
  0xc1   : > { %1050 = vrot.lane.b32.xlu2 %v2884_v46, %s2352_s28  ;;  %1170 = vrot.lane.b32.xlu1 %v2520_v30, %s2353_s13 }
  0xc3   : > { %v1142_v22 = vpop.permute.xlu1 %1141 }
  0xc8   : > { %1248 = vrot.lane.b32.xlu0 %v2554_v54, %s2356_s16  ;;  %v1140_v54 = vpop.permute.xlu0 %1139 }
  0xc9   : > { %1212 = vrot.lane.b32.xlu2 %v2746_v11, %s2355_s15  ;;  %1220 = vrot.lane.b32.xlu1 %v2810_v21, %s2355_s15  ;;  %v1144_v11 = vpop.permute.xlu2 %1143 }
  0xcd   : > { %v1148_v31 = vpop.permute.xlu1 %1147 }
  0xd0   : > { %1344 = vrot.lane.b32.xlu0 %v2536_v41, %s2358_s18 }
  0xd1   : > { %1312 = vrot.lane.b32.xlu2 %v2713_v57, %s2357_s17  ;;  %1282 = vrot.lane.b32.xlu1 %v2514_v25, %s2354_s14 }
  0xd4   : > { %v1146_v38 = vpop.permute.xlu0 %1145 }
  0xd5   : > { %v1150_v34 = vpop.permute.xlu2 %1149 }
  0xd8   : > { %1214 = vrot.lane.b32.xlu0 %v2713_v57, %s2355_s15 }
  0xd9   : > { %1176 = vrot.lane.b32.xlu2 %v2591_v36, %s2353_s13  ;;  %1320 = vrot.lane.b32.xlu1 %v2767_v39, %s2357_s17 }
  0xdf   : > { %v2932_v57 = vpop.permute.xlu1 %1153 }
  0xe0   : > { %1256 = vrot.lane.b32.xlu0 %v2597_v51, %s2356_s16 }
  0xe1   : > { %1250 = vrot.lane.b32.xlu2 %v2536_v41, %s2356_s16  ;;  %1184 = vrot.lane.b32.xlu1 %v2629_v61, %s2353_s13 }
  0xe5   : > { %v1152_v41 = vpop.permute.xlu0 %1151 }
  0xe7   : > { %v2928_v44 = vpop.permute.xlu2 %1155 }
  0xe8   : > { %1314 = vrot.lane.b32.xlu0 %v2750_v45, %s2357_s17 }
  0xe9   : > { %1288 = vrot.lane.b32.xlu2 %v2565_v62, %s2354_s14  ;;  %1296 = vrot.lane.b32.xlu1 %v2732_v6, %s2354_s14 }
  0xf0   : > { %1352 = vrot.lane.b32.xlu0 %v2573_v19, %s2358_s18 }
  0xf1   : > { %1346 = vrot.lane.b32.xlu2 %v2529_v37, %s2358_s18  ;;  %1172 = vrot.lane.b32.xlu1 %v2514_v25, %s2353_s13 }
  0xf3   : > { %v2942_v49 = vpop.permute.xlu2 %1161  ;;  %v2944_v20 = vpop.permute.xlu1 %1159 }
  0xf8   : > { %1264 = vrot.lane.b32.xlu0 %v2635_v50, %s2356_s16 }
  0xf9   : > { %1228 = vrot.lane.b32.xlu2 %v2803_v47, %s2355_s15  ;;  %1222 = vrot.lane.b32.xlu1 %v2767_v39, %s2355_s15 }
  0xfa   : > { %v1158_v59 = vpop.permute.xlu0 %1157 }
  0xfb   : > { %v1031_v1 = vpop.permute.xlu2 %1030  ;;  %v1027_v0 = vpop.permute.xlu1 %1026 }
  0xfc   : > { %v1386_v63 = vsel %vm1376_vm13, %v2609_v3, %v1031_v1  ;;  %v1382_v27 = vsel %vm1376_vm13, %v2520_v30, %v1027_v0  ;;  %v2219_v30 = vld [vmem:[%s3599_s4 + $0x38] sm:$0xff] }
  0xfd   : > { %v2957_v13 = vsel %vm1409_vm14, %v1386_v63, %v1144_v11  ;;  %v2960_v40 = vsel %vm1409_vm14, %v1382_v27, %v1140_v54  ;;  %1737 = vmatpush.bf16.msra.mxu0 %v2219_v30  ;;  %2299 = vmatpush.bf16.msra.mxu1 %v2219_v30 }
  0xfe   : > { %2300 = vmatpush.bf16.msra.mxu2 %v2219_v30  ;;  %2301 = vmatpush.bf16.msra.mxu3 %v2219_v30 }
 0x100   : > { %1360 = vrot.lane.b32.xlu0 %v2739_v60, %s2358_s18 }
 0x101   : > { %1328 = vrot.lane.b32.xlu2 %v2806_v55, %s2357_s17  ;;  %1284 = vrot.lane.b32.xlu1 %v2609_v3, %s2354_s14 }
 0x102   : > { %v2966_v39 = vpop.permute.xlu0 %1024 }
 0x103   : > { %v1033_v56 = vpop.permute.xlu2 %1032  ;;  %v1029_v1 = vpop.permute.xlu1 %1028 }
 0x104   : > { %v1388_v11 = vsel %vm1376_vm13, %v2591_v36, %v1033_v56  ;;  %v1384_v54 = vsel %vm1376_vm13, %v2514_v25, %v1029_v1  ;;  %v2218_v25 = vld [vmem:[%s3599_s4 + $0x30] sm:$0xff] }
 0x105   : > { %v2978_v0 = vsel %vm1409_vm14, %v1388_v11, %v1146_v38  ;;  %v2981_v63 = vsel %vm1409_vm14, %v1384_v54, %v1142_v22  ;;  %1738 = vmatpush.bf16.msra.mxu0 %v2218_v25  ;;  %2302 = vmatpush.bf16.msra.mxu1 %v2218_v25 }
 0x106   : > { %2303 = vmatpush.bf16.msra.mxu2 %v2218_v25  ;;  %2304 = vmatpush.bf16.msra.mxu3 %v2218_v25 }
 0x108   : > { %1216 = vrot.lane.b32.xlu0 %v2750_v45, %s2355_s15 }
 0x109   : > { %1178 = vrot.lane.b32.xlu2 %v2565_v62, %s2353_s13  ;;  %1322 = vrot.lane.b32.xlu1 %v2779_v35, %s2357_s17 }
 0x10a   : > { %v1035_v27 = vpop.permute.xlu0 %1034 }
 0x10b   : > { %v1039_v38 = vpop.permute.xlu2 %1038  ;;  %v1390_v22 = vsel %vm1376_vm13, %v2565_v62, %v1035_v27  ;;  %v1037_v56 = vpop.permute.xlu1 %1036  ;;  %v2217_v62 = vld [vmem:[%s3599_s4 + $0x28] sm:$0xff] }
 0x10c   : > { %v1394_v1 = vsel %vm1376_vm13, %v2648_v4, %v1039_v38  ;;  %v1392_v30 = vsel %vm1376_vm13, %v2671_v58, %v1037_v56  ;;  %v2999_v11 = vsel %vm1409_vm14, %v1390_v22, %v1148_v31  ;;  %1739 = vmatpush.bf16.msra.mxu0 %v2217_v62  ;;  %2305 = vmatpush.bf16.msra.mxu1 %v2217_v62 }
 0x10d   : > { %v3002_v54 = vsel %vm1409_vm14, %v1394_v1, %v1152_v41  ;;  %v3005_v45 = vsel %vm1409_vm14, %v1392_v30, %v1150_v34  ;;  %v2216_v41 = vld [vmem:[%s3599_s4 + $0x20] sm:$0xff]  ;;  %2306 = vmatpush.bf16.msra.mxu2 %v2217_v62  ;;  %2307 = vmatpush.bf16.msra.mxu3 %v2217_v62  ;;  %v2215_v1 = vld [vmem:[%s3599_s4 + $0x18] sm:$0xff] }
 0x110   : > { %1258 = vrot.lane.b32.xlu0 %v2573_v19, %s2356_s16  ;;  %1740 = vmatpush.bf16.msra.mxu0 %v2216_v41 }
 0x111   : > { %1252 = vrot.lane.b32.xlu2 %v2529_v37, %s2356_s16  ;;  %1186 = vrot.lane.b32.xlu1 %v2732_v6, %s2353_s13 }
 0x112   : > { %v1041_v31 = vpop.permute.xlu0 %1040  ;;  %2308 = vmatpush.bf16.msra.mxu1 %v2216_v41  ;;  %2309 = vmatpush.bf16.msra.mxu2 %v2216_v41 }
 0x113   : > { %v1045_v34 = vpop.permute.xlu2 %1044  ;;  %v1396_v27 = vsel %vm1376_vm13, %v2629_v61, %v1041_v31  ;;  %v1043_v25 = vpop.permute.xlu1 %1042  ;;  %2310 = vmatpush.bf16.msra.mxu3 %v2216_v41 }
 0x114   : > { %v1400_v37 = vsel %vm1376_vm13, %v2710_v33, %v1045_v34  ;;  %v1398_v38 = vsel %vm1376_vm13, %v2732_v6, %v1043_v25  ;;  %v3027_v22 = vsel %vm1409_vm14, %v1396_v27, %v2932_v57  ;;  %1741 = vmatpush.bf16.msra.mxu0 %v2215_v1  ;;  %v2213_v34 = vld [vmem:[%s3599_s4 + $0x8] sm:$0xff] }
 0x115   : > { %v3031_v19 = vsel %vm1409_vm14, %v1398_v38, %v2928_v44  ;;  %v3034_v56 = vsel %vm1409_vm14, %v1400_v37, %v1158_v59  ;;  %v2214_v44 = vld [vmem:[%s3599_s4 + $0x10] sm:$0xff] }
 0x116   : > { %2311 = vmatpush.bf16.msra.mxu1 %v2215_v1  ;;  %2312 = vmatpush.bf16.msra.mxu2 %v2215_v1 }
 0x117   : > { %2313 = vmatpush.bf16.msra.mxu3 %v2215_v1 }
 0x118   : > { %1316 = vrot.lane.b32.xlu0 %v2800_v16, %s2357_s17  ;;  %1742 = vmatpush.bf16.msra.mxu0 %v2214_v44 }
 0x119   : > { %1290 = vrot.lane.b32.xlu2 %v2671_v58, %s2354_s14  ;;  %1236 = vrot.lane.b32.xlu1 %v2833_v17, %s2355_s15 }
 0x11a   : > { %v1047_v6 = vpop.permute.xlu0 %1046  ;;  %2314 = vmatpush.bf16.msra.mxu1 %v2214_v44  ;;  %2315 = vmatpush.bf16.msra.mxu2 %v2214_v44 }
 0x11b   : > { %v1051_v57 = vpop.permute.xlu2 %1050  ;;  %v1402_v59 = vsel %vm1376_vm13, %v2689_v43, %v1047_v6  ;;  %v1049_v30 = vpop.permute.xlu1 %1048  ;;  %2316 = vmatpush.bf16.msra.mxu3 %v2214_v44 }
 0x11c   : > { %v1404_v62 = vsel %vm1376_vm13, %v2772_v15, %v1049_v30  ;;  %v3054_v31 = vsel %vm1409_vm14, %v1402_v59, %v2944_v20  ;;  %1743 = vmatpush.bf16.msra.mxu0 %v2213_v34  ;;  %v2212_v20 = vld [vmem:[%s3599_s4] sm:$0xff]  ;;  %v1406_v1 = vsel %vm1376_vm13, %v2866_v24, %v1051_v57 }
 0x11d   : > { %v3058_v41 = vsel %vm1409_vm14, %v1404_v62, %v2942_v49 }
 0x11e   : > { %2317 = vmatpush.bf16.msra.mxu1 %v2213_v34  ;;  %2318 = vmatpush.bf16.msra.mxu2 %v2213_v34 }
 0x11f   : > { %2319 = vmatpush.bf16.msra.mxu3 %v2213_v34 }
 0x120   : > { %1354 = vrot.lane.b32.xlu0 %v2677_v18, %s2358_s18  ;;  %1744 = vmatpush.bf16.msra.mxu0 %v2212_v20 }
 0x121   : > { %1348 = vrot.lane.b32.xlu2 %v2617_v26, %s2358_s18  ;;  %1298 = vrot.lane.b32.xlu1 %v2710_v33, %s2354_s14 }
 0x122   : > { %2320 = vmatpush.bf16.msra.mxu1 %v2212_v20  ;;  %2321 = vmatpush.bf16.msra.mxu2 %v2212_v20 }
 0x123   : > { %v1213_v49 = vpop.permute.xlu2 %1212  ;;  %v1169_v27 = vpop.permute.xlu1 %1168  ;;  %2322 = vmatpush.bf16.msra.mxu3 %v2212_v20 }
 0x128   : > { %1230 = vrot.lane.b32.xlu0 %v2806_v55, %s2355_s15 }
 0x129   : > { %1192 = vrot.lane.b32.xlu2 %v2772_v15, %s2353_s13  ;;  %1336 = vrot.lane.b32.xlu1 %v2884_v46, %s2357_s17 }
 0x12a   : > { %v3078_v38 = vpop.permute.xlu0 %1052 }
 0x12b   : > { %v1313_v25 = vpop.permute.xlu2 %1312  ;;  %v1281_v37 = vpop.permute.xlu1 %1280 }
 0x130   : > { %1272 = vrot.lane.b32.xlu0 %v2784_v23, %s2356_s16 }
 0x131   : > { %1266 = vrot.lane.b32.xlu2 %v2739_v60, %s2356_s16  ;;  %1174 = vrot.lane.b32.xlu1 %v2609_v3, %s2353_s13  ;;  %v1444_v3 = vsel %vm1442_vm15, %v2898_v7, %v1169_v27 }
 0x132   : > { %v1164_v59 = vpop.permute.xlu0 %1163  ;;  %v1477_v62 = vsel %vm1475_vm0, %v1444_v3, %v1213_v49  ;;  %v1380_v3 = vsel %vm1376_vm13, %v2540_v42, %v2966_v39 }
 0x133   : > { %v1177_v6 = vpop.permute.xlu2 %1176  ;;  %v1171_v44 = vpop.permute.xlu1 %1170  ;;  %v3089_v55 = vsel %vm1409_vm14, %v1406_v1, %v1164_v59 }
 0x138   : > { %1330 = vrot.lane.b32.xlu0 %v2869_v14, %s2357_s17 }
 0x139   : > { %1304 = vrot.lane.b32.xlu2 %v2866_v24, %s2354_s14  ;;  %1224 = vrot.lane.b32.xlu1 %v2779_v35, %s2355_s15 }
 0x13a   : > { %v1249_v30 = vpop.permute.xlu0 %1248 }
 0x13b   : > { %v1251_v60 = vpop.permute.xlu2 %1250  ;;  %v1221_v57 = vpop.permute.xlu1 %1220  ;;  %v1510_v34 = vsel %vm1508_vm1, %v1477_v62, %v1249_v30 }
 0x13c   : > { %v1543_v35 = vsel %vm1541_vm3, %v1510_v34, %v1281_v37  ;;  %v1452_v34 = vsel %vm1442_vm15, %v2957_v13, %v1177_v6 }
 0x13d   : > { %v1576_v27 = vsel %vm1574_vm6, %v1543_v35, %v1313_v25 }
 0x140   : > { %1368 = vrot.lane.b32.xlu0 %v2887_v32, %s2358_s18 }
 0x141   : > { %1362 = vrot.lane.b32.xlu2 %v2720_v52, %s2358_s18  ;;  %1286 = vrot.lane.b32.xlu1 %v2591_v36, %s2354_s14 }
 0x142   : > { %v1345_v49 = vpop.permute.xlu0 %1344 }
 0x143   : > { %v1289_v7 = vpop.permute.xlu2 %1288  ;;  %v1283_v20 = vpop.permute.xlu1 %1282  ;;  %v1609_v1 = vsel %vm1607_vm7, %v1576_v27, %v1345_v49  ;;  %v1485_v49 = vsel %vm1475_vm0, %v1452_v34, %v1221_v57 }
 0x144   : > { %2192 = vmatmul.msk.bf16.vlgmr.msra.gmra.mxu0 %vm1640_vm8, %v1609_v1 }
 0x148   : > { %1218 = vrot.lane.b32.xlu0 %v2800_v16, %s2355_s15  ;;  %v1413_v16 = vsel %vm1409_vm14, %v1380_v3, %v2906_v9 }
 0x149   : > { %1180 = vrot.lane.b32.xlu2 %v2671_v58, %s2353_s13  ;;  %1324 = vrot.lane.b32.xlu1 %v2845_v28, %s2357_s17  ;;  %v1446_v62 = vsel %vm1442_vm15, %v1413_v16, %v1171_v44 }
 0x14a   : > { %v1215_v59 = vpop.permute.xlu0 %1214 }
 0x14b   : > { %v1347_v36 = vpop.permute.xlu2 %1346  ;;  %v1321_v37 = vpop.permute.xlu1 %1320 }
 0x150   : > { %1260 = vrot.lane.b32.xlu0 %v2677_v18, %s2356_s16 }
 0x151   : > { %1254 = vrot.lane.b32.xlu2 %v2617_v26, %s2356_s16  ;;  %1188 = vrot.lane.b32.xlu1 %v2710_v33, %s2353_s13  ;;  %v1479_v26 = vsel %vm1475_vm0, %v1446_v62, %v1215_v59 }
 0x152   : > { %v1257_v30 = vpop.permute.xlu0 %1256  ;;  %v1512_v42 = vsel %vm1508_vm1, %v1479_v26, %v1251_v60 }
 0x153   : > { %v1229_v25 = vpop.permute.xlu2 %1228  ;;  %v1185_v58 = vpop.permute.xlu1 %1184  ;;  %v1545_v39 = vsel %vm1541_vm3, %v1512_v42, %v1283_v20 }
 0x158   : > { %1318 = vrot.lane.b32.xlu0 %v2810_v21, %s2357_s17  ;;  %v1518_v21 = vsel %vm1508_vm1, %v1485_v49, %v1257_v30 }
 0x159   : > { %1292 = vrot.lane.b32.xlu2 %v2648_v4, %s2354_s14  ;;  %1238 = vrot.lane.b32.xlu1 %v2884_v46, %s2355_s15  ;;  %v1551_v6 = vsel %vm1541_vm3, %v1518_v21, %v1289_v7  ;;  %v1132_v21 = vrot.slane %v2858_v10, 1 }
 0x15a   : > { %v1315_v9 = vpop.permute.xlu0 %1314  ;;  %v1584_v60 = vsel %vm1574_vm6, %v1551_v6, %v1321_v37  ;;  %v1133_v6 = vrot.slane %v2851_v48, 1 }
 0x15b   : > { %v1329_v18 = vpop.permute.xlu2 %1328  ;;  %v1297_v33 = vpop.permute.xlu1 %1296  ;;  %v1578_v44 = vsel %vm1574_vm6, %v1545_v39, %v1315_v9 }
 0x15c   : > { %v1611_v35 = vsel %vm1607_vm7, %v1578_v44, %v1347_v36  ;;  %v2298_v36 = vld [vmem:[%s2443_s8 + $0x78] sm:$0xff]  }
 0x15d   : > { %2193 = vmatmul.msk.bf16.gmra.mxu0 %vm1640_vm8, %v1611_v35  ;;  %v2282_v59 = vunpack.c.l.bf16 %v2298_v36  ;;  %v2283_v3 = vunpack.c.h.bf16 %v2298_v36 }
 0x15f   : > { %v394_v30 = vmul.f32 %v2282_v59, %v2457_v53  ;;  %v395_v16 = vmul.f32 %v2283_v3, %v2457_v53 }
 0x160   : > { %1356 = vrot.lane.b32.xlu0 %v2654_v29, %s2358_s18 }
 0x161   : > { %1350 = vrot.lane.b32.xlu2 %v2597_v51, %s2358_s18  ;;  %1300 = vrot.lane.b32.xlu1 %v2689_v43, %s2354_s14  ;;  %v1460_v51 = vsel %vm1442_vm15, %v3002_v54, %v1185_v58  ;;  %v429_v54 = vadd.f32 %v2472_v8, %v394_v30 }
 0x162   : > { %v1353_v57 = vpop.permute.xlu0 %1352  ;;  %v1493_v37 = vsel %vm1475_vm0, %v1460_v51, %v1229_v25  ;;  %v430_v25 = vadd.f32 %v2472_v8, %v395_v16 }
 0x163   : > { %v3151_v46 = vpop.permute.xlu2 %1178  ;;  %v3153_v13 = vpop.permute.xlu1 %1172  ;;  %v1617_v20 = vsel %vm1607_vm7, %v1584_v60, %v1353_v57  ;;  %v493_v26 = vmul.f32 0.01, %v429_v54  ;;  %vm461_vm9 = vcmp.gt.f32.partialorder %v429_v54, 0.0 }
 0x164   : > { %2196 = vmatmul.msk.bf16.vlgmr.msra.gmra.mxu1 %vm1640_vm8, %v1617_v20  ;;  %v494_v53 = vmul.f32 0.01, %v430_v25  ;;  %vm462_vm10 = vcmp.gt.f32.partialorder %v430_v25, 0.0 }
 0x166   : > { %v526_v39 = vsel %vm462_vm10, %v430_v25, %v494_v53 }
 0x167   : > { %v558_v9 = vpack.c.bf16 %v526_v39, %v526_v39 }
 0x168   : > { %1232 = vrot.lane.b32.xlu0 %v2869_v14, %s2355_s15 }
 0x169   : > { %1194 = vrot.lane.b32.xlu2 %v2866_v24, %s2353_s13  ;;  %1338 = vrot.lane.b32.xlu1 %v2878_v12, %s2357_s17  ;;  %v622_v44 = vunpack.c.l.b16 %v558_v9 }
 0x16a   : > { %v1265_v1 = vpop.permute.xlu0 %1264 }
 0x16b   : > { %v3167_v7 = vpop.permute.xlu2 %1252  ;;  %v3169_v27 = vpop.permute.xlu1 %1222  ;;  %v1526_v24 = vsel %vm1508_vm1, %v1493_v37, %v1265_v1  ;;  %v1134_v1 = vsel %vm1086_vm4, %v1132_v21, %v1133_v6 }
 0x16c   : > { %v1559_v14 = vsel %vm1541_vm3, %v1526_v24, %v1297_v33  ;;  %v525_v33 = vsel %vm461_vm9, %v429_v54, %v493_v26  ;;  %v1448_v24 = vsel %vm1442_vm15, %v2960_v40, %v3153_v13 }
 0x16d   : > { %v557_v8 = vpack.c.bf16 %v525_v33, %v525_v33 }
 0x170   : > { %1274 = vrot.lane.b32.xlu0 %v2887_v32, %s2356_s16  ;;  %v621_v32 = vunpack.c.l.b16 %v557_v8 }
 0x171   : > { %1268 = vrot.lane.b32.xlu2 %v2720_v52, %s2356_s16  ;;  %1182 = vrot.lane.b32.xlu1 %v2648_v4, %s2353_s13  ;;  %v1592_v52 = vsel %vm1574_vm6, %v1559_v14, %v1329_v18  ;;  %v3614_v18 = vld [vmem:[#allocation5_spill] sm:$0xff] }
 0x172   : > { %v1361_v42 = vpop.permute.xlu0 %1360  ;;  %v638_v49 = vpack.c.b16 %v622_v44, %v621_v32 }
 0x173   : > { %v3185_v58 = vpop.permute.xlu2 %1290  ;;  %v1285_v62 = vpop.permute.xlu1 %1284  ;;  %v1625_v4 = vsel %vm1607_vm7, %v1592_v52, %v1361_v42 }
 0x174   : > { %2200 = vmatmul.msk.bf16.vlgmr.msra.gmra.mxu2 %vm1640_vm8, %v1625_v4  ;;  %v752_v57 = vshrl.u32 %v638_v49, 16  ;;  %v755_v51 = vshll.u32 %v638_v49, 16 }
 0x176   : > { %v754_v20 = vrot.slane %v752_v57, 7 }
 0x178   : > { %1332 = vrot.lane.b32.xlu0 %v3614_v18, %s2357_s17  ;;  %v757_v59 = vor.u32 %v755_v51, %v754_v20  ;;  %v828_v54 = vsel %vm2402_vm2, %v754_v20, 0 }
 0x179   : > { %1306 = vrot.lane.b32.xlu2 %v2858_v10, %s2354_s14  ;;  %1294 = vrot.lane.b32.xlu1 %v2629_v61, %s2354_s14  ;;  %v3615_v61 = vld [vmem:[#allocation4_spill] sm:$0xff]  ;;  %v1208_v53 = vshll.u32 %v828_v54, 16  ;;  %v1246_v44 = vrot.slane %v828_v54, 1 }
 0x17a   : > { %v1217_v60 = vpop.permute.xlu0 %1216  ;;  %v3208_v48 = vsel %vm2402_vm2, 0, %v757_v59  ;;  %vm2031_vm2 = vcmask 60416  }
 0x17b   : > { %v1349_v34 = vpop.permute.xlu2 %1348  ;;  %v1323_v35 = vpop.permute.xlu1 %1322  ;;  %v1481_v30 = vsel %vm1475_vm0, %v1448_v24, %v1217_v60  ;;  %v1210_v52 = vrot.slane %v1208_v53, 1  ;;  %v1245_v32 = vrot.slane %v3208_v48, 1 }
 0x17c   : > { %v1514_v40 = vsel %vm1508_vm1, %v1481_v30, %v3167_v7 }
 0x17d   : > { %v1547_v13 = vsel %vm1541_vm3, %v1514_v40, %v1285_v62 }
 0x180   : > { %1370 = vrot.lane.b32.xlu0 %v1134_v1, %s2358_s18 }
 0x181   : > { %1364 = vrot.lane.b32.xlu2 %v3615_v61, %s2358_s18  ;;  %1190 = vrot.lane.b32.xlu1 %v2689_v43, %s2353_s13  ;;  %v1203_v43 = vshll.u32 %v3208_v48, 16 }
 0x182   : > { %v1259_v3 = vpop.permute.xlu0 %1258 }
 0x183   : > { %v3204_v36 = vpop.permute.xlu2 %1192  ;;  %v1187_v37 = vpop.permute.xlu1 %1186  ;;  %v1205_v26 = vrot.slane %v1203_v43, 1 }
 0x184   : > { %v1468_v51 = vsel %vm1442_vm15, %v3054_v31, %v3204_v36 }
 0x188   : > { %1262 = vrot.lane.b32.xlu0 %v2654_v29, %s2356_s16  ;;  %v1454_v29 = vsel %vm1442_vm15, %v2978_v0, %v3151_v46 }
 0x189   : > { %1226 = vrot.lane.b32.xlu2 %v2845_v28, %s2355_s15  ;;  %1240 = vrot.lane.b32.xlu1 %v2878_v12, %s2355_s15  ;;  %v1201_v12 = vshrl.u32 %v3208_v48, 16  ;;  %v1487_v2 = vsel %vm1475_vm0, %v1454_v29, %v3169_v27 }
 0x18a   : > { %v1317_v25 = vpop.permute.xlu0 %1316  ;;  %v1520_v7 = vsel %vm1508_vm1, %v1487_v2, %v1259_v3 }
 0x18b   : > { %v1267_v16 = vpop.permute.xlu2 %1266  ;;  %v1237_v14 = vpop.permute.xlu1 %1236  ;;  %v1580_v28 = vsel %vm1574_vm6, %v1547_v13, %v1317_v25  ;;  %v1206_v62 = vor.u32 %v1205_v26, %v1201_v12  ;;  %v1553_v27 = vsel %vm1541_vm3, %v1520_v7, %v3185_v58 }
 0x18c   : > { %v1613_v42 = vsel %vm1607_vm7, %v1580_v28, %v1349_v34  ;;  %v1586_v4 = vsel %vm1574_vm6, %v1553_v27, %v1323_v35  ;;  %v1247_v35 = vsel %vm1086_vm4, %v1245_v32, %v1246_v44  ;;  %vm1895_vm4 = vcmask 57344  }
 0x18d   : > { %2194 = vmatmul.msk.bf16.gmra.mxu0 %vm1640_vm8, %v1613_v42 }
 0x190   : > { %1358 = vrot.lane.b32.xlu0 %v2635_v50, %s2358_s18 }
 0x191   : > { %1326 = vrot.lane.b32.xlu2 %v2803_v47, %s2357_s17  ;;  %1302 = vrot.lane.b32.xlu1 %v2772_v15, %s2354_s14  ;;  %v1211_v47 = vsel %vm829_vm5, %v1206_v62, %v1210_v52 }
 0x192   : > { %v1355_v33 = vpop.permute.xlu0 %1354 }
 0x193   : > { %v1305_v0 = vpop.permute.xlu2 %1304  ;;  %v1299_v46 = vpop.permute.xlu1 %1298  ;;  %v1619_v39 = vsel %vm1607_vm7, %v1586_v4, %v1355_v33 }
 0x194   : > { %2197 = vmatmul.msk.bf16.gmra.mxu1 %vm1640_vm8, %v1619_v39 }
 0x198   : > { %1234 = vrot.lane.b32.xlu0 %v3614_v18, %s2355_s15  ;;  %v1462_v18 = vsel %vm1442_vm15, %v3027_v22, %v1187_v37  ;;  %v3616_v37 = vld [vmem:[#allocation2_spill] sm:$0xff] }
 0x199   : > { %1196 = vrot.lane.b32.xlu2 %v2858_v10, %s2353_s13  ;;  %1340 = vrot.lane.b32.xlu1 %v1211_v47, %s2357_s17 }
 0x19a   : > { %v1231_v58 = vpop.permute.xlu0 %1230 }
 0x19b   : > { %v1363_v50 = vpop.permute.xlu2 %1362  ;;  %v1337_v15 = vpop.permute.xlu1 %1336  ;;  %v1495_v49 = vsel %vm1475_vm0, %v1462_v18, %v1231_v58 }
 0x19c   : > { %v1528_v60 = vsel %vm1508_vm1, %v1495_v49, %v1267_v16 }
 0x19d   : > { %v1561_v57 = vsel %vm1541_vm3, %v1528_v60, %v1299_v46 }
 0x1a0   : > { %1276 = vrot.lane.b32.xlu0 %v1134_v1, %s2356_s16 }
 0x1a1   : > { %1165 = vrot.lane.b32.xlu1 %v1134_v1, %s2351_s27  ;;  %1270 = vrot.lane.b32.xlu2 %v3615_v61, %s2356_s16  ;;  %v1501_v61 = vsel %vm1475_vm0, %v1468_v51, %v1237_v14  ;;  %v3617_v14 = vld [vmem:[#allocation3_spill] sm:$0xff] }
 0x1a2   : > { %v1273_v34 = vpop.permute.xlu0 %1272 }
 0x1a3   : > { %v3257_v8 = vpop.permute.xlu2 %1180  ;;  %v1175_v9 = vpop.permute.xlu1 %1174 }
 0x1a4   : > { %v1456_v4 = vsel %vm1442_vm15, %v2999_v11, %v3257_v8 }
 0x1a8   : > { %1334 = vrot.lane.b32.xlu0 %v2833_v17, %s2357_s17  ;;  %v1534_v17 = vsel %vm1508_vm1, %v1501_v61, %v1273_v34 }
 0x1a9   : > { %1278 = vrot.lane.b32.xlu1 %v1247_v35, %s2356_s16  ;;  %1308 = vrot.lane.b32.xlu2 %v3208_v48, %s2354_s14  ;;  %v1567_v31 = vsel %vm1541_vm3, %v1534_v17, %v1305_v0  ;;  %s3300_s16 = scalar_lea.vmem %s3600_s5, %s2210_s29  ;;  %s2159_s29 = sshll.u32 %s3619_s22, 1 }
 0x1aa   : > { %v1331_v20 = vpop.permute.xlu0 %1330  ;;  %v1600_v36 = vsel %vm1574_vm6, %v1567_v31, %v1337_v15 }
 0x1ab   : > { %v1255_v21 = vpop.permute.xlu2 %1254  ;;  %v1225_v6 = vpop.permute.xlu1 %1224  ;;  %v1594_v22 = vsel %vm1574_vm6, %v1561_v57, %v1331_v20 }
 0x1ac   : > { %v1627_v1 = vsel %vm1607_vm7, %v1594_v22, %v1363_v50  ;;  %v1489_v50 = vsel %vm1475_vm0, %v1456_v4, %v1225_v6 }
 0x1ad   : > { %2201 = vmatmul.msk.bf16.gmra.mxu2 %vm1640_vm8, %v1627_v1 }
 0x1b0   : > { %1372 = vrot.lane.b32.xlu0 %v1247_v35, %s2358_s18 }
 0x1b1   : > { %1374 = vrot.lane.b32.xlu1 %v3616_v37, %s2358_s18  ;;  %1366 = vrot.lane.b32.xlu2 %v2784_v23, %s2358_s18 }
 0x1b2   : > { %v1369_v24 = vpop.permute.xlu0 %1368 }
 0x1b3   : > { %v1293_v59 = vpop.permute.xlu2 %1292  ;;  %v1287_v3 = vpop.permute.xlu1 %1286  ;;  %v1633_v30 = vsel %vm1607_vm7, %v1600_v36, %v1369_v24 }
 0x1b4   : > { %2204 = vmatmul.msk.bf16.vlgmr.msra.gmra.mxu3 %vm1640_vm8, %v1633_v30 }
 0x1b8   : > { %1242 = vrot.lane.b32.xlu0 %v1211_v47, %s2355_s15  ;;  %s262_s15 = scalar_lea.vmem %s3601_s6, %s2159_s29 }
 0x1b9   : > { %1198 = vrot.lane.b32.xlu2 %v3208_v48, %s2353_s13 }
 0x1ba   : > { %v1219_v16 = vpop.permute.xlu0 %1218 }
 0x1bb   : > { %v1351_v23 = vpop.permute.xlu2 %1350  ;;  %v1325_v43 = vpop.permute.xlu1 %1324 }
 0x1c0   : > { %1342 = vrot.lane.b32.xlu0 %v3617_v14, %s2357_s17 }
 0x1c1   : > { %1310 = vrot.lane.b32.xlu2 %v2414_v5, %s2354_s14  ;;  %v1746_v48 = vpop.f32.mrf.mxu0  ;;  %v1450_v5 = vsel %vm1442_vm15, %v2981_v63, %v1175_v9 }
 0x1c2   : > { %v1999_v13 = vpack.c.bf16 %v1746_v48, %v1746_v48  ;;  %v1261_v25 = vpop.permute.xlu0 %1260  ;;  %v1483_v28 = vsel %vm1475_vm0, %v1450_v5, %v1219_v16  ;;  %v1897_v12 = vmul.f32 %v1746_v48, %v1746_v48  ;;  %v1826_v2 = vsel %vm1376_vm13, %v1746_v48, 0.0 }
 0x1c3   : > { %v1189_v54 = vpop.permute.xlu1 %1188  ;;  %v3302_v40 = vpop.permute.xlu2 %1194  ;;  %v1516_v26 = vsel %vm1508_vm1, %v1483_v28, %v1255_v21  ;;  %v1522_v58 = vsel %vm1508_vm1, %v1489_v50, %v1261_v25 }
 0x1c4   : > { %2032 = vst.msk [vmem:[%s3300_s16] sm:$0xf] %vm2031_vm2, %v1999_v13  ;;  %v1549_v29 = vsel %vm1541_vm3, %v1516_v26, %v1287_v3  ;;  %v1929_v33 = vsel %vm1376_vm13, %v1897_v12, 0.0  ;;  %v1555_v32 = vsel %vm1541_vm3, %v1522_v58, %v1293_v59  ;;  %v1464_v30 = vsel %vm1442_vm15, %v3031_v19, %v1189_v54 }
 0x1c5   : > { %v1588_v11 = vsel %vm1574_vm6, %v1555_v32, %v1325_v43  ;;  %v1470_v12 = vsel %vm1442_vm15, %v3058_v41, %v3302_v40 }
 0x1c9   : > { %v1748_v42 = vpop.f32.mrf.mxu0 }
 0x1ca   : > { %v1827_v7 = vsel %vm1376_vm13, %v1748_v42, 0.0  ;;  %v1898_v62 = vmul.f32 %v1748_v42, %v1748_v42  ;;  %v2000_v52 = vpack.c.bf16 %v1748_v42, %v1748_v42  ;;  %v1319_v63 = vpop.permute.xlu0 %1318 }
 0x1cb   : > { %v3310_v53 = vpop.permute.xlu1 %1238  ;;  %v1828_v0 = vadd.f32 %v1827_v7, %v1826_v2  ;;  %v1269_v46 = vpop.permute.xlu2 %1268  ;;  %v1582_v27 = vsel %vm1574_vm6, %v1549_v29, %v1319_v63 }
 0x1cc   : > { %v1930_v39 = vsel %vm1376_vm13, %v1898_v62, 0.0  ;;  %2033 = vst.msk [vmem:[%s3300_s16 + $0x4] sm:$0xf] %vm2031_vm2, %v2000_v52  ;;  %v1615_v47 = vsel %vm1607_vm7, %v1582_v27, %v1351_v23  ;;  %v1503_v29 = vsel %vm1475_vm0, %v1470_v12, %v3310_v53 }
 0x1cd   : > { %v1931_v15 = vadd.f32 %v1930_v39, %v1929_v33  ;;  %2195 = vmatmul.msk.bf16.gmra.mxu0 %vm1640_vm8, %v1615_v47 }
 0x1d2   : > { %v1357_v8 = vpop.permute.xlu0 %1356 }
 0x1d3   : > { %v1301_v9 = vpop.permute.xlu1 %1300  ;;  %v1621_v44 = vsel %vm1607_vm7, %v1588_v11, %v1357_v8  ;;  %v1307_v34 = vpop.permute.xlu2 %1306 }
 0x1d4   : > { %2198 = vmatmul.msk.bf16.gmra.mxu1 %vm1640_vm8, %v1621_v44 }
 0x1da   : > { %v1751_v35 = vpop.f32.mrf.mxu0  ;;  %v1233_v49 = vpop.permute.xlu0 %1232 }
 0x1db   : > { %v1339_v18 = vpop.permute.xlu1 %1338  ;;  %v1829_v21 = vsel %vm1376_vm13, %v1751_v35, 0.0  ;;  %v1899_v6 = vmul.f32 %v1751_v35, %v1751_v35  ;;  %v2001_v60 = vpack.c.bf16 %v1751_v35, %v1751_v35  ;;  %v1365_v51 = vpop.permute.xlu2 %1364  ;;  %v1497_v43 = vsel %vm1475_vm0, %v1464_v30, %v1233_v49 }
 0x1dc   : > { %v1830_v57 = vadd.f32 %v1829_v21, %v1828_v0  ;;  %v1530_v14 = vsel %vm1508_vm1, %v1497_v43, %v1269_v46 }
 0x1dd   : > { %v1932_v20 = vsel %vm1376_vm13, %v1899_v6, 0.0  ;;  %2034 = vst.msk [vmem:[%s3300_s16 + $0x8] sm:$0xf] %vm2031_vm2, %v2001_v60  ;;  %v1563_v25 = vsel %vm1541_vm3, %v1530_v14, %v1301_v9 }
 0x1de   : > { %v1933_v22 = vadd.f32 %v1932_v20, %v1931_v15 }
 0x1e1   : > { %v3335_v1 = vpop.f32.mrf.mxu1 }
 0x1e2   : > { %v2007_v17 = vpack.c.bf16 %v3335_v1, %v3335_v1  ;;  %v1753_v37 = vpop.f32.mrf.mxu0  ;;  %v1275_v59 = vpop.permute.xlu0 %1274 }
 0x1e3   : > { %v1183_v61 = vpop.permute.xlu1 %1182  ;;  %v1831_v3 = vsel %vm1376_vm13, %v1753_v37, 0.0  ;;  %v1900_v31 = vmul.f32 %v1753_v37, %v1753_v37  ;;  %v2002_v36 = vpack.c.bf16 %v1753_v37, %v1753_v37  ;;  %v1227_v48 = vpop.permute.xlu2 %1226  ;;  %v1536_v42 = vsel %vm1508_vm1, %v1503_v29, %v1275_v59 }
 0x1e4   : > { %2040 = vst.msk [vmem:[%s3300_s16 + $0x20] sm:$0xf] %vm2031_vm2, %v2007_v17  ;;  %v1832_v24 = vadd.f32 %v1831_v3, %v1830_v57  ;;  %v1569_v2 = vsel %vm1541_vm3, %v1536_v42, %v1307_v34  ;;  %v1458_v53 = vsel %vm1442_vm15, %v3005_v45, %v1183_v61 }
 0x1e5   : > { %v1934_v23 = vsel %vm1376_vm13, %v1900_v31, 0.0  ;;  %2035 = vst.msk [vmem:[%s3300_s16 + $0xc] sm:$0xf] %vm2031_vm2, %v2002_v36  ;;  %v1602_v7 = vsel %vm1574_vm6, %v1569_v2, %v1339_v18  ;;  %v1491_v27 = vsel %vm1475_vm0, %v1458_v53, %v1227_v48 }
 0x1e6   : > { %v1935_v16 = vadd.f32 %v1934_v23, %v1933_v22 }
 0x1e9   : > { %v3349_v13 = vpop.f32.mrf.mxu1 }
 0x1ea   : > { %v2008_v5 = vpack.c.bf16 %v3349_v13, %v3349_v13  ;;  %v1333_v28 = vpop.permute.xlu0 %1332 }
 0x1eb   : > { %v1596_v19 = vsel %vm1574_vm6, %v1563_v25, %v1333_v28  ;;  %v1295_v54 = vpop.permute.xlu1 %1294  ;;  %v1327_v52 = vpop.permute.xlu2 %1326 }
 0x1ec   : > { %2041 = vst.msk [vmem:[%s3300_s16 + $0x24] sm:$0xf] %vm2031_vm2, %v2008_v5  ;;  %v1629_v26 = vsel %vm1607_vm7, %v1596_v19, %v1365_v51 }
 0x1ed   : > { %2202 = vmatmul.msk.bf16.gmra.mxu2 %vm1640_vm8, %v1629_v26 }
 0x1f2   : > { %v1371_v62 = vpop.permute.xlu0 %1370 }
 0x1f3   : > { %v1635_v41 = vsel %vm1607_vm7, %v1602_v7, %v1371_v62  ;;  %v1191_v40 = vpop.permute.xlu1 %1190  ;;  %v1197_v33 = vpop.permute.xlu2 %1196  ;;  %v1408_v7 = vsel %vm1376_vm13, %v2858_v10, %v3078_v38 }
 0x1f4   : > { %2205 = vmatmul.msk.bf16.gmra.mxu3 %vm1640_vm8, %v1635_v41  ;;  %v1466_v31 = vsel %vm1442_vm15, %v3034_v56, %v1191_v40  ;;  %v1472_v5 = vsel %vm1442_vm15, %v3089_v55, %v1197_v33 }
 0x1f7   : > { %v3369_v63 = vpop.f32.mrf.mxu2 }
 0x1f8   : > { %v2015_v0 = vpack.c.bf16 %v3369_v63, %v3369_v63 }
 0x1fa   : > { %2048 = vst.msk [vmem:[%s3300_s16 + $0x40] sm:$0xf] %vm2031_vm2, %v2015_v0  ;;  %v1263_v46 = vpop.permute.xlu0 %1262 }
 0x1fb   : > { %v1524_v4 = vsel %vm1508_vm1, %v1491_v27, %v1263_v46  ;;  %v1241_v50 = vpop.permute.xlu1 %1240  ;;  %v1271_v32 = vpop.permute.xlu2 %1270 }
 0x1fc   : > { %v1557_v39 = vsel %vm1541_vm3, %v1524_v4, %v1295_v54  ;;  %v1505_v19 = vsel %vm1475_vm0, %v1472_v5, %v1241_v50 }
 0x1fd   : > { %v1590_v58 = vsel %vm1574_vm6, %v1557_v39, %v1327_v52 }
 0x1ff   : > { %v3380_v47 = vpop.f32.mrf.mxu2 }
 0x200   : > { %v2016_v45 = vpack.c.bf16 %v3380_v47, %v3380_v47 }
 0x202   : > { %2049 = vst.msk [vmem:[%s3300_s16 + $0x44] sm:$0xf] %vm2031_vm2, %v2016_v45  ;;  %v1359_v15 = vpop.permute.xlu0 %1358 }
 0x203   : > { %v1623_v9 = vsel %vm1607_vm7, %v1590_v58, %v1359_v15  ;;  %v1303_v11 = vpop.permute.xlu1 %1302  ;;  %v1309_v60 = vpop.permute.xlu2 %1308 }
 0x204   : > { %2199 = vmatmul.msk.bf16.gmra.mxu1 %vm1640_vm8, %v1623_v9 }
 0x20a   : > { %v1756_v8 = vpop.f32.mrf.mxu0  ;;  %v1235_v44 = vpop.permute.xlu0 %1234 }
 0x20b   : > { %v1833_v34 = vsel %vm1376_vm13, %v1756_v8, 0.0  ;;  %v1901_v18 = vmul.f32 %v1756_v8, %v1756_v8  ;;  %v2003_v35 = vpack.c.bf16 %v1756_v8, %v1756_v8  ;;  %v1341_v59 = vpop.permute.xlu1 %1340 }
 0x20c   : > { %v1834_v49 = vadd.f32 %v1833_v34, %v1832_v24  ;;  %v1499_v24 = vsel %vm1475_vm0, %v1466_v31, %v1235_v44 }
 0x20d   : > { %v1936_v21 = vsel %vm1376_vm13, %v1901_v18, 0.0  ;;  %2036 = vst.msk [vmem:[%s3300_s16 + $0x10] sm:$0xf] %vm2031_vm2, %v2003_v35  ;;  %v1532_v23 = vsel %vm1508_vm1, %v1499_v24, %v1271_v32 }
 0x20e   : > { %v1937_v6 = vadd.f32 %v1936_v21, %v1935_v16  ;;  %v1367_v16 = vpop.permute.xlu2 %1366  ;;  %v1565_v14 = vsel %vm1541_vm3, %v1532_v23, %v1303_v11  ;;  %v1843_v23 = vsel %vm1376_vm13, %v3349_v13, 0.0 }
 0x211   : > { %v3393_v57 = vpop.f32.mrf.mxu1 }
 0x212   : > { %v2009_v20 = vpack.c.bf16 %v3393_v57, %v3393_v57  ;;  %v1758_v22 = vpop.f32.mrf.mxu0  ;;  %v1277_v51 = vpop.permute.xlu0 %1276 }
 0x213   : > { %v1835_v61 = vsel %vm1376_vm13, %v1758_v22, 0.0  ;;  %v1902_v17 = vmul.f32 %v1758_v22, %v1758_v22  ;;  %v2004_v37 = vpack.c.bf16 %v1758_v22, %v1758_v22  ;;  %v1166_v54 = vpop.permute.xlu1 %1165  ;;  %v1538_v12 = vsel %vm1508_vm1, %v1505_v19, %v1277_v51 }
 0x214   : > { %2042 = vst.msk [vmem:[%s3300_s16 + $0x28] sm:$0xf] %vm2031_vm2, %v2009_v20  ;;  %v1836_v3 = vadd.f32 %v1835_v61, %v1834_v49  ;;  %v1571_v26 = vsel %vm1541_vm3, %v1538_v12, %v1309_v60  ;;  %v1441_v52 = vsel %vm1409_vm14, %v1408_v7, %v1166_v54  ;;  %v1905_v22 = vmul.f32 %v3335_v1, %v3335_v1 }
 0x215   : > { %v1938_v36 = vsel %vm1376_vm13, %v1902_v17, 0.0  ;;  %2037 = vst.msk [vmem:[%s3300_s16 + $0x14] sm:$0xf] %vm2031_vm2, %v2004_v37  ;;  %v1604_v29 = vsel %vm1574_vm6, %v1571_v26, %v1341_v59  ;;  %v1841_v59 = vsel %vm1376_vm13, %v3335_v1, 0.0 }
 0x216   : > { %v1939_v30 = vadd.f32 %v1938_v36, %v1937_v6  ;;  %v1199_v55 = vpop.permute.xlu2 %1198 }
 0x217   : > { %v1474_v40 = vsel %vm1442_vm15, %v1441_v52, %v1199_v55 }
 0x219   : > { %v3407_v43 = vpop.f32.mrf.mxu1 }
 0x21a   : > { %v2010_v48 = vpack.c.bf16 %v3407_v43, %v3407_v43  ;;  %v1335_v25 = vpop.permute.xlu0 %1334 }
 0x21b   : > { %v1598_v56 = vsel %vm1574_vm6, %v1565_v14, %v1335_v25  ;;  %v1279_v62 = vpop.permute.xlu1 %1278  ;;  %v1845_v25 = vsel %vm1376_vm13, %v3393_v57, 0.0 }
 0x21c   : > { %2043 = vst.msk [vmem:[%s3300_s16 + $0x2c] sm:$0xf] %vm2031_vm2, %v2010_v48  ;;  %v1631_v28 = vsel %vm1607_vm7, %v1598_v56, %v1367_v16  ;;  %v1907_v16 = vmul.f32 %v3393_v57, %v3393_v57  ;;  %v1908_v56 = vmul.f32 %v3407_v43, %v3407_v43 }
 0x21d   : > { %2203 = vmatmul.msk.bf16.gmra.mxu2 %vm1640_vm8, %v1631_v28 }
 0x21e   : > { %v1311_v46 = vpop.permute.xlu2 %1310  ;;  %v1948_v54 = vsel %vm1376_vm13, %v1907_v16, 0.0 }
 0x222   : > { %v1373_v42 = vpop.permute.xlu0 %1372 }
 0x223   : > { %v1637_v2 = vsel %vm1607_vm7, %v1604_v29, %v1373_v42  ;;  %v1375_v10 = vpop.permute.xlu1 %1374 }
 0x224   : > { %2206 = vmatmul.msk.bf16.gmra.mxu3 %vm1640_vm8, %v1637_v2  ;;  %v1950_v2 = vsel %vm1376_vm13, %v1908_v56, 0.0 }
 0x22a   : > { %v1243_v41 = vpop.permute.xlu0 %1242 }
 0x22b   : > { %v1507_v53 = vsel %vm1475_vm0, %v1474_v40, %v1243_v41 }
 0x22c   : > { %v1540_v0 = vsel %vm1508_vm1, %v1507_v53, %v1279_v62 }
 0x22d   : > { %v1573_v38 = vsel %vm1541_vm3, %v1540_v0, %v1311_v46 }
 0x230   : > { %v3432_v27 = vpop.f32.mrf.mxu2 }
 0x231   : > { %v2017_v4 = vpack.c.bf16 %v3432_v27, %v3432_v27 }
 0x232   : > { %v1343_v33 = vpop.permute.xlu0 %1342 }
 0x233   : > { %2050 = vst.msk [vmem:[%s3300_s16 + $0x48] sm:$0xf] %vm2031_vm2, %v2017_v4  ;;  %v1606_v39 = vsel %vm1574_vm6, %v1573_v38, %v1343_v33 }
 0x234   : > { %v1639_v50 = vsel %vm1607_vm7, %v1606_v39, %v1375_v10 }
 0x235   : > { %2207 = vmatmul.msk.bf16.gmra.mxu3 %vm1640_vm8, %v1639_v50 }
 0x237   : > { %v3442_v45 = vpop.f32.mrf.mxu3 }
 0x238   : > { %v2023_v15 = vpack.c.bf16 %v3442_v45, %v3442_v45  ;;  %v3446_v58 = vpop.f32.mrf.mxu2 }
 0x239   : > { %v2018_v9 = vpack.c.bf16 %v3446_v58, %v3446_v58  ;;  %v1916_v16 = vmul.f32 %v3446_v58, %v3446_v58 }
 0x23a   : > { %2056 = vst.msk [vmem:[%s3300_s16 + $0x60] sm:$0xf] %vm2031_vm2, %v2023_v15 }
 0x23b   : > { %2051 = vst.msk [vmem:[%s3300_s16 + $0x4c] sm:$0xf] %vm2031_vm2, %v2018_v9 }
 0x23f   : > { %v3454_v32 = vpop.f32.mrf.mxu3 }
 0x240   : > { %v2024_v11 = vpack.c.bf16 %v3454_v32, %v3454_v32 }
 0x242   : > { %2057 = vst.msk [vmem:[%s3300_s16 + $0x64] sm:$0xf] %vm2031_vm2, %v2024_v11 }
 0x24a   : > { %v1761_v8 = vpop.f32.mrf.mxu0 }
 0x24b   : > { %v1837_v44 = vsel %vm1376_vm13, %v1761_v8, 0.0  ;;  %v1903_v34 = vmul.f32 %v1761_v8, %v1761_v8  ;;  %v2005_v18 = vpack.c.bf16 %v1761_v8, %v1761_v8 }
 0x24c   : > { %v1838_v35 = vadd.f32 %v1837_v44, %v1836_v3  ;;  %v1906_v3 = vmul.f32 %v3349_v13, %v3349_v13  ;;  %v1847_v13 = vsel %vm1376_vm13, %v3407_v43, 0.0 }
 0x24d   : > { %v1940_v49 = vsel %vm1376_vm13, %v1903_v34, 0.0  ;;  %2038 = vst.msk [vmem:[%s3300_s16 + $0x18] sm:$0xf] %vm2031_vm2, %v2005_v18 }
 0x24e   : > { %v1941_v21 = vadd.f32 %v1940_v49, %v1939_v30  ;;  %v1944_v30 = vsel %vm1376_vm13, %v1905_v22, 0.0  ;;  %v1946_v1 = vsel %vm1376_vm13, %v1906_v3, 0.0  ;;  %v1913_v49 = vmul.f32 %v3369_v63, %v3369_v63 }
 0x250   : > { %v1960_v3 = vsel %vm1376_vm13, %v1913_v49, 0.0 }
 0x251   : > { %v1776_v6 = vpop.f32.mrf.mxu1 }
 0x252   : > { %v2011_v60 = vpack.c.bf16 %v1776_v6, %v1776_v6  ;;  %v1763_v20 = vpop.f32.mrf.mxu0  ;;  %v1909_v12 = vmul.f32 %v1776_v6, %v1776_v6  ;;  %v1849_v57 = vsel %vm1376_vm13, %v1776_v6, 0.0 }
 0x253   : > { %v1839_v51 = vsel %vm1376_vm13, %v1763_v20, 0.0  ;;  %v1904_v61 = vmul.f32 %v1763_v20, %v1763_v20  ;;  %v2006_v17 = vpack.c.bf16 %v1763_v20, %v1763_v20 }
 0x254   : > { %2044 = vst.msk [vmem:[%s3300_s16 + $0x30] sm:$0xf] %vm2031_vm2, %v2011_v60  ;;  %v1840_v37 = vadd.f32 %v1839_v51, %v1838_v35  ;;  %v1952_v52 = vsel %vm1376_vm13, %v1909_v12, 0.0  ;;  %v1857_v51 = vsel %vm1376_vm13, %v3369_v63, 0.0 }
 0x255   : > { %v1942_v31 = vsel %vm1376_vm13, %v1904_v61, 0.0  ;;  %2039 = vst.msk [vmem:[%s3300_s16 + $0x1c] sm:$0xf] %vm2031_vm2, %v2006_v17  ;;  %v1914_v61 = vmul.f32 %v3380_v47, %v3380_v47 }
 0x256   : > { %v1842_v36 = vadd.f32 %v1841_v59, %v1840_v37  ;;  %v1943_v24 = vadd.f32 %v1942_v31, %v1941_v21  ;;  %v1859_v31 = vsel %vm1376_vm13, %v3380_v47, 0.0  ;;  %v1863_v47 = vsel %vm1376_vm13, %v3446_v58, 0.0 }
 0x257   : > { %v1962_v63 = vsel %vm1376_vm13, %v1914_v61, 0.0 }
 0x258   : > { %v1844_v14 = vadd.f32 %v1843_v23, %v1842_v36  ;;  %v1945_v48 = vadd.f32 %v1944_v30, %v1943_v24  ;;  %v1915_v36 = vmul.f32 %v3432_v27, %v3432_v27  ;;  %v1861_v23 = vsel %vm1376_vm13, %v3432_v27, 0.0 }
 0x259   : > { %v1778_v5 = vpop.f32.mrf.mxu1 }
 0x25a   : > { %v1846_v28 = vadd.f32 %v1845_v25, %v1844_v14  ;;  %v1947_v19 = vadd.f32 %v1946_v1, %v1945_v48  ;;  %v2012_v26 = vpack.c.bf16 %v1778_v5, %v1778_v5  ;;  %v1910_v55 = vmul.f32 %v1778_v5, %v1778_v5 }
 0x25b   : > { %v1851_v43 = vsel %vm1376_vm13, %v1778_v5, 0.0  ;;  %v1964_v1 = vsel %vm1376_vm13, %v1915_v36, 0.0  ;;  %v1966_v5 = vsel %vm1376_vm13, %v1916_v16, 0.0 }
 0x25c   : > { %v1949_v29 = vadd.f32 %v1948_v54, %v1947_v19  ;;  %v1848_v42 = vadd.f32 %v1847_v13, %v1846_v28  ;;  %2045 = vst.msk [vmem:[%s3300_s16 + $0x34] sm:$0xf] %vm2031_vm2, %v2012_v26  ;;  %v1954_v53 = vsel %vm1376_vm13, %v1910_v55, 0.0 }
 0x25e   : > { %v1850_v7 = vadd.f32 %v1849_v57, %v1848_v42  ;;  %v1951_v62 = vadd.f32 %v1950_v2, %v1949_v29 }
 0x260   : > { %v1852_v41 = vadd.f32 %v1851_v43, %v1850_v7  ;;  %v1953_v40 = vadd.f32 %v1952_v52, %v1951_v62 }
 0x262   : > { %v1955_v0 = vadd.f32 %v1954_v53, %v1953_v40 }
 0x270   : > { %v1796_v46 = vpop.f32.mrf.mxu2 }
 0x271   : > { %v2019_v4 = vpack.c.bf16 %v1796_v46, %v1796_v46  ;;  %v1917_v19 = vmul.f32 %v1796_v46, %v1796_v46  ;;  %v1865_v27 = vsel %vm1376_vm13, %v1796_v46, 0.0 }
 0x273   : > { %2052 = vst.msk [vmem:[%s3300_s16 + $0x50] sm:$0xf] %vm2031_vm2, %v2019_v4  ;;  %v1968_v26 = vsel %vm1376_vm13, %v1917_v19, 0.0 }
 0x277   : > { %v3498_v10 = vpop.f32.mrf.mxu3 }
 0x278   : > { %v2025_v38 = vpack.c.bf16 %v3498_v10, %v3498_v10  ;;  %v1798_v33 = vpop.f32.mrf.mxu2 }
 0x279   : > { %v2020_v39 = vpack.c.bf16 %v1798_v33, %v1798_v33  ;;  %v1918_v29 = vmul.f32 %v1798_v33, %v1798_v33  ;;  %v1867_v58 = vsel %vm1376_vm13, %v1798_v33, 0.0 }
 0x27a   : > { %2058 = vst.msk [vmem:[%s3300_s16 + $0x68] sm:$0xf] %vm2031_vm2, %v2025_v38 }
 0x27b   : > { %2053 = vst.msk [vmem:[%s3300_s16 + $0x54] sm:$0xf] %vm2031_vm2, %v2020_v39  ;;  %v1970_v7 = vsel %vm1376_vm13, %v1918_v29, 0.0 }
 0x27f   : > { %v3506_v50 = vpop.f32.mrf.mxu3 }
 0x280   : > { %v2026_v15 = vpack.c.bf16 %v3506_v50, %v3506_v50 }
 0x281   : > { %v1781_v9 = vpop.f32.mrf.mxu1 }
 0x282   : > { %2059 = vst.msk [vmem:[%s3300_s16 + $0x6c] sm:$0xf] %vm2031_vm2, %v2026_v15  ;;  %v2013_v11 = vpack.c.bf16 %v1781_v9, %v1781_v9  ;;  %v1911_v8 = vmul.f32 %v1781_v9, %v1781_v9  ;;  %v1853_v44 = vsel %vm1376_vm13, %v1781_v9, 0.0  ;;  %v1873_v15 = vsel %vm1376_vm13, %v3442_v45, 0.0 }
 0x283   : > { %v1854_v18 = vadd.f32 %v1853_v44, %v1852_v41  ;;  %v1922_v9 = vmul.f32 %v3454_v32, %v3454_v32 }
 0x284   : > { %2046 = vst.msk [vmem:[%s3300_s16 + $0x38] sm:$0xf] %vm2031_vm2, %v2013_v11  ;;  %v1956_v34 = vsel %vm1376_vm13, %v1911_v8, 0.0 }
 0x285   : > { %v1957_v20 = vadd.f32 %v1956_v34, %v1955_v0  ;;  %v1921_v0 = vmul.f32 %v3442_v45, %v3442_v45  ;;  %v1923_v45 = vmul.f32 %v3498_v10, %v3498_v10 }
 0x287   : > { %v1976_v34 = vsel %vm1376_vm13, %v1921_v0, 0.0  ;;  %v1980_v61 = vsel %vm1376_vm13, %v1923_v45, 0.0 }
 0x289   : > { %v1783_v35 = vpop.f32.mrf.mxu1 }
 0x28a   : > { %v1855_v21 = vsel %vm1376_vm13, %v1783_v35, 0.0  ;;  %v1912_v6 = vmul.f32 %v1783_v35, %v1783_v35  ;;  %v2014_v60 = vpack.c.bf16 %v1783_v35, %v1783_v35 }
 0x28b   : > { %v1856_v22 = vadd.f32 %v1855_v21, %v1854_v18  ;;  %v1875_v18 = vsel %vm1376_vm13, %v3454_v32, 0.0  ;;  %v1978_v21 = vsel %vm1376_vm13, %v1922_v9, 0.0  ;;  %v1924_v32 = vmul.f32 %v3506_v50, %v3506_v50 }
 0x28c   : > { %v1958_v17 = vsel %vm1376_vm13, %v1912_v6, 0.0  ;;  %2047 = vst.msk [vmem:[%s3300_s16 + $0x3c] sm:$0xf] %vm2031_vm2, %v2014_v60 }
 0x28d   : > { %v1858_v37 = vadd.f32 %v1857_v51, %v1856_v22  ;;  %v1959_v59 = vadd.f32 %v1958_v17, %v1957_v20  ;;  %v1877_v20 = vsel %vm1376_vm13, %v3498_v10, 0.0 }
 0x28f   : > { %v1860_v24 = vadd.f32 %v1859_v31, %v1858_v37  ;;  %v1961_v30 = vadd.f32 %v1960_v3, %v1959_v59  ;;  %v1879_v37 = vsel %vm1376_vm13, %v3506_v50, 0.0  ;;  %v1982_v3 = vsel %vm1376_vm13, %v1924_v32, 0.0 }
 0x291   : > { %v1862_v14 = vadd.f32 %v1861_v23, %v1860_v24  ;;  %v1963_v48 = vadd.f32 %v1962_v63, %v1961_v30 }
 0x293   : > { %v1965_v25 = vadd.f32 %v1964_v1, %v1963_v48  ;;  %v1864_v56 = vadd.f32 %v1863_v47, %v1862_v14 }
 0x295   : > { %v1967_v28 = vadd.f32 %v1966_v5, %v1965_v25  ;;  %v1866_v12 = vadd.f32 %v1865_v27, %v1864_v56 }
 0x297   : > { %v1969_v2 = vadd.f32 %v1968_v26, %v1967_v28  ;;  %v1868_v55 = vadd.f32 %v1867_v58, %v1866_v12 }
 0x299   : > { %v1971_v41 = vadd.f32 %v1970_v7, %v1969_v2 }
 0x2a0   : > { %v1801_v54 = vpop.f32.mrf.mxu2 }
 0x2a1   : > { %v2021_v13 = vpack.c.bf16 %v1801_v54, %v1801_v54  ;;  %v1919_v42 = vmul.f32 %v1801_v54, %v1801_v54  ;;  %v1869_v57 = vsel %vm1376_vm13, %v1801_v54, 0.0 }
 0x2a2   : > { %v1870_v43 = vadd.f32 %v1869_v57, %v1868_v55 }
 0x2a3   : > { %2054 = vst.msk [vmem:[%s3300_s16 + $0x58] sm:$0xf] %vm2031_vm2, %v2021_v13  ;;  %v1972_v62 = vsel %vm1376_vm13, %v1919_v42, 0.0 }
 0x2a4   : > { %v1973_v33 = vadd.f32 %v1972_v62, %v1971_v41 }
 0x2a7   : > { %v1816_v52 = vpop.f32.mrf.mxu3 }
 0x2a8   : > { %v2027_v40 = vpack.c.bf16 %v1816_v52, %v1816_v52  ;;  %v1803_v53 = vpop.f32.mrf.mxu2  ;;  %v1925_v31 = vmul.f32 %v1816_v52, %v1816_v52  ;;  %v1881_v24 = vsel %vm1376_vm13, %v1816_v52, 0.0 }
 0x2a9   : > { %v1871_v46 = vsel %vm1376_vm13, %v1803_v53, 0.0  ;;  %v1920_v4 = vmul.f32 %v1803_v53, %v1803_v53  ;;  %v2022_v38 = vpack.c.bf16 %v1803_v53, %v1803_v53 }
 0x2aa   : > { %2060 = vst.msk [vmem:[%s3300_s16 + $0x70] sm:$0xf] %vm2031_vm2, %v2027_v40  ;;  %v1872_v39 = vadd.f32 %v1871_v46, %v1870_v43  ;;  %v1984_v23 = vsel %vm1376_vm13, %v1925_v31, 0.0 }
 0x2ab   : > { %v1974_v11 = vsel %vm1376_vm13, %v1920_v4, 0.0  ;;  %2055 = vst.msk [vmem:[%s3300_s16 + $0x5c] sm:$0xf] %vm2031_vm2, %v2022_v38 }
 0x2ac   : > { %v1874_v8 = vadd.f32 %v1873_v15, %v1872_v39  ;;  %v1975_v44 = vadd.f32 %v1974_v11, %v1973_v33 }
 0x2ae   : > { %v1876_v35 = vadd.f32 %v1875_v18, %v1874_v8  ;;  %v1977_v49 = vadd.f32 %v1976_v34, %v1975_v44 }
 0x2af   : > { %v1818_v6 = vpop.f32.mrf.mxu3 }
 0x2b0   : > { %v1979_v60 = vadd.f32 %v1978_v21, %v1977_v49  ;;  %v2028_v22 = vpack.c.bf16 %v1818_v6, %v1818_v6  ;;  %v1878_v51 = vadd.f32 %v1877_v20, %v1876_v35  ;;  %v1926_v16 = vmul.f32 %v1818_v6, %v1818_v6 }
 0x2b1   : > { %v1883_v50 = vsel %vm1376_vm13, %v1818_v6, 0.0 }
 0x2b2   : > { %2061 = vst.msk [vmem:[%s3300_s16 + $0x74] sm:$0xf] %vm2031_vm2, %v2028_v22  ;;  %v1981_v17 = vadd.f32 %v1980_v61, %v1979_v60  ;;  %v1880_v59 = vadd.f32 %v1879_v37, %v1878_v51  ;;  %v1986_v25 = vsel %vm1376_vm13, %v1926_v16, 0.0 }
 0x2b4   : > { %v1983_v36 = vadd.f32 %v1982_v3, %v1981_v17  ;;  %v1882_v63 = vadd.f32 %v1881_v24, %v1880_v59 }
 0x2b6   : > { %v1985_v48 = vadd.f32 %v1984_v23, %v1983_v36  ;;  %v1884_v47 = vadd.f32 %v1883_v50, %v1882_v63 }
 0x2b8   : > { %v1821_v10 = vpop.f32.mrf.mxu3  ;;  %v1987_v5 = vadd.f32 %v1986_v25, %v1985_v48 }
 0x2b9   : > { %v2029_v30 = vpack.c.bf16 %v1821_v10, %v1821_v10  ;;  %v1927_v14 = vmul.f32 %v1821_v10, %v1821_v10  ;;  %v1885_v1 = vsel %vm1376_vm13, %v1821_v10, 0.0 }
 0x2ba   : > { %v1886_v28 = vadd.f32 %v1885_v1, %v1884_v47 }
 0x2bb   : > { %2062 = vst.msk [vmem:[%s3300_s16 + $0x78] sm:$0xf] %vm2031_vm2, %v2029_v30  ;;  %v1988_v56 = vsel %vm1376_vm13, %v1927_v14, 0.0 }
 0x2bc   : > { %v1989_v12 = vadd.f32 %v1988_v56, %v1987_v5 }
 0x2c0   : > { %v1823_v19 = vpop.f32.mrf.mxu3 }
 0x2c1   : > { %v1887_v54 = vsel %vm1376_vm13, %v1823_v19, 0.0  ;;  %v1928_v27 = vmul.f32 %v1823_v19, %v1823_v19  ;;  %v2030_v13 = vpack.c.bf16 %v1823_v19, %v1823_v19 }
 0x2c2   : > { %v1888_v26 = vadd.f32 %v1887_v54, %v1886_v28 }
 0x2c3   : > { %v1990_v29 = vsel %vm1376_vm13, %v1928_v27, 0.0  ;;  %2063 = vst.msk [vmem:[%s3300_s16 + $0x7c] sm:$0xf] %vm2031_vm2, %v2030_v13 }
 0x2c4   : > { %v1889_v42 = vrot.slane %v1888_v26, 4  ;;  %v1991_v2 = vadd.f32 %v1990_v29, %v1989_v12 }
 0x2c6   : > { %v1890_v58 = vadd.f32 %v1889_v42, %v1888_v26  ;;  %v1992_v57 = vrot.slane %v1991_v2, 4 }
 0x2c8   : > { %v1891_v55 = vrot.slane %v1890_v58, 2  ;;  %v1993_v7 = vadd.f32 %v1992_v57, %v1991_v2 }
 0x2ca   : > { %v1892_v62 = vadd.f32 %v1891_v55, %v1890_v58  ;;  %v1994_v52 = vrot.slane %v1993_v7, 2 }
 0x2cc   : > { %v1893_v43 = vrot.slane %v1892_v62, 1  ;;  %v1995_v41 = vadd.f32 %v1994_v52, %v1993_v7 }
 0x2ce   : > { %v1894_v40 = vadd.f32 %v1893_v43, %v1892_v62  ;;  %v1996_v53 = vrot.slane %v1995_v41, 1 }
 0x2d0   : > { %1896 = vst.msk [vmem:[%s262_s15] sm:$0x1] %vm1895_vm4, %v1894_v40  ;;  %v1997_v0 = vadd.f32 %v1996_v53, %v1995_v41 }
 0x2d2   : > { %1998 = vst.msk [vmem:[%s262_s15 + $0x1] sm:$0x1] %vm1895_vm4, %v1997_v0 }
 0x2d3 PF: > { %s17_s21 = sadd.s32 1, %s2348_s21  }
 0x2d4   : > { %p14_p4 = scmp.ge.s32.totalorder %s17_s21, 4  }
 0x2d6   :  { %16 = sbr.rel (!%p14_p4) target bundleno = 1 (0x1), region = 83 }

// kernel: residual_block_pallas.3
= control target key start
LH: loop header
LB: loop body
LE: loop exit
PB: predicated region body
PF: predicated region fallthrough
CT: control target
= control target key end

     0   :  { %s2417_s18 = smov 0   ;;  %s3675_s0 = inlined_call_operand.vmem [shape: bf16[2,16,16,4], index: 0, kind: input, shape index: {}]   ;;  %s3676_s1 = inlined_call_operand.vmem [shape: bf16[128,256], index: 1, kind: input, shape index: {}]   ;;  %s3677_s2 = inlined_call_operand.vmem [shape: f32[1,8], index: 2, kind: input, shape index: {}]   ;;  %s3678_s3 = inlined_call_operand.vmem [shape: bf16[2,256,8], index: 3, kind: output, shape index: {0}]   ;;  %s3679_s4 = inlined_call_operand.vmem [shape: bf16[2,256,8], index: 4, kind: output, shape index: {1}]   ;;  %s3680_s5 = inlined_call_operand.vmem [shape: f32[2,2,8], index: 5, kind: output, shape index: {2}]  }
   0x1 LB: > { %s2126_s19 = sadd.s32 4294967295, %s2376_s18   ;;  %p2130_p0 = scmp.ge.s32.totalorder %s2376_s18, 1  ;;  %s2376_s18 = sphi %s2417_s18, %s16_s18  }
   0x2   : > { %p192_p1 = scmp.lt.s32.totalorder %s2376_s18, 3 }
   0x4   : > { %p193_p2 = pnand %p2130_p0, %p192_p1 }
   0x6   : > { %196 = sbr.rel (%p193_p2) target bundleno = 647 (0x287), region = 32 }
   0xb   : > { %vm514_vm0 = vcmask 1040384   ;;  %vm515_vm1 = vsmask.f32 256  ;;  %v2378_v0 = vmov 0   ;;  %p229_p3 = scmp.lt.s32.totalorder %s2126_s19, 1  ;;  %s2379_s24 = smov 4  }
   0xc   : > { %v364_v1 = vrot.slane %v2378_v0, 7  ;;  %vm2425_vm2 = vmand %vm514_vm0, %vm515_vm1  ;;  %vm551_vm3 = vsmask.f32 7424  ;;  %vm808_vm4 = vcmask 1046528   ;;  %s2380_s25 = smov 8   ;;  %s2381_s26 = smov 16  }
   0xd   : > { %s3686_s19 = smov (!%p229_p3, %s2126_s19), 1  ;;  %s2382_s27 = smov 12   ;;  %vm1098_vm5 = vcmask 31744   ;;  %vm1131_vm6 = vcmask 64512   ;;  %vm1164_vm7 = vcmask 97280   ;;  %vm1197_vm8 = vcmask 130048  }
   0xe   : > { %v2431_v3 = vsel %vm2425_vm2, 0, %v364_v1  ;;  %v2435_v4 = vsel %vm2425_vm2, %v364_v1, 0  ;;  %s2443_s20 = sshll.u32 %s3686_s19, 7  ;;  %s2383_s28 = smov 20   ;;  %vm1230_vm9 = vcmask 162816   ;;  %vm1263_vm10 = vcmask 195584  }
   0xf   : > { %v553_v5 = vshrl.u32 %v2431_v3, 16  ;;  %v555_v6 = vshll.u32 %v2431_v3, 16  ;;  %v560_v7 = vshll.u32 %v2435_v4, 16  ;;  %s2449_s23 = scalar_lea.vmem %s3675_s0, %s2443_s20  ;;  %s2384_s29 = smov 28   ;;  %vm1296_vm11 = vcmask 228352  }
  0x10   : > { %v2306_v10 = vld [vmem:[%s2449_s23 + $0x18] sm:$0xff]  ;;  %v2304_v11 = vld [vmem:[%s2449_s23 + $0x8] sm:$0xff]  ;;  %v2303_v12 = vld [vmem:[%s2449_s23] sm:$0xff]  ;;  %s2385_s30 = smov 24   ;;  %s2386_s6 = smov 32   ;;  %vm1329_vm12 = vcmask 261120  }
  0x11   : > { %v557_v8 = vrot.slane %v555_v6, 1  ;;  %v562_v9 = vrot.slane %v560_v7, 1  ;;  %v2307_v14 = vld [vmem:[%s2449_s23 + $0x20] sm:$0xff]  ;;  %v2305_v15 = vld [vmem:[%s2449_s23 + $0x10] sm:$0xff]  ;;  %v2457_v16 = vld [vmem:[%s2449_s23 + $0x28] sm:$0xff]  ;;  %v390_v17 = vshrl.u32 %v2306_v10, 16  ;;  %s3206_s9 = scalar_lea.vmem %s3678_s3, %s2443_s20  ;;  %s3216_s12 = scalar_lea.vmem %s3679_s4, %s2443_s20 }
  0x12   : > { %v393_v18 = vshll.u32 %v2306_v10, 16  ;;  %v376_v19 = vshrl.u32 %v2304_v11, 16  ;;  %v379_v20 = vshll.u32 %v2304_v11, 16  ;;  %v369_v22 = vshrl.u32 %v2303_v12, 16 }
  0x13   : > { %v558_v13 = vor.u32 %v557_v8, %v553_v5  ;;  %v372_v23 = vshll.u32 %v2303_v12, 16  ;;  %v397_v24 = vshrl.u32 %v2307_v14, 16  ;;  %v392_v25 = vrot.slane %v390_v17, 7  ;;  %v2309_v17 = vld [vmem:[%s2449_s23 + $0x30] sm:$0xff] }
  0x14   : > { %v378_v26 = vrot.slane %v376_v19, 7  ;;  %v400_v27 = vshll.u32 %v2307_v14, 16  ;;  %v383_v28 = vshrl.u32 %v2305_v15, 16  ;;  %v371_v29 = vrot.slane %v369_v22, 7 }
  0x15   : > { %v2460_v21 = vsel %vm551_vm3, %v558_v13, %v562_v9  ;;  %v399_v30 = vrot.slane %v397_v24, 7  ;;  %v386_v31 = vshll.u32 %v2305_v15, 16  ;;  %v404_v32 = vshrl.u32 %v2457_v16, 16 }
  0x16   : > { %744 = vrot.lane.b32.xlu0 %v2460_v21, %s2379_s24  ;;  %v395_v33 = vor.u32 %v393_v18, %v392_v25  ;;  %v2467_v34 = vsel %vm2425_vm2, %v392_v25, 0  ;;  %v381_v35 = vor.u32 %v379_v20, %v378_v26  ;;  %v2471_v36 = vsel %vm2425_vm2, %v378_v26, 0 }
  0x17   : > { %v608_v37 = vshll.u32 %v2467_v34, 16  ;;  %v584_v38 = vshll.u32 %v2471_v36, 16  ;;  %v374_v39 = vor.u32 %v372_v23, %v371_v29  ;;  %v2477_v40 = vsel %vm2425_vm2, %v371_v29, 0  ;;  %v2311_v23 = vld [vmem:[%s2449_s23 + $0x40] sm:$0xff] }
  0x18   : > { %v2481_v41 = vsel %vm2425_vm2, 0, %v395_v33  ;;  %v2485_v42 = vsel %vm2425_vm2, 0, %v381_v35  ;;  %v572_v43 = vshll.u32 %v2477_v40, 16  ;;  %v402_v44 = vor.u32 %v400_v27, %v399_v30 }
  0x19   : > { %v601_v45 = vshrl.u32 %v2481_v41, 16  ;;  %v603_v46 = vshll.u32 %v2481_v41, 16  ;;  %v610_v47 = vrot.slane %v608_v37, 1  ;;  %v577_v48 = vshrl.u32 %v2485_v42, 16 }
  0x1a   : > { %v579_v49 = vshll.u32 %v2485_v42, 16  ;;  %v586_v50 = vrot.slane %v584_v38, 1  ;;  %v2494_v51 = vsel %vm2425_vm2, 0, %v374_v39  ;;  %v574_v52 = vrot.slane %v572_v43, 1 }
  0x1b   : > { %v605_v53 = vrot.slane %v603_v46, 1  ;;  %v565_v54 = vshrl.u32 %v2494_v51, 16  ;;  %v567_v55 = vshll.u32 %v2494_v51, 16  ;;  %v2500_v56 = vsel %vm2425_vm2, 0, %v402_v44 }
  0x1c   : > { %v581_v57 = vrot.slane %v579_v49, 1  ;;  %v2504_v58 = vsel %vm2425_vm2, %v399_v30, 0  ;;  %v613_v59 = vshrl.u32 %v2500_v56, 16  ;;  %v615_v60 = vshll.u32 %v2500_v56, 16 }
  0x1d   : > { %v606_v61 = vor.u32 %v605_v53, %v601_v45  ;;  %v569_v62 = vrot.slane %v567_v55, 1  ;;  %v620_v63 = vshll.u32 %v2504_v58, 16  ;;  %v385_v0 = vrot.slane %v383_v28, 7 }
  0x1e   : > { %v582_v1 = vor.u32 %v581_v57, %v577_v48  ;;  %v617_v5 = vrot.slane %v615_v60, 1  ;;  %v406_v6 = vrot.slane %v404_v32, 7  ;;  %v407_v7 = vshll.u32 %v2457_v16, 16  ;;  %v2310_v16 = vld [vmem:[%s2449_s23 + $0x38] sm:$0xff]  ;;  %v2313_v32 = vld [vmem:[%s2449_s23 + $0x50] sm:$0xff] }
  0x1f   : > { %v2511_v8 = vsel %vm551_vm3, %v606_v61, %v610_v47  ;;  %v570_v9 = vor.u32 %v569_v62, %v565_v54  ;;  %v622_v10 = vrot.slane %v620_v63, 1  ;;  %v388_v11 = vor.u32 %v386_v31, %v385_v0 }
  0x20   : > { %752 = vrot.lane.b32.xlu2 %v2511_v8, %s2379_s24  ;;  %v2516_v12 = vsel %vm551_vm3, %v582_v1, %v586_v50  ;;  %v618_v13 = vor.u32 %v617_v5, %v613_v59  ;;  %v2520_v14 = vsel %vm2425_vm2, %v385_v0, 0  ;;  %v409_v15 = vor.u32 %v407_v7, %v406_v6 }
  0x21   : > { %748 = vrot.lane.b32.xlu1 %v2516_v12, %s2379_s24  ;;  %v2527_v18 = vsel %vm551_vm3, %v570_v9, %v574_v52  ;;  %v2531_v19 = vsel %vm2425_vm2, 0, %v388_v11  ;;  %v596_v20 = vshll.u32 %v2520_v14, 16  ;;  %v2536_v22 = vsel %vm2425_vm2, %v406_v6, 0  ;;  %v2312_v9 = vld [vmem:[%s2449_s23 + $0x48] sm:$0xff] }
  0x22   : > { %746 = vrot.lane.b32.xlu0 %v2527_v18, %s2379_s24  ;;  %v2542_v24 = vsel %vm551_vm3, %v618_v13, %v622_v10  ;;  %v589_v25 = vshrl.u32 %v2531_v19, 16  ;;  %v591_v26 = vshll.u32 %v2531_v19, 16  ;;  %v2548_v27 = vsel %vm2425_vm2, 0, %v409_v15 }
  0x23   : > { %v598_v28 = vrot.slane %v596_v20, 1  ;;  %v625_v29 = vshrl.u32 %v2548_v27, 16  ;;  %v627_v30 = vshll.u32 %v2548_v27, 16  ;;  %v632_v31 = vshll.u32 %v2536_v22, 16 }
  0x24   : > { %v593_v33 = vrot.slane %v591_v26, 1  ;;  %v418_v35 = vshrl.u32 %v2310_v16, 16  ;;  %v421_v37 = vshll.u32 %v2310_v16, 16  ;;  %v411_v38 = vshrl.u32 %v2309_v17, 16 }
  0x25   : > { %v629_v39 = vrot.slane %v627_v30, 1  ;;  %v634_v43 = vrot.slane %v632_v31, 1  ;;  %v414_v44 = vshll.u32 %v2309_v17, 16  ;;  %v425_v45 = vshrl.u32 %v2311_v23, 16 }
  0x26   : > { %v594_v46 = vor.u32 %v593_v33, %v589_v25  ;;  %v420_v47 = vrot.slane %v418_v35, 7  ;;  %v413_v48 = vrot.slane %v411_v38, 7  ;;  %v428_v49 = vshll.u32 %v2311_v23, 16  ;;  %v2314_v25 = vld [vmem:[%s2449_s23 + $0x58] sm:$0xff] }
  0x27   : > { %v630_v50 = vor.u32 %v629_v39, %v625_v29  ;;  %v427_v52 = vrot.slane %v425_v45, 7  ;;  %v439_v53 = vshrl.u32 %v2313_v32, 16  ;;  %v442_v54 = vshll.u32 %v2313_v32, 16 }
  0x28   : > { %754 = vrot.lane.b32.xlu2 %v2542_v24, %s2379_s24  ;;  %v2557_v55 = vsel %vm551_vm3, %v594_v46, %v598_v28  ;;  %v423_v57 = vor.u32 %v421_v37, %v420_v47  ;;  %v2561_v59 = vsel %vm2425_vm2, %v420_v47, 0  ;;  %v416_v60 = vor.u32 %v414_v44, %v413_v48 }
  0x29   : > { %750 = vrot.lane.b32.xlu1 %v2557_v55, %s2379_s24  ;;  %v2566_v61 = vsel %vm551_vm3, %v630_v50, %v634_v43  ;;  %v656_v62 = vshll.u32 %v2561_v59, 16  ;;  %v2571_v63 = vsel %vm2425_vm2, %v413_v48, 0  ;;  %v430_v0 = vor.u32 %v428_v49, %v427_v52  ;;  %v2316_v48 = vld [vmem:[%s2449_s23 + $0x68] sm:$0xff] }
  0x2a   : > { %756 = vrot.lane.b32.xlu0 %v2566_v61, %s2379_s24  ;;  %v2577_v1 = vsel %vm2425_vm2, 0, %v423_v57  ;;  %v2581_v5 = vsel %vm2425_vm2, 0, %v416_v60  ;;  %v644_v6 = vshll.u32 %v2571_v63, 16  ;;  %v2586_v7 = vsel %vm2425_vm2, %v427_v52, 0 }
  0x2b   : > { %v649_v10 = vshrl.u32 %v2577_v1, 16  ;;  %v651_v11 = vshll.u32 %v2577_v1, 16  ;;  %v658_v13 = vrot.slane %v656_v62, 1  ;;  %v637_v15 = vshrl.u32 %v2581_v5, 16 }
  0x2c   : > { %v639_v16 = vshll.u32 %v2581_v5, 16  ;;  %v646_v17 = vrot.slane %v644_v6, 1  ;;  %v2595_v20 = vsel %vm2425_vm2, 0, %v430_v0  ;;  %v668_v23 = vshll.u32 %v2586_v7, 16 }
  0x2d   : > { %v653_v26 = vrot.slane %v651_v11, 1  ;;  %v661_v28 = vshrl.u32 %v2595_v20, 16  ;;  %v663_v29 = vshll.u32 %v2595_v20, 16  ;;  %v441_v30 = vrot.slane %v439_v53, 7 }
  0x2e   : > { %v641_v31 = vrot.slane %v639_v16, 1  ;;  %v670_v32 = vrot.slane %v668_v23, 1  ;;  %v432_v33 = vshrl.u32 %v2312_v9, 16  ;;  %v435_v35 = vshll.u32 %v2312_v9, 16 }
  0x2f   : > { %v654_v37 = vor.u32 %v653_v26, %v649_v10  ;;  %v665_v38 = vrot.slane %v663_v29, 1  ;;  %v444_v39 = vor.u32 %v442_v54, %v441_v30  ;;  %v2603_v43 = vsel %vm2425_vm2, %v441_v30, 0  ;;  %v2315_v54 = vld [vmem:[%s2449_s23 + $0x60] sm:$0xff] }
  0x30   : > { %v642_v44 = vor.u32 %v641_v31, %v637_v15  ;;  %v692_v45 = vshll.u32 %v2603_v43, 16  ;;  %v434_v46 = vrot.slane %v432_v33, 7  ;;  %v446_v47 = vshrl.u32 %v2314_v25, 16 }
  0x31   : > { %v2608_v49 = vsel %vm551_vm3, %v654_v37, %v658_v13  ;;  %v666_v50 = vor.u32 %v665_v38, %v661_v28  ;;  %v2612_v52 = vsel %vm2425_vm2, 0, %v444_v39  ;;  %v449_v53 = vshll.u32 %v2314_v25, 16 }
  0x32   : > { %760 = vrot.lane.b32.xlu2 %v2608_v49, %s2379_s24  ;;  %v2618_v57 = vsel %vm551_vm3, %v642_v44, %v646_v17  ;;  %v685_v60 = vshrl.u32 %v2612_v52, 16  ;;  %v687_v62 = vshll.u32 %v2612_v52, 16  ;;  %v694_v0 = vrot.slane %v692_v45, 1 }
  0x33   : > { %758 = vrot.lane.b32.xlu1 %v2618_v57, %s2379_s24  ;;  %v2625_v6 = vsel %vm551_vm3, %v666_v50, %v670_v32  ;;  %v437_v9 = vor.u32 %v435_v35, %v434_v46  ;;  %v2629_v10 = vsel %vm2425_vm2, %v434_v46, 0  ;;  %v448_v11 = vrot.slane %v446_v47, 7 }
  0x34   : > { %762 = vrot.lane.b32.xlu0 %v2625_v6, %s2379_s24  ;;  %v689_v13 = vrot.slane %v687_v62, 1  ;;  %v680_v15 = vshll.u32 %v2629_v10, 16  ;;  %v460_v16 = vshrl.u32 %v2316_v48, 16  ;;  %v463_v17 = vshll.u32 %v2316_v48, 16 }
  0x35   : > { %v2636_v23 = vsel %vm2425_vm2, 0, %v437_v9  ;;  %v451_v25 = vor.u32 %v449_v53, %v448_v11  ;;  %v2640_v26 = vsel %vm2425_vm2, %v448_v11, 0  ;;  %v453_v28 = vshrl.u32 %v2315_v54, 16 }
  0x36   : > { %v690_v29 = vor.u32 %v689_v13, %v685_v60  ;;  %v673_v30 = vshrl.u32 %v2636_v23, 16  ;;  %v675_v31 = vshll.u32 %v2636_v23, 16  ;;  %v682_v32 = vrot.slane %v680_v15, 1 }
  0x37   : > { %v2646_v33 = vsel %vm2425_vm2, 0, %v451_v25  ;;  %v704_v35 = vshll.u32 %v2640_v26, 16  ;;  %v462_v37 = vrot.slane %v460_v16, 7  ;;  %v455_v38 = vrot.slane %v453_v28, 7 }
  0x38   : > { %v2650_v39 = vsel %vm551_vm3, %v690_v29, %v694_v0  ;;  %v677_v44 = vrot.slane %v675_v31, 1  ;;  %v697_v45 = vshrl.u32 %v2646_v33, 16  ;;  %v699_v46 = vshll.u32 %v2646_v33, 16 }
  0x39   : > { %v706_v47 = vrot.slane %v704_v35, 1  ;;  %v465_v48 = vor.u32 %v463_v17, %v462_v37  ;;  %v2656_v50 = vsel %vm2425_vm2, %v462_v37, 0  ;;  %v456_v53 = vshll.u32 %v2315_v54, 16 }
  0x3a   : > { %766 = vrot.lane.b32.xlu2 %v2650_v39, %s2379_s24  ;;  %v678_v60 = vor.u32 %v677_v44, %v673_v30  ;;  %v701_v62 = vrot.slane %v699_v46, 1  ;;  %v728_v0 = vshll.u32 %v2656_v50, 16  ;;  %v2663_v9 = vsel %vm2425_vm2, %v455_v38, 0 }
  0x3b   : > { %v2667_v11 = vsel %vm2425_vm2, 0, %v465_v48  ;;  %v458_v13 = vor.u32 %v456_v53, %v455_v38  ;;  %v716_v15 = vshll.u32 %v2663_v9, 16  ;;  %v810_v46 = vrot.slane %v2435_v4, 1 }
  0x3c   : > { %v2671_v54 = vsel %vm551_vm3, %v678_v60, %v682_v32  ;;  %v702_v16 = vor.u32 %v701_v62, %v697_v45  ;;  %v721_v17 = vshrl.u32 %v2667_v11, 16  ;;  %v723_v25 = vshll.u32 %v2667_v11, 16 }
  0x3d   : > { %764 = vrot.lane.b32.xlu1 %v2671_v54, %s2379_s24  ;;  %v730_v28 = vrot.slane %v728_v0, 1  ;;  %v2679_v29 = vsel %vm2425_vm2, 0, %v458_v13  ;;  %v718_v37 = vrot.slane %v716_v15, 1  ;;  %v809_v45 = vrot.slane %v2431_v3, 1 }
  0x3e   : > { %v2682_v30 = vsel %vm551_vm3, %v702_v16, %v706_v47  ;;  %v725_v31 = vrot.slane %v723_v25, 1  ;;  %v709_v32 = vshrl.u32 %v2679_v29, 16  ;;  %v711_v35 = vshll.u32 %v2679_v29, 16 }
  0x3f   : > { %768 = vrot.lane.b32.xlu0 %v2682_v30, %s2379_s24  ;;  %v2699_v60 = vsel %vm808_vm4, %v809_v45, %v810_v46  ;;  %v812_v4 = vrot.slane %v2494_v51, 1  ;;  %v813_v62 = vrot.slane %v2477_v40, 1  ;;  %v815_v13 = vrot.slane %v2485_v42, 1 }
  0x40   : > { %v726_v38 = vor.u32 %v725_v31, %v721_v17  ;;  %v713_v44 = vrot.slane %v711_v35, 1  ;;  %v816_v15 = vrot.slane %v2471_v36, 1  ;;  %v833_v36 = vrot.slane %v2577_v1, 1 }
  0x41   : > { %v814_v0 = vsel %vm808_vm4, %v812_v4, %v813_v62  ;;  %v818_v16 = vrot.slane %v2531_v19, 1  ;;  %v819_v17 = vrot.slane %v2520_v14, 1  ;;  %v840_v31 = vrot.slane %v2629_v10, 1  ;;  %v2260_v10 = vld [vmem:[%s3676_s1 + $0x70] sm:$0xf] }
  0x42   : > { %v2691_v48 = vsel %vm551_vm3, %v726_v38, %v730_v28  ;;  %v714_v47 = vor.u32 %v713_v44, %v709_v32  ;;  %v817_v40 = vsel %vm808_vm4, %v815_v13, %v816_v15  ;;  %v837_v28 = vrot.slane %v2586_v7, 1  ;;  %v2334_v38 = vld [vmem:[%s3676_s1 + $0x74] sm:$0xf0]  ;;  %v2333_v44 = vld [vmem:[%s3676_s1 + $0x74] sm:$0xf] }
  0x43   : > { %772 = vrot.lane.b32.xlu2 %v2691_v48, %s2379_s24  ;;  %v839_v7 = vrot.slane %v2636_v23, 1  ;;  %v822_v45 = vrot.slane %v2467_v34, 1  ;;  %v2261_v46 = vor.u32 %v2334_v38, %v2260_v10  ;;  %v2252_v34 = vld [vmem:[%s3676_s1 + $0x60] sm:$0xf]  ;;  %v2332_v15 = vld [vmem:[%s3676_s1 + $0x64] sm:$0xf0] }
  0x44   : > { %v2696_v53 = vsel %vm551_vm3, %v714_v47, %v718_v37  ;;  %v2262_v47 = vld [vmem:[%s3676_s1 + $0x78] sm:$0xf0]  ;;  %vm1362_vm13 = vcmask 293888   ;;  %vm1910_vm14 = vcmask 60416   ;;  %vm1774_vm15 = vcmask 57344  }
  0x45   : > { %770 = vrot.lane.b32.xlu1 %v2696_v53, %s2379_s24  ;;  %v2764_v35 = vsel %vm808_vm4, %v839_v7, %v840_v31  ;;  %v2265_v4 = vor.u32 %v2333_v44, %v2262_v47  ;;  %1491 = vmatpush.bf16.msra.mxu0 %v2261_v46  ;;  %v2246_v10 = vld [vmem:[%s3676_s1 + $0x58] sm:$0xf0]  ;;  %v2327_v47 = vld [vmem:[%s3676_s1 + $0x44] sm:$0xf] }
  0x46   : > { %2335 = vmatpush.bf16.msra.mxu2 %v2261_v46  ;;  %v2328_v46 = vld [vmem:[%s3676_s1 + $0x44] sm:$0xf0] }
  0x47   : > { %857 = vrot.lane.b32.xlu0 %v2699_v60, %s2380_s25  ;;  %1580 = vmatpush.bf16.msra.mxu1 %v2265_v4 }
  0x48   : > { %2343 = vmatpush.bf16.msra.mxu3 %v2265_v4 }
  0x4b   : > { %934 = vrot.lane.b32.xlu2 %v2527_v18, %s2381_s26  ;;  %v834_v18 = vrot.slane %v2561_v59, 1  ;;  %v836_v59 = vrot.slane %v2595_v20, 1 }
  0x4d   : > { %890 = vrot.lane.b32.xlu1 %v2494_v51, %s2382_s27  ;;  %v2736_v25 = vsel %vm808_vm4, %v833_v36, %v834_v18  ;;  %v2750_v14 = vsel %vm808_vm4, %v836_v59, %v837_v28  ;;  %v2253_v36 = vor.u32 %v2332_v15, %v2252_v34  ;;  %v2254_v18 = vld [vmem:[%s3676_s1 + $0x68] sm:$0xf0]  ;;  %v2330_v59 = vld [vmem:[%s3676_s1 + $0x54] sm:$0xf0]  ;;  %v2329_v28 = vld [vmem:[%s3676_s1 + $0x54] sm:$0xf] }
  0x4e   : > { %v2238_v34 = vld [vmem:[%s3676_s1 + $0x48] sm:$0xf0]  ;;  %v2228_v15 = vld [vmem:[%s3676_s1 + $0x30] sm:$0xf] }
  0x4f   : > { %970 = vrot.lane.b32.xlu0 %v814_v0, %s2383_s28  ;;  %1492 = vmatpush.bf16.msra.mxu0 %v2253_v36 }
  0x50   : > { %2336 = vmatpush.bf16.msra.mxu2 %v2253_v36  ;;  %v2325_v36 = vld [vmem:[%s3676_s1 + $0x34] sm:$0xf] }
  0x53   : > { %1034 = vrot.lane.b32.xlu2 %v2516_v12, %s2384_s29 }
  0x55   : > { %1002 = vrot.lane.b32.xlu1 %v2485_v42, %s2385_s30 }
  0x57   : > { %1066 = vrot.lane.b32.xlu0 %v817_v40, %s2386_s6 }
  0x5b   : > { %892 = vrot.lane.b32.xlu2 %v2485_v42, %s2382_s27 }
  0x5d   : > { %859 = vrot.lane.b32.xlu1 %v814_v0, %s2380_s25 }
  0x5f   : > { %936 = vrot.lane.b32.xlu0 %v2516_v12, %s2381_s26  ;;  %v2739_v12 = vsel %vm808_vm4, %v818_v16, %v819_v17  ;;  %v2244_v17 = vld [vmem:[%s3676_s1 + $0x50] sm:$0xf] }
  0x60   : > { %v2245_v31 = vor.u32 %v2330_v59, %v2244_v17  ;;  %v2230_v17 = vld [vmem:[%s3676_s1 + $0x38] sm:$0xf0]  ;;  %v842_v59 = vrot.slane %v2612_v52, 1 }
  0x62   : > { %1493 = vmatpush.bf16.msra.mxu0 %v2245_v31  ;;  %2337 = vmatpush.bf16.msra.mxu2 %v2245_v31  ;;  %v2233_v31 = vor.u32 %v2325_v36, %v2230_v17  ;;  %v2321_v36 = vld [vmem:[%s3676_s1 + $0x14] sm:$0xf]  ;;  %v2214_v17 = vld [vmem:[%s3676_s1 + $0x18] sm:$0xf0] }
  0x63   : > { %1004 = vrot.lane.b32.xlu2 %v2531_v19, %s2385_s30 }
  0x65   : > { %972 = vrot.lane.b32.xlu1 %v817_v40, %s2383_s28 }
  0x67   : > { %1036 = vrot.lane.b32.xlu0 %v2557_v55, %s2384_s29 }
  0x6b   : > { %873 = vrot.lane.b32.xlu2 %v2736_v25, %s2380_s25 }
  0x6d   : > { %1068 = vrot.lane.b32.xlu1 %v2739_v12, %s2386_s6 }
  0x6f   : > { %906 = vrot.lane.b32.xlu0 %v2595_v20, %s2382_s27 }
  0x73   : > { %986 = vrot.lane.b32.xlu2 %v2750_v14, %s2383_s28 }
  0x75   : > { %950 = vrot.lane.b32.xlu1 %v2625_v6, %s2381_s26 }
  0x77   : > { %1018 = vrot.lane.b32.xlu0 %v2636_v23, %s2385_s30 }
  0x7a   : > { %v2760_v32 = vpop.permute.xlu2 %752 }
  0x7b   : > { %861 = vrot.lane.b32.xlu2 %v817_v40, %s2380_s25  ;;  %v2331_v40 = vld [vmem:[%s3676_s1 + $0x64] sm:$0xf] }
  0x7c   : > { %v2257_v16 = vor.u32 %v2331_v40, %v2254_v18  ;;  %v2326_v40 = vld [vmem:[%s3676_s1 + $0x34] sm:$0xf0] }
  0x7d   : > { %1050 = vrot.lane.b32.xlu1 %v2671_v54, %s2384_s29 }
  0x7e   : > { %1581 = vmatpush.bf16.msra.mxu1 %v2257_v16  ;;  %2344 = vmatpush.bf16.msra.mxu3 %v2257_v16  ;;  %v2229_v16 = vor.u32 %v2326_v40, %v2228_v15  ;;  %v2212_v15 = vld [vmem:[%s3676_s1 + $0x10] sm:$0xf]  ;;  %v2322_v40 = vld [vmem:[%s3676_s1 + $0x14] sm:$0xf0] }
  0x7f   : > { %1082 = vrot.lane.b32.xlu0 %v2764_v35, %s2386_s6 }
  0x82   : > { %v2770_v37 = vpop.permute.xlu2 %754 }
  0x83   : > { %938 = vrot.lane.b32.xlu2 %v2557_v55, %s2381_s26  ;;  %v821_v55 = vrot.slane %v2481_v41, 1 }
  0x85   : > { %894 = vrot.lane.b32.xlu1 %v2531_v19, %s2382_s27  ;;  %v2797_v0 = vsel %vm808_vm4, %v821_v55, %v822_v45  ;;  %v2249_v55 = vor.u32 %v2329_v28, %v2246_v10  ;;  %v2236_v45 = vld [vmem:[%s3676_s1 + $0x40] sm:$0xf]  ;;  %v843_v28 = vrot.slane %v2603_v43, 1  ;;  %v2324_v43 = vld [vmem:[%s3676_s1 + $0x24] sm:$0xf0] }
  0x86   : > { %v2237_v4 = vor.u32 %v2328_v46, %v2236_v45  ;;  %v2220_v45 = vld [vmem:[%s3676_s1 + $0x20] sm:$0xf] }
  0x87   : > { %974 = vrot.lane.b32.xlu0 %v2739_v12, %s2383_s28  ;;  %1582 = vmatpush.bf16.msra.mxu1 %v2249_v55  ;;  %v2886_v46 = vsel %vm808_vm4, %v842_v59, %v843_v28  ;;  %v2217_v59 = vor.u32 %v2321_v36, %v2214_v17 }
  0x88   : > { %v2792_v62 = vpop.permute.xlu0 %744  ;;  %2345 = vmatpush.bf16.msra.mxu3 %v2249_v55  ;;  %1494 = vmatpush.bf16.msra.mxu0 %v2237_v4 }
  0x89   : > { %2338 = vmatpush.bf16.msra.mxu2 %v2237_v4  ;;  %v2323_v4 = vld [vmem:[%s3676_s1 + $0x24] sm:$0xf] }
  0x8b   : > { %1038 = vrot.lane.b32.xlu2 %v2511_v8, %s2384_s29 }
  0x8c   : > { %v2799_v13 = vpop.permute.xlu2 %760  ;;  %1495 = vmatpush.bf16.msra.mxu0 %v2229_v16 }
  0x8d   : > { %1006 = vrot.lane.b32.xlu1 %v2481_v41, %s2385_s30  ;;  %2339 = vmatpush.bf16.msra.mxu2 %v2229_v16  ;;  %v2213_v16 = vor.u32 %v2322_v40, %v2212_v15  ;;  %v824_v15 = vrot.slane %v2500_v56, 1  ;;  %v825_v40 = vrot.slane %v2504_v58, 1 }
  0x8f   : > { %1070 = vrot.lane.b32.xlu0 %v2797_v0, %s2386_s6  ;;  %v2939_v17 = vsel %vm808_vm4, %v824_v15, %v825_v40  ;;  %v845_v15 = vrot.slane %v2646_v33, 1  ;;  %v846_v40 = vrot.slane %v2640_v26, 1 }
  0x93   : > { %908 = vrot.lane.b32.xlu2 %v2636_v23, %s2382_s27  ;;  %v2828_v7 = vpop.permute.xlu1 %748 }
  0x94   : > { %v2833_v38 = vpop.permute.xlu2 %766  ;;  %v2835_v44 = vpop.permute.xlu0 %746 }
  0x95   : > { %875 = vrot.lane.b32.xlu1 %v2750_v14, %s2380_s25 }
  0x97   : > { %952 = vrot.lane.b32.xlu0 %v2671_v54, %s2381_s26  ;;  %v2241_v54 = vor.u32 %v2327_v47, %v2238_v34  ;;  %v2221_v47 = vor.u32 %v2324_v43, %v2220_v45  ;;  %v2222_v34 = vld [vmem:[%s3676_s1 + $0x28] sm:$0xf0]  ;;  %v2204_v43 = vld [vmem:[%s3676_s1] sm:$0xf] }
  0x99   : > { %1583 = vmatpush.bf16.msra.mxu1 %v2241_v54  ;;  %2346 = vmatpush.bf16.msra.mxu3 %v2241_v54  ;;  %v2225_v54 = vor.u32 %v2323_v4, %v2222_v34  ;;  %v2319_v4 = vld [vmem:[%s3676_s1 + $0x4] sm:$0xf]  ;;  %v2206_v34 = vld [vmem:[%s3676_s1 + $0x8] sm:$0xf0] }
  0x9a   : > { %1496 = vmatpush.bf16.msra.mxu0 %v2221_v47  ;;  %2340 = vmatpush.bf16.msra.mxu2 %v2221_v47  ;;  %v2320_v47 = vld [vmem:[%s3676_s1 + $0x4] sm:$0xf0] }
  0x9b   : > { %1020 = vrot.lane.b32.xlu2 %v2612_v52, %s2385_s30  ;;  %v2864_v18 = vpop.permute.xlu1 %750 }
  0x9c   : > { %v2875_v55 = vpop.permute.xlu0 %756 }
  0x9d   : > { %988 = vrot.lane.b32.xlu1 %v2764_v35, %s2383_s28  ;;  %v2873_v10 = vpop.permute.xlu2 %772  ;;  %1584 = vmatpush.bf16.msra.mxu1 %v2233_v31 }
  0x9e   : > { %3683 = vst [vmem:[#allocation2_spill] sm:$0xff] %v2873_v10  ;;  %2347 = vmatpush.bf16.msra.mxu3 %v2233_v31  ;;  %1497 = vmatpush.bf16.msra.mxu0 %v2213_v16  ;;  %v2976_v10 = vsel %vm808_vm4, %v845_v15, %v846_v40 }
  0x9f   : > { %1052 = vrot.lane.b32.xlu0 %v2650_v39, %s2384_s29  ;;  %2341 = vmatpush.bf16.msra.mxu2 %v2213_v16 }
  0xa1   : > { %1585 = vmatpush.bf16.msra.mxu1 %v2225_v54 }
  0xa2   : > { %2348 = vmatpush.bf16.msra.mxu3 %v2225_v54  ;;  %v2209_v54 = vor.u32 %v2319_v4, %v2206_v34 }
  0xa3   : > { %1084 = vrot.lane.b32.xlu2 %v2886_v46, %s2386_s6 }
  0xa5   : > { %863 = vrot.lane.b32.xlu1 %v2739_v12, %s2380_s25  ;;  %v2910_v28 = vpop.permute.xlu1 %758  ;;  %v935_v31 = vpop.permute.xlu2 %934  ;;  %1586 = vmatpush.bf16.msra.mxu1 %v2217_v59  ;;  %v2205_v12 = vor.u32 %v2320_v47, %v2204_v43 }
  0xa6   : > { %v2914_v45 = vpop.permute.xlu0 %762  ;;  %2349 = vmatpush.bf16.msra.mxu3 %v2217_v59 }
  0xa7   : > { %896 = vrot.lane.b32.xlu0 %v2481_v41, %s2382_s27  ;;  %1498 = vmatpush.bf16.msra.mxu0 %v2205_v12 }
  0xa8   : > { %2342 = vmatpush.bf16.msra.mxu2 %v2205_v12  ;;  %v1100_v12 = vsel %vm1098_vm5, %v2431_v3, %v2792_v62 }
  0xa9   : > { %1587 = vmatpush.bf16.msra.mxu1 %v2209_v54 }
  0xaa   : > { %2350 = vmatpush.bf16.msra.mxu3 %v2209_v54 }
  0xab   : > { %976 = vrot.lane.b32.xlu2 %v2797_v0, %s2383_s28 }
  0xad   : > { %940 = vrot.lane.b32.xlu1 %v2511_v8, %s2381_s26  ;;  %v1035_v36 = vpop.permute.xlu2 %1034 }
  0xaf   : > { %1008 = vrot.lane.b32.xlu0 %v2500_v56, %s2385_s30  ;;  %v2936_v16 = vpop.permute.xlu1 %764 }
  0xb1   : > { %v2941_v59 = vpop.permute.xlu0 %768 }
  0xb3   : > { %1072 = vrot.lane.b32.xlu2 %v2939_v17, %s2386_s6 }
  0xb5   : > { %1040 = vrot.lane.b32.xlu1 %v2542_v24, %s2384_s29  ;;  %v893_v58 = vpop.permute.xlu2 %892 }
  0xb7   : > { %877 = vrot.lane.b32.xlu0 %v2764_v35, %s2380_s25  ;;  %v2949_v8 = vpop.permute.xlu1 %770 }
  0xb9   : > { %v858_v43 = vpop.permute.xlu0 %857 }
  0xba   : > { %v1133_v4 = vsel %vm1131_vm6, %v1100_v12, %v858_v43 }
  0xbb   : > { %954 = vrot.lane.b32.xlu2 %v2650_v39, %s2381_s26 }
  0xbd   : > { %910 = vrot.lane.b32.xlu1 %v2612_v52, %s2382_s27  ;;  %v1005_v47 = vpop.permute.xlu2 %1004 }
  0xbf   : > { %990 = vrot.lane.b32.xlu0 %v2886_v46, %s2383_s28  ;;  %v891_v35 = vpop.permute.xlu1 %890 }
  0xc0   : > { %v1166_v34 = vsel %vm1164_vm7, %v1133_v4, %v891_v35 }
  0xc1   : > { %v971_v39 = vpop.permute.xlu0 %970  ;;  %v1199_v54 = vsel %vm1197_vm8, %v1166_v34, %v935_v31 }
  0xc2   : > { %v1232_v43 = vsel %vm1230_vm9, %v1199_v54, %v971_v39 }
  0xc3   : > { %1054 = vrot.lane.b32.xlu2 %v2682_v30, %s2384_s29 }
  0xc5   : > { %1022 = vrot.lane.b32.xlu1 %v2646_v33, %s2385_s30  ;;  %v874_v62 = vpop.permute.xlu2 %873 }
  0xc7   : > { %865 = vrot.lane.b32.xlu0 %v2797_v0, %s2380_s25  ;;  %v1003_v12 = vpop.permute.xlu1 %1002 }
  0xc8   : > { %v1265_v31 = vsel %vm1263_vm10, %v1232_v43, %v1003_v12  ;;  %v827_v43 = vrot.slane %v2548_v27, 1 }
  0xc9   : > { %v1067_v35 = vpop.permute.xlu0 %1066  ;;  %v1298_v4 = vsel %vm1296_vm11, %v1265_v31, %v1035_v36  ;;  %v1102_v36 = vsel %vm1098_vm5, %v2494_v51, %v2835_v44 }
  0xca   : > { %v1331_v34 = vsel %vm1329_vm12, %v1298_v4, %v1067_v35 }
  0xcb   : > { %2266 = vmatmul.msk.bf16.vlgmr.msra.gmra.mxu0 %vm1362_vm13, %v1331_v34  ;;  %2282 = vmatmul.msk.bf16.vlgmr.msra.gmra.mxu1 %vm1362_vm13, %v1331_v34 }
  0xcc   : > { %898 = vrot.lane.b32.xlu2 %v2500_v56, %s2382_s27 }
  0xcd   : > { %1086 = vrot.lane.b32.xlu1 %v2976_v10, %s2386_s6  ;;  %v987_v26 = vpop.permute.xlu2 %986 }
  0xcf   : > { %942 = vrot.lane.b32.xlu0 %v2542_v24, %s2381_s26  ;;  %v860_v0 = vpop.permute.xlu1 %859  ;;  %v828_v24 = vrot.slane %v2536_v22, 1 }
  0xd0   : > { %v1135_v54 = vsel %vm1131_vm6, %v1102_v36, %v860_v0 }
  0xd1   : > { %v937_v39 = vpop.permute.xlu0 %936  ;;  %v1168_v15 = vsel %vm1164_vm7, %v1135_v54, %v893_v58  ;;  %v3002_v35 = vsel %vm808_vm4, %v827_v43, %v828_v24  ;;  %v848_v43 = vrot.slane %v2679_v29, 1  ;;  %v849_v24 = vrot.slane %v2663_v9, 1 }
  0xd2   : > { %v1201_v44 = vsel %vm1197_vm8, %v1168_v15, %v937_v39 }
  0xd4   : > { %1010 = vrot.lane.b32.xlu2 %v2548_v27, %s2385_s30 }
  0xd5   : > { %978 = vrot.lane.b32.xlu1 %v2939_v17, %s2383_s28  ;;  %v862_v40 = vpop.permute.xlu2 %861 }
  0xd7   : > { %1042 = vrot.lane.b32.xlu0 %v2566_v61, %s2384_s29  ;;  %v973_v51 = vpop.permute.xlu1 %972 }
  0xd8   : > { %v1234_v12 = vsel %vm1230_vm9, %v1201_v44, %v973_v51 }
  0xd9   : > { %v1037_v31 = vpop.permute.xlu0 %1036  ;;  %v1267_v58 = vsel %vm1263_vm10, %v1234_v12, %v1005_v47  ;;  %v1116_v47 = vsel %vm1098_vm5, %v2577_v1, %v2799_v13  ;;  %v3033_v13 = vsel %vm808_vm4, %v848_v43, %v849_v24 }
  0xda   : > { %v1300_v4 = vsel %vm1296_vm11, %v1267_v58, %v1037_v31  ;;  %v1149_v39 = vsel %vm1131_vm6, %v1116_v47, %v874_v62  ;;  %v831_v47 = vrot.slane %v2571_v63, 1 }
  0xdc   : > { %879 = vrot.lane.b32.xlu2 %v2886_v46, %s2380_s25 }
  0xdd   : > { %1074 = vrot.lane.b32.xlu1 %v3002_v35, %s2386_s6  ;;  %v939_v22 = vpop.permute.xlu2 %938 }
  0xdf   : > { %912 = vrot.lane.b32.xlu0 %v2646_v33, %s2382_s27  ;;  %v1069_v34 = vpop.permute.xlu1 %1068 }
  0xe0   : > { %v1333_v0 = vsel %vm1329_vm12, %v1300_v4, %v1069_v34  ;;  %v1104_v4 = vsel %vm1098_vm5, %v2485_v42, %v2828_v7 }
  0xe1   : > { %v907_v36 = vpop.permute.xlu0 %906  ;;  %2267 = vmatmul.msk.bf16.gmra.mxu0 %vm1362_vm13, %v1333_v0  ;;  %2283 = vmatmul.msk.bf16.gmra.mxu1 %vm1362_vm13, %v1333_v0  ;;  %v1137_v0 = vsel %vm1131_vm6, %v1104_v4, %v862_v40 }
  0xe2   : > { %v1182_v15 = vsel %vm1164_vm7, %v1149_v39, %v907_v36  ;;  %v830_v36 = vrot.slane %v2581_v5, 1 }
  0xe4   : > { %992 = vrot.lane.b32.xlu2 %v2976_v10, %s2383_s28  ;;  %v3061_v42 = vsel %vm808_vm4, %v830_v36, %v831_v47  ;;  %v2317_v47 = vld [vmem:[%s2449_s23 + $0x70] sm:$0xff] }
  0xe5   : > { %956 = vrot.lane.b32.xlu1 %v2682_v30, %s2381_s26  ;;  %v1039_v46 = vpop.permute.xlu2 %1038 }
  0xe7   : > { %1024 = vrot.lane.b32.xlu0 %v2679_v29, %s2385_s30  ;;  %v951_v54 = vpop.permute.xlu1 %950 }
  0xe8   : > { %v1215_v51 = vsel %vm1197_vm8, %v1182_v15, %v951_v54 }
  0xe9   : > { %v1019_v30 = vpop.permute.xlu0 %1018  ;;  %v1248_v44 = vsel %vm1230_vm9, %v1215_v51, %v987_v26 }
  0xea   : > { %v1281_v12 = vsel %vm1263_vm10, %v1248_v44, %v1019_v30 }
  0xec   : > { %867 = vrot.lane.b32.xlu2 %v2939_v17, %s2380_s25 }
  0xed   : > { %1056 = vrot.lane.b32.xlu1 %v2696_v53, %s2384_s29  ;;  %v909_v62 = vpop.permute.xlu2 %908 }
  0xef   : > { %1088 = vrot.lane.b32.xlu0 %v3033_v13, %s2386_s6  ;;  %v1051_v9 = vpop.permute.xlu1 %1050 }
  0xf0   : > { %v1314_v31 = vsel %vm1296_vm11, %v1281_v12, %v1051_v9 }
  0xf1   : > { %v1083_v58 = vpop.permute.xlu0 %1082 }
  0xf2   : > { %v1347_v26 = vsel %vm1329_vm12, %v1314_v31, %v1083_v58  ;;  %v852_v31 = vrot.slane %v2656_v50, 1 }
  0xf3   : > { %2274 = vmatmul.msk.bf16.vlgmr.msra.gmra.mxu2 %vm1362_vm13, %v1347_v26  ;;  %2290 = vmatmul.msk.bf16.vlgmr.msra.gmra.mxu3 %vm1362_vm13, %v1347_v26 }
  0xf4   : > { %944 = vrot.lane.b32.xlu2 %v2566_v61, %s2381_s26 }
  0xf5   : > { %900 = vrot.lane.b32.xlu1 %v2548_v27, %s2382_s27  ;;  %v1021_v17 = vpop.permute.xlu2 %1020 }
  0xf7   : > { %980 = vrot.lane.b32.xlu0 %v3002_v35, %s2383_s28  ;;  %v895_v34 = vpop.permute.xlu1 %894 }
  0xf8   : > { %v1170_v61 = vsel %vm1164_vm7, %v1137_v0, %v895_v34 }
  0xf9   : > { %v975_v39 = vpop.permute.xlu0 %974  ;;  %v1203_v54 = vsel %vm1197_vm8, %v1170_v61, %v939_v22  ;;  %v467_v61 = vshrl.u32 %v2317_v47, 16 }
  0xfa   : > { %v1236_v40 = vsel %vm1230_vm9, %v1203_v54, %v975_v39 }
  0xfb   : > { %v469_v54 = vrot.slane %v467_v61, 7 }
  0xfc   : > { %1044 = vrot.lane.b32.xlu2 %v2618_v57, %s2384_s29 }
  0xfd   : > { %1012 = vrot.lane.b32.xlu1 %v2581_v5, %s2385_s30  ;;  %v1085_v7 = vpop.permute.xlu2 %1084 }
  0xff   : > { %1076 = vrot.lane.b32.xlu0 %v3061_v42, %s2386_s6  ;;  %v1007_v63 = vpop.permute.xlu1 %1006 }
 0x100   : > { %v1269_v15 = vsel %vm1263_vm10, %v1236_v40, %v1007_v63  ;;  %v1106_v40 = vsel %vm1098_vm5, %v2531_v19, %v2864_v18 }
 0x101   : > { %v1071_v43 = vpop.permute.xlu0 %1070  ;;  %v1302_v22 = vsel %vm1296_vm11, %v1269_v15, %v1039_v46  ;;  %v1118_v46 = vsel %vm1098_vm5, %v2595_v20, %v2914_v45 }
 0x102   : > { %v1335_v24 = vsel %vm1329_vm12, %v1302_v22, %v1071_v43 }
 0x103   : > { %2268 = vmatmul.msk.bf16.gmra.mxu0 %vm1362_vm13, %v1335_v24  ;;  %2284 = vmatmul.msk.bf16.gmra.mxu1 %vm1362_vm13, %v1335_v24 }
 0x104   : > { %914 = vrot.lane.b32.xlu2 %v2679_v29, %s2382_s27 }
 0x105   : > { %881 = vrot.lane.b32.xlu1 %v2976_v10, %s2380_s25  ;;  %v977_v51 = vpop.permute.xlu2 %976 }
 0x107   : > { %958 = vrot.lane.b32.xlu0 %v2696_v53, %s2381_s26  ;;  %v876_v30 = vpop.permute.xlu1 %875  ;;  %v851_v53 = vrot.slane %v2667_v11, 1 }
 0x108   : > { %v1151_v44 = vsel %vm1131_vm6, %v1118_v46, %v876_v30 }
 0x109   : > { %v953_v12 = vpop.permute.xlu0 %952  ;;  %v1184_v9 = vsel %vm1164_vm7, %v1151_v44, %v909_v62  ;;  %v3097_v0 = vsel %vm808_vm4, %v851_v53, %v852_v31 }
 0x10a   : > { %v1217_v58 = vsel %vm1197_vm8, %v1184_v9, %v953_v12  ;;  %v549_v9 = vsel %vm2425_vm2, %v469_v54, 0 }
 0x10c   : > { %1026 = vrot.lane.b32.xlu2 %v2667_v11, %s2385_s30 }
 0x10d   : > { %994 = vrot.lane.b32.xlu1 %v3033_v13, %s2383_s28  ;;  %v1073_v10 = vpop.permute.xlu2 %1072 }
 0x10f   : > { %1058 = vrot.lane.b32.xlu0 %v2691_v48, %s2384_s29  ;;  %v989_v45 = vpop.permute.xlu1 %988 }
 0x110   : > { %v1250_v26 = vsel %vm1230_vm9, %v1217_v58, %v989_v45 }
 0x111   : > { %v1283_v62 = vsel %vm1263_vm10, %v1250_v26, %v1021_v17  ;;  %v1053_v4 = vpop.permute.xlu0 %1052  ;;  %v740_v26 = vshll.u32 %v549_v9, 16 }
 0x112   : > { %v1316_v34 = vsel %vm1296_vm11, %v1283_v62, %v1053_v4 }
 0x113   : > { %v1349_v36 = vsel %vm1329_vm12, %v1316_v34, %v1085_v7  ;;  %v470_v7 = vshll.u32 %v2317_v47, 16  ;;  %v742_v4 = vrot.slane %v740_v26, 1  ;;  %v1120_v47 = vsel %vm1098_vm5, %v2636_v23, %v2936_v16 }
 0x114   : > { %2275 = vmatmul.msk.bf16.gmra.mxu2 %vm1362_vm13, %v1349_v36  ;;  %2291 = vmatmul.msk.bf16.gmra.mxu3 %vm1362_vm13, %v1349_v36 }
 0x115   : > { %869 = vrot.lane.b32.xlu1 %v3002_v35, %s2380_s25  ;;  %1090 = vrot.lane.b32.xlu2 %v3097_v0, %s2386_s6  ;;  %v955_v50 = vpop.permute.xlu2 %954  ;;  %v472_v43 = vor.u32 %v470_v7, %v469_v54  ;;  %v855_v54 = vrot.slane %v549_v9, 1 }
 0x117   : > { %902 = vrot.lane.b32.xlu0 %v2581_v5, %s2382_s27  ;;  %v864_v17 = vpop.permute.xlu1 %863  ;;  %v3123_v19 = vsel %vm2425_vm2, 0, %v472_v43 }
 0x118   : > { %v1139_v63 = vsel %vm1131_vm6, %v1106_v40, %v864_v17  ;;  %v735_v46 = vshll.u32 %v3123_v19, 16  ;;  %v733_v58 = vshrl.u32 %v3123_v19, 16 }
 0x119   : > { %v897_v39 = vpop.permute.xlu0 %896 }
 0x11a   : > { %v1172_v22 = vsel %vm1164_vm7, %v1139_v63, %v897_v39  ;;  %v737_v45 = vrot.slane %v735_v46, 1  ;;  %v854_v39 = vrot.slane %v3123_v19, 1 }
 0x11c   : > { %v738_v62 = vor.u32 %v737_v45, %v733_v58  ;;  %v3166_v40 = vsel %vm808_vm4, %v854_v39, %v855_v54 }
 0x11d   : > { %946 = vrot.lane.b32.xlu1 %v2618_v57, %s2381_s26  ;;  %982 = vrot.lane.b32.xlu2 %v3061_v42, %s2383_s28  ;;  %v1055_v35 = vpop.permute.xlu2 %1054 }
 0x11e   : > { %v3148_v36 = vsel %vm551_vm3, %v738_v62, %v742_v4 }
 0x11f   : > { %1014 = vrot.lane.b32.xlu0 %v2577_v1, %s2385_s30  ;;  %v941_v15 = vpop.permute.xlu1 %940 }
 0x120   : > { %v1205_v24 = vsel %vm1197_vm8, %v1172_v22, %v941_v15  ;;  %v2318_v15 = vld [vmem:[%s2449_s23 + $0x78] sm:$0xff] }
 0x121   : > { %v1009_v30 = vpop.permute.xlu0 %1008  ;;  %v1238_v57 = vsel %vm1230_vm9, %v1205_v24, %v977_v51  ;;  %v474_v24 = vshrl.u32 %v2318_v15, 16 }
 0x122   : > { %v1271_v44 = vsel %vm1263_vm10, %v1238_v57, %v1009_v30 }
 0x123   : > { %v476_v46 = vrot.slane %v474_v24, 7 }
 0x125   : > { %1046 = vrot.lane.b32.xlu1 %v2608_v49, %s2384_s29  ;;  %1078 = vrot.lane.b32.xlu2 %v2736_v25, %s2386_s6 }
 0x126   : > { %v899_v18 = vpop.permute.xlu2 %898 }
 0x127   : > { %883 = vrot.lane.b32.xlu0 %v3033_v13, %s2380_s25  ;;  %v1041_v12 = vpop.permute.xlu1 %1040 }
 0x128   : > { %v1304_v51 = vsel %vm1296_vm11, %v1271_v44, %v1041_v12  ;;  %v477_v44 = vshll.u32 %v2318_v15, 16  ;;  %v3196_v12 = vld [vmem:[%s3677_s2] ss:$0 sm:$0xff] }
 0x129   : > { %v878_v53 = vpop.permute.xlu0 %877  ;;  %v1337_v31 = vsel %vm1329_vm12, %v1304_v51, %v1073_v10 }
 0x12a   : > { %2269 = vmatmul.msk.bf16.gmra.mxu0 %vm1362_vm13, %v1337_v31  ;;  %2285 = vmatmul.msk.bf16.gmra.mxu1 %vm1362_vm13, %v1337_v31  ;;  %v1153_v17 = vsel %vm1131_vm6, %v1120_v47, %v878_v53  ;;  %v479_v9 = vor.u32 %v477_v44, %v476_v46  ;;  %v550_v47 = vsel %vm2425_vm2, %v476_v46, 0 }
 0x12d   : > { %916 = vrot.lane.b32.xlu1 %v2667_v11, %s2382_s27  ;;  %960 = vrot.lane.b32.xlu2 %v2691_v48, %s2381_s26 }
 0x12e   : > { %v1011_v13 = vpop.permute.xlu2 %1010 }
 0x12f   : > { %996 = vrot.lane.b32.xlu0 %v3097_v0, %s2383_s28  ;;  %v911_v10 = vpop.permute.xlu1 %910 }
 0x130   : > { %v1186_v48 = vsel %vm1164_vm7, %v1153_v17, %v911_v10 }
 0x131   : > { %v991_v34 = vpop.permute.xlu0 %990  ;;  %v1219_v23 = vsel %vm1197_vm8, %v1186_v48, %v955_v50 }
 0x132   : > { %v1252_v63 = vsel %vm1230_vm9, %v1219_v23, %v991_v34 }
 0x135   : > { %1028 = vrot.lane.b32.xlu1 %v3123_v19, %s2385_s30  ;;  %1060 = vrot.lane.b32.xlu2 %v3148_v36, %s2384_s29 }
 0x136   : > { %v3159_v61 = vpop.permute.xlu2 %879 }
 0x137   : > { %871 = vrot.lane.b32.xlu0 %v3061_v42, %s2380_s25  ;;  %v1023_v7 = vpop.permute.xlu1 %1022 }
 0x138   : > { %v1285_v43 = vsel %vm1263_vm10, %v1252_v63, %v1023_v7 }
 0x139   : > { %v866_v16 = vpop.permute.xlu0 %865  ;;  %v1318_v50 = vsel %vm1296_vm11, %v1285_v43, %v1055_v35  ;;  %v930_v43 = vshll.u32 %v550_v47, 16 }
 0x13b   : > { %v932_v44 = vrot.slane %v930_v43, 1 }
 0x13d   : > { %1092 = vrot.lane.b32.xlu1 %v3166_v40, %s2386_s6  ;;  %904 = vrot.lane.b32.xlu2 %v2577_v1, %s2382_s27  ;;  %v1108_v1 = vsel %vm1098_vm5, %v2481_v41, %v2760_v32 }
 0x13e   : > { %v3175_v22 = vpop.permute.xlu2 %992 }
 0x13f   : > { %948 = vrot.lane.b32.xlu0 %v2608_v49, %s2381_s26  ;;  %v1087_v42 = vpop.permute.xlu1 %1086  ;;  %v1141_v49 = vsel %vm1131_vm6, %v1108_v1, %v866_v16 }
 0x140   : > { %v1351_v30 = vsel %vm1329_vm12, %v1318_v50, %v1087_v42  ;;  %v1174_v41 = vsel %vm1164_vm7, %v1141_v49, %v899_v18 }
 0x141   : > { %v943_v57 = vpop.permute.xlu0 %942  ;;  %2276 = vmatmul.msk.bf16.gmra.mxu2 %vm1362_vm13, %v1351_v30  ;;  %2292 = vmatmul.msk.bf16.gmra.mxu3 %vm1362_vm13, %v1351_v30 }
 0x145   : > { %984 = vrot.lane.b32.xlu1 %v2736_v25, %s2383_s28  ;;  %1016 = vrot.lane.b32.xlu2 %v2595_v20, %s2385_s30  ;;  %v1207_v25 = vsel %vm1197_vm8, %v1174_v41, %v943_v57  ;;  %v1122_v57 = vsel %vm1098_vm5, %v2612_v52, %v2833_v38 }
 0x146   : > { %v3191_v35 = vpop.permute.xlu2 %867  ;;  %v1155_v1 = vsel %vm1131_vm6, %v1122_v57, %v3159_v61 }
 0x147   : > { %1048 = vrot.lane.b32.xlu0 %v2625_v6, %s2384_s29  ;;  %v979_v32 = vpop.permute.xlu1 %978  ;;  %v3220_v6 = vsel %vm2425_vm2, 0, %v479_v9  ;;  %v968_v9 = vrot.slane %v550_v47, 1 }
 0x148   : > { %v1500_v20 = vpop.f32.mrf.mxu0  ;;  %v1589_v51 = vpop.f32.mrf.mxu1  ;;  %v1240_v53 = vsel %vm1230_vm9, %v1207_v25, %v979_v32  ;;  %v925_v4 = vshll.u32 %v3220_v6, 16  ;;  %v923_v63 = vshrl.u32 %v3220_v6, 16  ;;  %v967_v38 = vrot.slane %v3220_v6, 1 }
 0x149   : > { %v1043_v31 = vpop.permute.xlu0 %1042  ;;  %v1878_v18 = vpack.c.bf16 %v1500_v20, %v1500_v20  ;;  %v1673_v58 = vadd.f32 %v3196_v12, %v1589_v51  ;;  %v1273_v45 = vsel %vm1263_vm10, %v1240_v53, %v1011_v13  ;;  %v1776_v34 = vmul.f32 %v1500_v20, %v1500_v20 }
 0x14a   : > { %v1306_v10 = vsel %vm1296_vm11, %v1273_v45, %v1043_v31  ;;  %v927_v15 = vrot.slane %v925_v4, 1  ;;  %v969_v51 = vsel %vm808_vm4, %v967_v38, %v968_v9 }
 0x14b   : > { %1911 = vst.msk [vmem:[%s3206_s9] sm:$0xf] %vm1910_vm14, %v1878_v18  ;;  %v1943_v26 = vpack.c.bf16 %v1673_v58, %v1673_v58  ;;  %v1808_v42 = vsel %vm1131_vm6, %v1776_v34, 0.0 }
 0x14c   : > { %v928_v46 = vor.u32 %v927_v15, %v923_v63 }
 0x14d   : > { %1080 = vrot.lane.b32.xlu1 %v2750_v14, %s2386_s6  ;;  %885 = vrot.lane.b32.xlu2 %v3097_v0, %s2380_s25  ;;  %1975 = vst.msk [vmem:[%s3216_s12] sm:$0xf] %vm1910_vm14, %v1943_v26  ;;  %v1705_v14 = vsel %vm1131_vm6, %v1500_v20, 0.0 }
 0x14e   : > { %v3229_v62 = vpop.permute.xlu2 %944  ;;  %v933_v20 = vsel %vm551_vm3, %v928_v46, %v932_v44 }
 0x14f   : > { %918 = vrot.lane.b32.xlu0 %v3123_v19, %s2382_s27  ;;  %v1075_v13 = vpop.permute.xlu1 %1074 }
 0x150   : > { %v1502_v17 = vpop.f32.mrf.mxu0  ;;  %v1591_v0 = vpop.f32.mrf.mxu1  ;;  %v1339_v48 = vsel %vm1329_vm12, %v1306_v10, %v1075_v13 }
 0x151   : > { %v913_v39 = vpop.permute.xlu0 %912  ;;  %v1706_v54 = vsel %vm1131_vm6, %v1502_v17, 0.0  ;;  %v1777_v7 = vmul.f32 %v1502_v17, %v1502_v17  ;;  %v1879_v23 = vpack.c.bf16 %v1502_v17, %v1502_v17  ;;  %v1674_v16 = vadd.f32 %v3196_v12, %v1591_v0  ;;  %2270 = vmatmul.msk.bf16.gmra.mxu0 %vm1362_vm13, %v1339_v48  ;;  %2286 = vmatmul.msk.bf16.gmra.mxu1 %vm1362_vm13, %v1339_v48 }
 0x152   : > { %v1707_v2 = vadd.f32 %v1706_v54, %v1705_v14  ;;  %v1188_v49 = vsel %vm1164_vm7, %v1155_v1, %v913_v39 }
 0x153   : > { %v1809_v50 = vsel %vm1131_vm6, %v1777_v7, 0.0  ;;  %1912 = vst.msk [vmem:[%s3206_s9 + $0x4] sm:$0xf] %vm1910_vm14, %v1879_v23  ;;  %v1944_v24 = vpack.c.bf16 %v1674_v16, %v1674_v16 }
 0x154   : > { %v1810_v30 = vadd.f32 %v1809_v50, %v1808_v42 }
 0x155   : > { %1976 = vst.msk [vmem:[%s3216_s12 + $0x4] sm:$0xf] %vm1910_vm14, %v1944_v24  ;;  %962 = vrot.lane.b32.xlu1 %v3148_v36, %s2381_s26  ;;  %998 = vrot.lane.b32.xlu2 %v3166_v40, %s2383_s28 }
 0x156   : > { %v1045_v32 = vpop.permute.xlu2 %1044 }
 0x157   : > { %v957_v41 = vpop.permute.xlu1 %956  ;;  %1030 = vrot.lane.b32.xlu0 %v3220_v6, %s2385_s30 }
 0x158   : > { %v1221_v52 = vsel %vm1197_vm8, %v1188_v49, %v957_v41 }
 0x159   : > { %v1025_v25 = vpop.permute.xlu0 %1024  ;;  %v1254_v61 = vsel %vm1230_vm9, %v1221_v52, %v3175_v22  ;;  %v1124_v52 = vsel %vm1098_vm5, %v2646_v33, %v2941_v59 }
 0x15a   : > { %v1287_v53 = vsel %vm1263_vm10, %v1254_v61, %v1025_v25 }
 0x15d   : > { %1062 = vrot.lane.b32.xlu1 %v933_v20, %s2384_s29  ;;  %1094 = vrot.lane.b32.xlu2 %v969_v51, %s2386_s6 }
 0x15e   : > { %v1505_v31 = vpop.f32.mrf.mxu0  ;;  %v1594_v18 = vpop.f32.mrf.mxu1 }
 0x15f   : > { %v1708_v58 = vsel %vm1131_vm6, %v1505_v31, 0.0  ;;  %v1778_v45 = vmul.f32 %v1505_v31, %v1505_v31  ;;  %v1880_v26 = vpack.c.bf16 %v1505_v31, %v1505_v31  ;;  %v1675_v4 = vadd.f32 %v3196_v12, %v1594_v18  ;;  %v1057_v10 = vpop.permute.xlu1 %1056  ;;  %774 = vrot.lane.b32.xlu0 %v3148_v36, %s2379_s24  ;;  %v915_v14 = vpop.permute.xlu2 %914 }
 0x160   : > { %v1709_v22 = vadd.f32 %v1708_v58, %v1707_v2  ;;  %v1320_v34 = vsel %vm1296_vm11, %v1287_v53, %v1057_v10  ;;  %v1110_v36 = vsel %vm1098_vm5, %v2500_v56, %v2770_v37 }
 0x161   : > { %v1811_v13 = vsel %vm1131_vm6, %v1778_v45, 0.0  ;;  %1913 = vst.msk [vmem:[%s3206_s9 + $0x8] sm:$0xf] %vm1910_vm14, %v1880_v26  ;;  %v1945_v47 = vpack.c.bf16 %v1675_v4, %v1675_v4  ;;  %v1089_v17 = vpop.permute.xlu0 %1088 }
 0x162   : > { %v1812_v0 = vadd.f32 %v1811_v13, %v1810_v30  ;;  %v1353_v48 = vsel %vm1329_vm12, %v1320_v34, %v1089_v17 }
 0x163   : > { %1977 = vst.msk [vmem:[%s3216_s12 + $0x8] sm:$0xf] %vm1910_vm14, %v1945_v47  ;;  %2277 = vmatmul.msk.bf16.gmra.mxu2 %vm1362_vm13, %v1353_v48  ;;  %2293 = vmatmul.msk.bf16.gmra.mxu3 %vm1362_vm13, %v1353_v48 }
 0x165   : > { %887 = vrot.lane.b32.xlu1 %v3166_v40, %s2380_s25  ;;  %920 = vrot.lane.b32.xlu2 %v3220_v6, %s2382_s27  ;;  %v1143_v40 = vsel %vm1131_vm6, %v1110_v36, %v3191_v35  ;;  %s2137_s25 = sshll.u32 %s3686_s19, 1 }
 0x166   : > { %v1507_v39 = vpop.f32.mrf.mxu0  ;;  %v1596_v54 = vpop.f32.mrf.mxu1 }
 0x167   : > { %v1710_v7 = vsel %vm1131_vm6, %v1507_v39, 0.0  ;;  %v1779_v23 = vmul.f32 %v1507_v39, %v1507_v39  ;;  %v1881_v16 = vpack.c.bf16 %v1507_v39, %v1507_v39  ;;  %v1676_v2 = vadd.f32 %v3196_v12, %v1596_v54  ;;  %v901_v63 = vpop.permute.xlu1 %900  ;;  %964 = vrot.lane.b32.xlu0 %v933_v20, %s2381_s26  ;;  %v1027_v50 = vpop.permute.xlu2 %1026 }
 0x168   : > { %v1711_v6 = vadd.f32 %v1710_v7, %v1709_v22  ;;  %v1176_v37 = vsel %vm1164_vm7, %v1143_v40, %v901_v63 }
 0x169   : > { %v1813_v15 = vsel %vm1131_vm6, %v1779_v23, 0.0  ;;  %1914 = vst.msk [vmem:[%s3206_s9 + $0xc] sm:$0xf] %vm1910_vm14, %v1881_v16  ;;  %v1946_v56 = vpack.c.bf16 %v1676_v2, %v1676_v2  ;;  %v981_v43 = vpop.permute.xlu0 %980  ;;  %v1209_v24 = vsel %vm1197_vm8, %v1176_v37, %v3229_v62 }
 0x16a   : > { %v1814_v42 = vadd.f32 %v1813_v15, %v1812_v0  ;;  %v1242_v35 = vsel %vm1230_vm9, %v1209_v24, %v981_v43 }
 0x16b   : > { %1978 = vst.msk [vmem:[%s3216_s12 + $0xc] sm:$0xf] %vm1910_vm14, %v1946_v56 }
 0x16d   : > { %1000 = vrot.lane.b32.xlu1 %v969_v51, %s2383_s28  ;;  %1032 = vrot.lane.b32.xlu2 %v2431_v3, %s2385_s30  ;;  %s247_s28 = scalar_lea.vmem %s3680_s5, %s2137_s25 }
 0x16f   : > { %v1013_v30 = vpop.permute.xlu1 %1012  ;;  %1064 = vrot.lane.b32.xlu0 %v2460_v21, %s2384_s29  ;;  %v1091_v3 = vpop.permute.xlu2 %1090 }
 0x170   : > { %v1275_v57 = vsel %vm1263_vm10, %v1242_v35, %v1013_v30 }
 0x171   : > { %v1077_v1 = vpop.permute.xlu0 %1076  ;;  %v1308_v46 = vsel %vm1296_vm11, %v1275_v57, %v1045_v32 }
 0x172   : > { %v1341_v62 = vsel %vm1329_vm12, %v1308_v46, %v1077_v1 }
 0x173   : > { %2271 = vmatmul.msk.bf16.gmra.mxu0 %vm1362_vm13, %v1341_v62  ;;  %2287 = vmatmul.msk.bf16.gmra.mxu1 %vm1362_vm13, %v1341_v62 }
 0x175   : > { %1096 = vrot.lane.b32.xlu1 %v2699_v60, %s2386_s6 }
 0x176   : > { %v3317_v44 = vpop.f32.mrf.mxu2  ;;  %v1629_v49 = vpop.f32.mrf.mxu3 }
 0x177   : > { %v1894_v21 = vpack.c.bf16 %v3317_v44, %v3317_v44  ;;  %v1689_v41 = vadd.f32 %v3196_v12, %v1629_v49  ;;  %v882_v32 = vpop.permute.xlu1 %881  ;;  %v983_v51 = vpop.permute.xlu2 %982 }
 0x178   : > { %v1157_v9 = vsel %vm1131_vm6, %v1124_v52, %v882_v32 }
 0x179   : > { %1927 = vst.msk [vmem:[%s3206_s9 + $0x40] sm:$0xf] %vm1910_vm14, %v1894_v21  ;;  %v1959_v38 = vpack.c.bf16 %v1689_v41, %v1689_v41  ;;  %v959_v60 = vpop.permute.xlu0 %958  ;;  %v1190_v25 = vsel %vm1164_vm7, %v1157_v9, %v915_v14 }
 0x17a   : > { %v1223_v53 = vsel %vm1197_vm8, %v1190_v25, %v959_v60 }
 0x17b   : > { %1991 = vst.msk [vmem:[%s3216_s12 + $0x40] sm:$0xf] %vm1910_vm14, %v1959_v38 }
 0x17e   : > { %v3331_v20 = vpop.f32.mrf.mxu2  ;;  %v1631_v61 = vpop.f32.mrf.mxu3 }
 0x17f   : > { %v1895_v33 = vpack.c.bf16 %v3331_v20, %v3331_v20  ;;  %v1690_v59 = vadd.f32 %v3196_v12, %v1631_v61  ;;  %v995_v31 = vpop.permute.xlu1 %994  ;;  %v1079_v16 = vpop.permute.xlu2 %1078 }
 0x180   : > { %v1256_v18 = vsel %vm1230_vm9, %v1223_v53, %v995_v31  ;;  %v1510_v58 = vpop.f32.mrf.mxu0  ;;  %v1599_v45 = vpop.f32.mrf.mxu1  ;;  %v1126_v31 = vsel %vm1098_vm5, %v2679_v29, %v2949_v8 }
 0x181   : > { %1928 = vst.msk [vmem:[%s3206_s9 + $0x44] sm:$0xf] %vm1910_vm14, %v1895_v33  ;;  %v1960_v26 = vpack.c.bf16 %v1690_v59, %v1690_v59  ;;  %v1289_v4 = vsel %vm1263_vm10, %v1256_v18, %v1027_v50  ;;  %v1059_v10 = vpop.permute.xlu0 %1058  ;;  %v1712_v22 = vsel %vm1131_vm6, %v1510_v58, 0.0  ;;  %v1780_v47 = vmul.f32 %v1510_v58, %v1510_v58 }
 0x182   : > { %v1322_v34 = vsel %vm1296_vm11, %v1289_v4, %v1059_v10  ;;  %v1713_v13 = vadd.f32 %v1712_v22, %v1711_v6  ;;  %v1882_v14 = vpack.c.bf16 %v1510_v58, %v1510_v58  ;;  %v1677_v17 = vadd.f32 %v3196_v12, %v1599_v45 }
 0x183   : > { %1992 = vst.msk [vmem:[%s3216_s12 + $0x44] sm:$0xf] %vm1910_vm14, %v1960_v26  ;;  %v1355_v0 = vsel %vm1329_vm12, %v1322_v34, %v1091_v3  ;;  %v1815_v48 = vsel %vm1131_vm6, %v1780_v47, 0.0 }
 0x184   : > { %1915 = vst.msk [vmem:[%s3206_s9 + $0x10] sm:$0xf] %vm1910_vm14, %v1882_v14  ;;  %2278 = vmatmul.msk.bf16.gmra.mxu2 %vm1362_vm13, %v1355_v0  ;;  %2294 = vmatmul.msk.bf16.gmra.mxu3 %vm1362_vm13, %v1355_v0  ;;  %v1816_v36 = vadd.f32 %v1815_v48, %v1814_v42  ;;  %v1947_v39 = vpack.c.bf16 %v1677_v17, %v1677_v17 }
 0x185   : > { %v1112_v42 = vsel %vm1098_vm5, %v2548_v27, %v2875_v55 }
 0x186   : > { %1979 = vst.msk [vmem:[%s3216_s12 + $0x10] sm:$0xf] %vm1910_vm14, %v1947_v39 }
 0x187   : > { %v870_v54 = vpop.permute.xlu1 %869  ;;  %v961_v46 = vpop.permute.xlu2 %960 }
 0x188   : > { %v1512_v7 = vpop.f32.mrf.mxu0  ;;  %v1601_v23 = vpop.f32.mrf.mxu1  ;;  %v1145_v24 = vsel %vm1131_vm6, %v1112_v42, %v870_v54 }
 0x189   : > { %v903_v2 = vpop.permute.xlu0 %902  ;;  %v1714_v63 = vsel %vm1131_vm6, %v1512_v7, 0.0  ;;  %v1781_v40 = vmul.f32 %v1512_v7, %v1512_v7  ;;  %v1883_v6 = vpack.c.bf16 %v1512_v7, %v1512_v7  ;;  %v1678_v15 = vadd.f32 %v3196_v12, %v1601_v23 }
 0x18a   : > { %v1715_v56 = vadd.f32 %v1714_v63, %v1713_v13  ;;  %v1178_v30 = vsel %vm1164_vm7, %v1145_v24, %v903_v2 }
 0x18b   : > { %v1817_v37 = vsel %vm1131_vm6, %v1781_v40, 0.0  ;;  %1916 = vst.msk [vmem:[%s3206_s9 + $0x14] sm:$0xf] %vm1910_vm14, %v1883_v6  ;;  %v1948_v43 = vpack.c.bf16 %v1678_v15, %v1678_v15 }
 0x18c   : > { %v1818_v50 = vadd.f32 %v1817_v37, %v1816_v36 }
 0x18d   : > { %1980 = vst.msk [vmem:[%s3216_s12 + $0x14] sm:$0xf] %vm1910_vm14, %v1948_v43 }
 0x18f   : > { %v947_v35 = vpop.permute.xlu1 %946  ;;  %v1061_v60 = vpop.permute.xlu2 %1060 }
 0x190   : > { %v1211_v57 = vsel %vm1197_vm8, %v1178_v30, %v947_v35 }
 0x191   : > { %v1015_v1 = vpop.permute.xlu0 %1014  ;;  %v1244_v62 = vsel %vm1230_vm9, %v1211_v57, %v983_v51 }
 0x192   : > { %v1277_v3 = vsel %vm1263_vm10, %v1244_v62, %v1015_v1 }
 0x197   : > { %v1047_v49 = vpop.permute.xlu1 %1046  ;;  %v3370_v55 = vpop.f32.mrf.mxu2 }
 0x198   : > { %v1310_v27 = vsel %vm1296_vm11, %v1277_v3, %v1047_v49  ;;  %v1634_v21 = vpop.f32.mrf.mxu3  ;;  %v1896_v41 = vpack.c.bf16 %v3370_v55, %v3370_v55  ;;  %v905_v26 = vpop.permute.xlu2 %904 }
 0x199   : > { %v1691_v32 = vadd.f32 %v3196_v12, %v1634_v21  ;;  %v884_v52 = vpop.permute.xlu0 %883  ;;  %v1343_v38 = vsel %vm1329_vm12, %v1310_v27, %v1079_v16 }
 0x19a   : > { %1929 = vst.msk [vmem:[%s3206_s9 + $0x48] sm:$0xf] %vm1910_vm14, %v1896_v41  ;;  %2272 = vmatmul.msk.bf16.gmra.mxu0 %vm1362_vm13, %v1343_v38  ;;  %2288 = vmatmul.msk.bf16.gmra.mxu1 %vm1362_vm13, %v1343_v38  ;;  %v1159_v58 = vsel %vm1131_vm6, %v1126_v31, %v884_v52 }
 0x19b   : > { %v1961_v9 = vpack.c.bf16 %v1691_v32, %v1691_v32 }
 0x19d   : > { %1993 = vst.msk [vmem:[%s3216_s12 + $0x48] sm:$0xf] %vm1910_vm14, %v1961_v9 }
 0x19f   : > { %v917_v25 = vpop.permute.xlu1 %916  ;;  %v3382_v61 = vpop.f32.mrf.mxu2 }
 0x1a0   : > { %v1636_v51 = vpop.f32.mrf.mxu3  ;;  %v1897_v53 = vpack.c.bf16 %v3382_v61, %v3382_v61  ;;  %v1192_v45 = vsel %vm1164_vm7, %v1159_v58, %v917_v25  ;;  %v1017_v40 = vpop.permute.xlu2 %1016 }
 0x1a1   : > { %v1692_v33 = vadd.f32 %v3196_v12, %v1636_v51  ;;  %v997_v59 = vpop.permute.xlu0 %996  ;;  %v1225_v10 = vsel %vm1197_vm8, %v1192_v45, %v961_v46  ;;  %v3684_v51 = vld [vmem:[#allocation2_spill] sm:$0xff] }
 0x1a2   : > { %1930 = vst.msk [vmem:[%s3206_s9 + $0x4c] sm:$0xf] %vm1910_vm14, %v1897_v53  ;;  %v1258_v0 = vsel %vm1230_vm9, %v1225_v10, %v997_v59  ;;  %v1128_v53 = vsel %vm1098_vm5, %v2667_v11, %v3684_v51 }
 0x1a3   : > { %v1962_v18 = vpack.c.bf16 %v1692_v33, %v1692_v33 }
 0x1a5   : > { %1994 = vst.msk [vmem:[%s3216_s12 + $0x4c] sm:$0xf] %vm1910_vm14, %v1962_v18 }
 0x1a7   : > { %v1029_v4 = vpop.permute.xlu1 %1028  ;;  %v1515_v22 = vpop.f32.mrf.mxu0 }
 0x1a8   : > { %v1604_v34 = vpop.f32.mrf.mxu1  ;;  %v1716_v13 = vsel %vm1131_vm6, %v1515_v22, 0.0  ;;  %v1782_v29 = vmul.f32 %v1515_v22, %v1515_v22  ;;  %v1884_v8 = vpack.c.bf16 %v1515_v22, %v1515_v22  ;;  %v1291_v39 = vsel %vm1263_vm10, %v1258_v0, %v1029_v4 }
 0x1a9   : > { %v1679_v47 = vadd.f32 %v3196_v12, %v1604_v34  ;;  %v872_v14 = vpop.permute.xlu0 %871  ;;  %v1717_v17 = vadd.f32 %v1716_v13, %v1715_v56  ;;  %v1324_v23 = vsel %vm1296_vm11, %v1291_v39, %v1061_v60 }
 0x1aa   : > { %v1819_v48 = vsel %vm1131_vm6, %v1782_v29, 0.0  ;;  %1917 = vst.msk [vmem:[%s3206_s9 + $0x18] sm:$0xf] %vm1910_vm14, %v1884_v8 }
 0x1ab   : > { %v1949_v36 = vpack.c.bf16 %v1679_v47, %v1679_v47  ;;  %v1820_v54 = vadd.f32 %v1819_v48, %v1818_v50  ;;  %v1114_v50 = vsel %vm1098_vm5, %v2581_v5, %v2910_v28  ;;  %v886_v5 = vpop.permute.xlu2 %885 }
 0x1ac   : > { %v1147_v30 = vsel %vm1131_vm6, %v1114_v50, %v872_v14  ;;  %v1161_v33 = vsel %vm1131_vm6, %v1128_v53, %v886_v5 }
 0x1ad   : > { %1981 = vst.msk [vmem:[%s3216_s12 + $0x18] sm:$0xf] %vm1910_vm14, %v1949_v36  ;;  %v1180_v1 = vsel %vm1164_vm7, %v1147_v30, %v905_v26 }
 0x1af   : > { %v1093_v7 = vpop.permute.xlu1 %1092  ;;  %v1517_v16 = vpop.f32.mrf.mxu0 }
 0x1b0   : > { %v1606_v2 = vpop.f32.mrf.mxu1  ;;  %v1357_v63 = vsel %vm1329_vm12, %v1324_v23, %v1093_v7  ;;  %v1718_v6 = vsel %vm1131_vm6, %v1517_v16, 0.0  ;;  %v1783_v15 = vmul.f32 %v1517_v16, %v1517_v16  ;;  %v1885_v56 = vpack.c.bf16 %v1517_v16, %v1517_v16 }
 0x1b1   : > { %v1680_v37 = vadd.f32 %v3196_v12, %v1606_v2  ;;  %v949_v43 = vpop.permute.xlu0 %948  ;;  %2279 = vmatmul.msk.bf16.gmra.mxu2 %vm1362_vm13, %v1357_v63  ;;  %2295 = vmatmul.msk.bf16.gmra.mxu3 %vm1362_vm13, %v1357_v63  ;;  %v1719_v42 = vadd.f32 %v1718_v6, %v1717_v17 }
 0x1b2   : > { %v1821_v24 = vsel %vm1131_vm6, %v1783_v15, 0.0  ;;  %1918 = vst.msk [vmem:[%s3206_s9 + $0x1c] sm:$0xf] %vm1910_vm14, %v1885_v56  ;;  %v1213_v62 = vsel %vm1197_vm8, %v1180_v1, %v949_v43 }
 0x1b3   : > { %v1950_v35 = vpack.c.bf16 %v1680_v37, %v1680_v37  ;;  %v1822_v57 = vadd.f32 %v1821_v24, %v1820_v54  ;;  %v999_v52 = vpop.permute.xlu2 %998 }
 0x1b5   : > { %1982 = vst.msk [vmem:[%s3216_s12 + $0x1c] sm:$0xf] %vm1910_vm14, %v1950_v35 }
 0x1b7   : > { %v985_v46 = vpop.permute.xlu1 %984 }
 0x1b8   : > { %v1246_v3 = vsel %vm1230_vm9, %v1213_v62, %v985_v46 }
 0x1b9   : > { %v1049_v49 = vpop.permute.xlu0 %1048  ;;  %v1279_v28 = vsel %vm1263_vm10, %v1246_v3, %v1017_v40 }
 0x1ba   : > { %v1312_v27 = vsel %vm1296_vm11, %v1279_v28, %v1049_v49 }
 0x1bb   : > { %v1095_v34 = vpop.permute.xlu2 %1094 }
 0x1bf   : > { %v1081_v21 = vpop.permute.xlu1 %1080 }
 0x1c0   : > { %v1345_v41 = vsel %vm1329_vm12, %v1312_v27, %v1081_v21 }
 0x1c1   : > { %v919_v32 = vpop.permute.xlu0 %918  ;;  %2273 = vmatmul.msk.bf16.gmra.mxu0 %vm1362_vm13, %v1345_v41  ;;  %2289 = vmatmul.msk.bf16.gmra.mxu1 %vm1362_vm13, %v1345_v41 }
 0x1c2   : > { %v1194_v18 = vsel %vm1164_vm7, %v1161_v33, %v919_v32 }
 0x1c3   : > { %v921_v24 = vpop.permute.xlu2 %920 }
 0x1c4   : > { %v3429_v38 = vpop.f32.mrf.mxu2  ;;  %v1639_v9 = vpop.f32.mrf.mxu3 }
 0x1c5   : > { %v1898_v60 = vpack.c.bf16 %v3429_v38, %v3429_v38  ;;  %v1693_v25 = vadd.f32 %v3196_v12, %v1639_v9 }
 0x1c7   : > { %1931 = vst.msk [vmem:[%s3206_s9 + $0x50] sm:$0xf] %vm1910_vm14, %v1898_v60  ;;  %v1963_v59 = vpack.c.bf16 %v1693_v25, %v1693_v25  ;;  %v963_v31 = vpop.permute.xlu1 %962 }
 0x1c8   : > { %v1227_v58 = vsel %vm1197_vm8, %v1194_v18, %v963_v31 }
 0x1c9   : > { %1995 = vst.msk [vmem:[%s3216_s12 + $0x50] sm:$0xf] %vm1910_vm14, %v1963_v59  ;;  %v1031_v45 = vpop.permute.xlu0 %1030  ;;  %v1260_v26 = vsel %vm1230_vm9, %v1227_v58, %v999_v52 }
 0x1ca   : > { %v1293_v8 = vsel %vm1263_vm10, %v1260_v26, %v1031_v45 }
 0x1cb   : > { %v1033_v28 = vpop.permute.xlu2 %1032 }
 0x1cc   : > { %v3445_v4 = vpop.f32.mrf.mxu2  ;;  %v1641_v10 = vpop.f32.mrf.mxu3 }
 0x1cd   : > { %v1899_v11 = vpack.c.bf16 %v3445_v4, %v3445_v4  ;;  %v1694_v22 = vadd.f32 %v3196_v12, %v1641_v10 }
 0x1ce   : > { %v1520_v13 = vpop.f32.mrf.mxu0  ;;  %v1609_v29 = vpop.f32.mrf.mxu1 }
 0x1cf   : > { %1932 = vst.msk [vmem:[%s3206_s9 + $0x54] sm:$0xf] %vm1910_vm14, %v1899_v11  ;;  %v1964_v47 = vpack.c.bf16 %v1694_v22, %v1694_v22  ;;  %v1720_v14 = vsel %vm1131_vm6, %v1520_v13, 0.0  ;;  %v1784_v17 = vmul.f32 %v1520_v13, %v1520_v13  ;;  %v1063_v0 = vpop.permute.xlu1 %1062  ;;  %v1886_v36 = vpack.c.bf16 %v1520_v13, %v1520_v13 }
 0x1d0   : > { %v1721_v48 = vadd.f32 %v1720_v14, %v1719_v42  ;;  %v1681_v39 = vadd.f32 %v3196_v12, %v1609_v29  ;;  %v1326_v54 = vsel %vm1296_vm11, %v1293_v8, %v1063_v0 }
 0x1d1   : > { %1996 = vst.msk [vmem:[%s3216_s12 + $0x54] sm:$0xf] %vm1910_vm14, %v1964_v47  ;;  %v1823_v7 = vsel %vm1131_vm6, %v1784_v17, 0.0  ;;  %v775_v23 = vpop.permute.xlu0 %774  ;;  %v1359_v16 = vsel %vm1329_vm12, %v1326_v54, %v1095_v34 }
 0x1d2   : > { %v1824_v2 = vadd.f32 %v1823_v7, %v1822_v57  ;;  %1919 = vst.msk [vmem:[%s3206_s9 + $0x20] sm:$0xf] %vm1910_vm14, %v1886_v36  ;;  %v1951_v63 = vpack.c.bf16 %v1681_v39, %v1681_v39  ;;  %2280 = vmatmul.msk.bf16.gmra.mxu2 %vm1362_vm13, %v1359_v16  ;;  %2296 = vmatmul.msk.bf16.gmra.mxu3 %vm1362_vm13, %v1359_v16 }
 0x1d3   : > { %v1130_v40 = vsel %vm1098_vm5, %v3123_v19, %v775_v23 }
 0x1d4   : > { %1983 = vst.msk [vmem:[%s3216_s12 + $0x20] sm:$0xf] %vm1910_vm14, %v1951_v63 }
 0x1d6   : > { %v1522_v6 = vpop.f32.mrf.mxu0  ;;  %v1611_v15 = vpop.f32.mrf.mxu1 }
 0x1d7   : > { %v1722_v56 = vsel %vm1131_vm6, %v1522_v6, 0.0  ;;  %v1785_v37 = vmul.f32 %v1522_v6, %v1522_v6  ;;  %v1887_v43 = vpack.c.bf16 %v1522_v6, %v1522_v6  ;;  %v1682_v42 = vadd.f32 %v3196_v12, %v1611_v15  ;;  %v888_v50 = vpop.permute.xlu1 %887 }
 0x1d8   : > { %v1723_v35 = vadd.f32 %v1722_v56, %v1721_v48  ;;  %v1163_v19 = vsel %vm1131_vm6, %v1130_v40, %v888_v50 }
 0x1d9   : > { %v1825_v30 = vsel %vm1131_vm6, %v1785_v37, 0.0  ;;  %1920 = vst.msk [vmem:[%s3206_s9 + $0x24] sm:$0xf] %vm1910_vm14, %v1887_v43  ;;  %v1952_v57 = vpack.c.bf16 %v1682_v42, %v1682_v42  ;;  %v965_v46 = vpop.permute.xlu0 %964  ;;  %v1196_v62 = vsel %vm1164_vm7, %v1163_v19, %v921_v24 }
 0x1da   : > { %v1826_v1 = vadd.f32 %v1825_v30, %v1824_v2  ;;  %v1229_v49 = vsel %vm1197_vm8, %v1196_v62, %v965_v46 }
 0x1db   : > { %1984 = vst.msk [vmem:[%s3216_s12 + $0x24] sm:$0xf] %vm1910_vm14, %v1952_v57 }
 0x1df   : > { %v1001_v3 = vpop.permute.xlu1 %1000 }
 0x1e0   : > { %v1262_v5 = vsel %vm1230_vm9, %v1229_v49, %v1001_v3 }
 0x1e1   : > { %v1295_v27 = vsel %vm1263_vm10, %v1262_v5, %v1033_v28  ;;  %v1065_v21 = vpop.permute.xlu0 %1064 }
 0x1e2   : > { %v1328_v52 = vsel %vm1296_vm11, %v1295_v27, %v1065_v21 }
 0x1e6   : > { %v3480_v41 = vpop.f32.mrf.mxu2  ;;  %v1644_v32 = vpop.f32.mrf.mxu3 }
 0x1e7   : > { %v1900_v9 = vpack.c.bf16 %v3480_v41, %v3480_v41  ;;  %v1695_v60 = vadd.f32 %v3196_v12, %v1644_v32  ;;  %v1097_v25 = vpop.permute.xlu1 %1096 }
 0x1e8   : > { %v1361_v51 = vsel %vm1329_vm12, %v1328_v52, %v1097_v25 }
 0x1e9   : > { %1933 = vst.msk [vmem:[%s3206_s9 + $0x58] sm:$0xf] %vm1910_vm14, %v1900_v9  ;;  %v1965_v53 = vpack.c.bf16 %v1695_v60, %v1695_v60  ;;  %2281 = vmatmul.msk.bf16.gmra.mxu2 %vm1362_vm13, %v1361_v51  ;;  %2297 = vmatmul.msk.bf16.gmra.mxu3 %vm1362_vm13, %v1361_v51 }
 0x1eb   : > { %1997 = vst.msk [vmem:[%s3216_s12 + $0x58] sm:$0xf] %vm1910_vm14, %v1965_v53 }
 0x1ee   : > { %v3493_v33 = vpop.f32.mrf.mxu2  ;;  %v1646_v59 = vpop.f32.mrf.mxu3 }
 0x1ef   : > { %v1901_v31 = vpack.c.bf16 %v3493_v33, %v3493_v33  ;;  %v1696_v18 = vadd.f32 %v3196_v12, %v1646_v59 }
 0x1f0   : > { %v1525_v58 = vpop.f32.mrf.mxu0  ;;  %v1614_v45 = vpop.f32.mrf.mxu1 }
 0x1f1   : > { %1934 = vst.msk [vmem:[%s3206_s9 + $0x5c] sm:$0xf] %vm1910_vm14, %v1901_v31  ;;  %v1966_v26 = vpack.c.bf16 %v1696_v18, %v1696_v18  ;;  %v1724_v10 = vsel %vm1131_vm6, %v1525_v58, 0.0  ;;  %v1786_v11 = vmul.f32 %v1525_v58, %v1525_v58  ;;  %v1888_v34 = vpack.c.bf16 %v1525_v58, %v1525_v58 }
 0x1f2   : > { %v1725_v22 = vadd.f32 %v1724_v10, %v1723_v35  ;;  %v1683_v13 = vadd.f32 %v3196_v12, %v1614_v45 }
 0x1f3   : > { %1998 = vst.msk [vmem:[%s3216_s12 + $0x5c] sm:$0xf] %vm1910_vm14, %v1966_v26  ;;  %v1827_v29 = vsel %vm1131_vm6, %v1786_v11, 0.0 }
 0x1f4   : > { %v1828_v8 = vadd.f32 %v1827_v29, %v1826_v1  ;;  %1921 = vst.msk [vmem:[%s3206_s9 + $0x28] sm:$0xf] %vm1910_vm14, %v1888_v34  ;;  %v1953_v47 = vpack.c.bf16 %v1683_v13, %v1683_v13 }
 0x1f6   : > { %1985 = vst.msk [vmem:[%s3216_s12 + $0x28] sm:$0xf] %vm1910_vm14, %v1953_v47 }
 0x1f8   : > { %v1527_v14 = vpop.f32.mrf.mxu0  ;;  %v1616_v17 = vpop.f32.mrf.mxu1 }
 0x1f9   : > { %v1726_v0 = vsel %vm1131_vm6, %v1527_v14, 0.0  ;;  %v1787_v48 = vmul.f32 %v1527_v14, %v1527_v14  ;;  %v1889_v36 = vpack.c.bf16 %v1527_v14, %v1527_v14  ;;  %v1684_v39 = vadd.f32 %v3196_v12, %v1616_v17 }
 0x1fa   : > { %v1727_v54 = vadd.f32 %v1726_v0, %v1725_v22  ;;  %v1792_v0 = vmul.f32 %v3317_v44, %v3317_v44 }
 0x1fb   : > { %v1829_v7 = vsel %vm1131_vm6, %v1787_v48, 0.0  ;;  %1922 = vst.msk [vmem:[%s3206_s9 + $0x2c] sm:$0xf] %vm1910_vm14, %v1889_v36  ;;  %v1954_v23 = vpack.c.bf16 %v1684_v39, %v1684_v39 }
 0x1fc   : > { %v1830_v16 = vadd.f32 %v1829_v7, %v1828_v8 }
 0x1fd   : > { %1986 = vst.msk [vmem:[%s3216_s12 + $0x2c] sm:$0xf] %vm1910_vm14, %v1954_v23 }
 0x207   : > { %v3516_v2 = vpop.f32.mrf.mxu2  ;;  %v1649_v63 = vpop.f32.mrf.mxu3 }
 0x208   : > { %v1902_v40 = vpack.c.bf16 %v3516_v2, %v3516_v2  ;;  %v1697_v6 = vadd.f32 %v3196_v12, %v1649_v63 }
 0x20a   : > { %1935 = vst.msk [vmem:[%s3206_s9 + $0x60] sm:$0xf] %vm1910_vm14, %v1902_v40  ;;  %v1967_v15 = vpack.c.bf16 %v1697_v6, %v1697_v6 }
 0x20c   : > { %1999 = vst.msk [vmem:[%s3216_s12 + $0x60] sm:$0xf] %vm1910_vm14, %v1967_v15  ;;  %v1736_v15 = vsel %vm1131_vm6, %v3317_v44, 0.0 }
 0x20f   : > { %v3525_v56 = vpop.f32.mrf.mxu2  ;;  %v1651_v37 = vpop.f32.mrf.mxu3 }
 0x210   : > { %v1903_v43 = vpack.c.bf16 %v3525_v56, %v3525_v56  ;;  %v1698_v42 = vadd.f32 %v3196_v12, %v1651_v37  ;;  %v1793_v37 = vmul.f32 %v3331_v20, %v3331_v20 }
 0x212   : > { %1936 = vst.msk [vmem:[%s3206_s9 + $0x64] sm:$0xf] %vm1910_vm14, %v1903_v43  ;;  %v1968_v50 = vpack.c.bf16 %v1698_v42, %v1698_v42 }
 0x214   : > { %2000 = vst.msk [vmem:[%s3216_s12 + $0x64] sm:$0xf] %vm1910_vm14, %v1968_v50 }
 0x217   : > { %v1530_v24 = vpop.f32.mrf.mxu0  ;;  %v1619_v35 = vpop.f32.mrf.mxu1 }
 0x218   : > { %v1890_v30 = vpack.c.bf16 %v1530_v24, %v1530_v24  ;;  %v1685_v57 = vadd.f32 %v3196_v12, %v1619_v35  ;;  %v1788_v60 = vmul.f32 %v1530_v24, %v1530_v24  ;;  %v1728_v31 = vsel %vm1131_vm6, %v1530_v24, 0.0 }
 0x219   : > { %v1729_v34 = vadd.f32 %v1728_v31, %v1727_v54  ;;  %v1839_v35 = vsel %vm1131_vm6, %v1792_v0, 0.0  ;;  %v1801_v0 = vmul.f32 %v3525_v56, %v3525_v56 }
 0x21a   : > { %1923 = vst.msk [vmem:[%s3206_s9 + $0x30] sm:$0xf] %vm1910_vm14, %v1890_v30  ;;  %v1955_v1 = vpack.c.bf16 %v1685_v57, %v1685_v57  ;;  %v1831_v10 = vsel %vm1131_vm6, %v1788_v60, 0.0  ;;  %v1738_v30 = vsel %vm1131_vm6, %v3331_v20, 0.0  ;;  %v1794_v57 = vmul.f32 %v3370_v55, %v3370_v55 }
 0x21b   : > { %v1832_v47 = vadd.f32 %v1831_v10, %v1830_v16  ;;  %v1742_v20 = vsel %vm1131_vm6, %v3382_v61, 0.0  ;;  %v1797_v60 = vmul.f32 %v3445_v4, %v3445_v4 }
 0x21c   : > { %1987 = vst.msk [vmem:[%s3216_s12 + $0x30] sm:$0xf] %vm1910_vm14, %v1955_v1 }
 0x21f   : > { %v1532_v19 = vpop.f32.mrf.mxu0  ;;  %v1621_v46 = vpop.f32.mrf.mxu1 }
 0x220   : > { %v1891_v62 = vpack.c.bf16 %v1532_v19, %v1532_v19  ;;  %v1686_v3 = vadd.f32 %v3196_v12, %v1621_v46  ;;  %v1789_v18 = vmul.f32 %v1532_v19, %v1532_v19  ;;  %v1730_v11 = vsel %vm1131_vm6, %v1532_v19, 0.0 }
 0x221   : > { %v1731_v14 = vadd.f32 %v1730_v11, %v1729_v34  ;;  %v1841_v19 = vsel %vm1131_vm6, %v1793_v37, 0.0  ;;  %v1740_v46 = vsel %vm1131_vm6, %v3370_v55, 0.0  ;;  %v1744_v55 = vsel %vm1131_vm6, %v3429_v38, 0.0 }
 0x222   : > { %1924 = vst.msk [vmem:[%s3206_s9 + $0x34] sm:$0xf] %vm1910_vm14, %v1891_v62  ;;  %v1956_v49 = vpack.c.bf16 %v1686_v3, %v1686_v3  ;;  %v1833_v29 = vsel %vm1131_vm6, %v1789_v18, 0.0  ;;  %v1795_v62 = vmul.f32 %v3382_v61, %v3382_v61 }
 0x223   : > { %v1834_v48 = vadd.f32 %v1833_v29, %v1832_v47 }
 0x224   : > { %1988 = vst.msk [vmem:[%s3216_s12 + $0x34] sm:$0xf] %vm1910_vm14, %v1956_v49 }
 0x234   : > { %v3544_v5 = vpop.f32.mrf.mxu2  ;;  %v1654_v28 = vpop.f32.mrf.mxu3 }
 0x235   : > { %v1904_v27 = vpack.c.bf16 %v3544_v5, %v3544_v5  ;;  %v1699_v21 = vadd.f32 %v3196_v12, %v1654_v28  ;;  %v1843_v28 = vsel %vm1131_vm6, %v1794_v57, 0.0 }
 0x237   : > { %1937 = vst.msk [vmem:[%s3206_s9 + $0x68] sm:$0xf] %vm1910_vm14, %v1904_v27  ;;  %v1969_v32 = vpack.c.bf16 %v1699_v21, %v1699_v21  ;;  %v1796_v27 = vmul.f32 %v3429_v38, %v3429_v38  ;;  %v1748_v38 = vsel %vm1131_vm6, %v3480_v41, 0.0 }
 0x239   : > { %2001 = vst.msk [vmem:[%s3216_s12 + $0x68] sm:$0xf] %vm1910_vm14, %v1969_v32  ;;  %v1847_v61 = vsel %vm1131_vm6, %v1796_v27, 0.0 }
 0x23c   : > { %v3553_v52 = vpop.f32.mrf.mxu2  ;;  %v1656_v9 = vpop.f32.mrf.mxu3 }
 0x23d   : > { %v1905_v25 = vpack.c.bf16 %v3553_v52, %v3553_v52  ;;  %v1700_v51 = vadd.f32 %v3196_v12, %v1656_v9  ;;  %v1845_v9 = vsel %vm1131_vm6, %v1795_v62, 0.0 }
 0x23e   : > { %v1535_v53 = vpop.f32.mrf.mxu0  ;;  %v1624_v59 = vpop.f32.mrf.mxu1 }
 0x23f   : > { %1938 = vst.msk [vmem:[%s3206_s9 + $0x6c] sm:$0xf] %vm1910_vm14, %v1905_v25  ;;  %v1970_v58 = vpack.c.bf16 %v1700_v51, %v1700_v51  ;;  %v1892_v45 = vpack.c.bf16 %v1535_v53, %v1535_v53  ;;  %v1687_v26 = vadd.f32 %v3196_v12, %v1624_v59  ;;  %v1790_v22 = vmul.f32 %v1535_v53, %v1535_v53 }
 0x240   : > { %v1732_v8 = vsel %vm1131_vm6, %v1535_v53, 0.0  ;;  %v1798_v25 = vmul.f32 %v3480_v41, %v3480_v41  ;;  %v1746_v59 = vsel %vm1131_vm6, %v3445_v4, 0.0  ;;  %v1750_v4 = vsel %vm1131_vm6, %v3493_v33, 0.0 }
 0x241   : > { %2002 = vst.msk [vmem:[%s3216_s12 + $0x6c] sm:$0xf] %vm1910_vm14, %v1970_v58  ;;  %v1957_v13 = vpack.c.bf16 %v1687_v26, %v1687_v26  ;;  %v1835_v17 = vsel %vm1131_vm6, %v1790_v22, 0.0  ;;  %v1733_v36 = vadd.f32 %v1732_v8, %v1731_v14  ;;  %v1849_v58 = vsel %vm1131_vm6, %v1797_v60, 0.0 }
 0x242   : > { %1925 = vst.msk [vmem:[%s3206_s9 + $0x38] sm:$0xf] %vm1910_vm14, %v1892_v45  ;;  %v1836_v40 = vadd.f32 %v1835_v17, %v1834_v48  ;;  %v1799_v45 = vmul.f32 %v3493_v33, %v3493_v33  ;;  %v1851_v11 = vsel %vm1131_vm6, %v1798_v25, 0.0  ;;  %v1752_v17 = vsel %vm1131_vm6, %v3516_v2, 0.0 }
 0x243   : > { %1989 = vst.msk [vmem:[%s3216_s12 + $0x38] sm:$0xf] %vm1910_vm14, %v1957_v13  ;;  %v1800_v13 = vmul.f32 %v3516_v2, %v3516_v2  ;;  %v1857_v2 = vsel %vm1131_vm6, %v1801_v0, 0.0 }
 0x244   : > { %v1853_v14 = vsel %vm1131_vm6, %v1799_v45, 0.0 }
 0x246   : > { %v1537_v39 = vpop.f32.mrf.mxu0  ;;  %v1626_v54 = vpop.f32.mrf.mxu1 }
 0x247   : > { %v1734_v7 = vsel %vm1131_vm6, %v1537_v39, 0.0  ;;  %v1791_v23 = vmul.f32 %v1537_v39, %v1537_v39  ;;  %v1893_v63 = vpack.c.bf16 %v1537_v39, %v1537_v39  ;;  %v1688_v16 = vadd.f32 %v3196_v12, %v1626_v54 }
 0x248   : > { %v1735_v6 = vadd.f32 %v1734_v7, %v1733_v36  ;;  %v1855_v39 = vsel %vm1131_vm6, %v1800_v13, 0.0 }
 0x249   : > { %v1837_v43 = vsel %vm1131_vm6, %v1791_v23, 0.0  ;;  %1926 = vst.msk [vmem:[%s3206_s9 + $0x3c] sm:$0xf] %vm1910_vm14, %v1893_v63  ;;  %v1958_v42 = vpack.c.bf16 %v1688_v16, %v1688_v16 }
 0x24a   : > { %v1737_v50 = vadd.f32 %v1736_v15, %v1735_v6  ;;  %v1838_v24 = vadd.f32 %v1837_v43, %v1836_v40  ;;  %v2369_v6 = vld [vmem:[%s3677_s2] ss:$0 sm:$0xff]  ;;  %v1756_v43 = vsel %vm1131_vm6, %v3544_v5, 0.0 }
 0x24b   : > { %1990 = vst.msk [vmem:[%s3216_s12 + $0x3c] sm:$0xf] %vm1910_vm14, %v1958_v42 }
 0x24c   : > { %v1739_v44 = vadd.f32 %v1738_v30, %v1737_v50  ;;  %v1840_v1 = vadd.f32 %v1839_v35, %v1838_v24  ;;  %v1803_v24 = vmul.f32 %v3553_v52, %v3553_v52  ;;  %v1758_v30 = vsel %vm1131_vm6, %v3553_v52, 0.0 }
 0x24e   : > { %v1741_v3 = vadd.f32 %v1740_v46, %v1739_v44  ;;  %v1842_v49 = vadd.f32 %v1841_v19, %v1840_v1  ;;  %v1861_v44 = vsel %vm1131_vm6, %v1803_v24, 0.0 }
 0x250   : > { %v1743_v21 = vadd.f32 %v1742_v20, %v1741_v3  ;;  %v1844_v32 = vadd.f32 %v1843_v28, %v1842_v49 }
 0x252   : > { %v1745_v51 = vadd.f32 %v1744_v55, %v1743_v21  ;;  %v1846_v53 = vadd.f32 %v1845_v9, %v1844_v32 }
 0x254   : > { %v1747_v31 = vadd.f32 %v1746_v59, %v1745_v51  ;;  %v1848_v18 = vadd.f32 %v1847_v61, %v1846_v53 }
 0x255   : > { %v1570_v26 = vpop.f32.mrf.mxu2  ;;  %v1659_v10 = vpop.f32.mrf.mxu3 }
 0x256   : > { %v1850_v22 = vadd.f32 %v1849_v58, %v1848_v18  ;;  %v1749_v34 = vadd.f32 %v1748_v38, %v1747_v31  ;;  %v1906_v29 = vpack.c.bf16 %v1570_v26, %v1570_v26  ;;  %v1701_v41 = vadd.f32 %v3196_v12, %v1659_v10 }
 0x257   : > { %v1754_v12 = vsel %vm1131_vm6, %v3525_v56, 0.0  ;;  %v1802_v56 = vmul.f32 %v3544_v5, %v3544_v5  ;;  %v1804_v1 = vmul.f32 %v1570_v26, %v1570_v26  ;;  %v1760_v5 = vsel %vm1131_vm6, %v1570_v26, 0.0 }
 0x258   : > { %v1751_v8 = vadd.f32 %v1750_v4, %v1749_v34  ;;  %v1852_v47 = vadd.f32 %v1851_v11, %v1850_v22  ;;  %1939 = vst.msk [vmem:[%s3206_s9 + $0x70] sm:$0xf] %vm1910_vm14, %v1906_v29  ;;  %v1971_v33 = vpack.c.bf16 %v1701_v41, %v1701_v41 }
 0x259   : > { %v1859_v50 = vsel %vm1131_vm6, %v1802_v56, 0.0  ;;  %v1863_v20 = vsel %vm1131_vm6, %v1804_v1, 0.0 }
 0x25a   : > { %v1753_v48 = vadd.f32 %v1752_v17, %v1751_v8  ;;  %v1854_v36 = vadd.f32 %v1853_v14, %v1852_v47  ;;  %2003 = vst.msk [vmem:[%s3216_s12 + $0x70] sm:$0xf] %vm1910_vm14, %v1971_v33 }
 0x25c   : > { %v1755_v54 = vadd.f32 %v1754_v12, %v1753_v48  ;;  %v1856_v7 = vadd.f32 %v1855_v39, %v1854_v36 }
 0x25d   : > { %v1572_v23 = vpop.f32.mrf.mxu2  ;;  %v1661_v63 = vpop.f32.mrf.mxu3 }
 0x25e   : > { %v1858_v16 = vadd.f32 %v1857_v2, %v1856_v7  ;;  %v1907_v40 = vpack.c.bf16 %v1572_v23, %v1572_v23  ;;  %v1702_v15 = vadd.f32 %v2369_v6, %v1661_v63  ;;  %v1757_v42 = vadd.f32 %v1756_v43, %v1755_v54 }
 0x25f   : > { %v1805_v27 = vmul.f32 %v1572_v23, %v1572_v23  ;;  %v1762_v9 = vsel %vm1131_vm6, %v1572_v23, 0.0 }
 0x260   : > { %1940 = vst.msk [vmem:[%s3206_s9 + $0x74] sm:$0xf] %vm1910_vm14, %v1907_v40  ;;  %v1972_v37 = vpack.c.bf16 %v1702_v15, %v1702_v15  ;;  %v1860_v35 = vadd.f32 %v1859_v50, %v1858_v16  ;;  %v1759_v57 = vadd.f32 %v1758_v30, %v1757_v42 }
 0x261   : > { %v1865_v25 = vsel %vm1131_vm6, %v1805_v27, 0.0 }
 0x262   : > { %2004 = vst.msk [vmem:[%s3216_s12 + $0x74] sm:$0xf] %vm1910_vm14, %v1972_v37  ;;  %v1862_v19 = vadd.f32 %v1861_v44, %v1860_v35  ;;  %v1761_v28 = vadd.f32 %v1760_v5, %v1759_v57 }
 0x264   : > { %v1864_v32 = vadd.f32 %v1863_v20, %v1862_v19  ;;  %v1763_v60 = vadd.f32 %v1762_v9, %v1761_v28 }
 0x266   : > { %v1866_v53 = vadd.f32 %v1865_v25, %v1864_v32 }
 0x26c   : > { %v1575_v46 = vpop.f32.mrf.mxu2  ;;  %v1664_v62 = vpop.f32.mrf.mxu3 }
 0x26d   : > { %v1908_v3 = vpack.c.bf16 %v1575_v46, %v1575_v46  ;;  %v1703_v49 = vadd.f32 %v2369_v6, %v1664_v62  ;;  %v1806_v21 = vmul.f32 %v1575_v46, %v1575_v46  ;;  %v1764_v55 = vsel %vm1131_vm6, %v1575_v46, 0.0 }
 0x26e   : > { %v1765_v61 = vadd.f32 %v1764_v55, %v1763_v60 }
 0x26f   : > { %1941 = vst.msk [vmem:[%s3206_s9 + $0x78] sm:$0xf] %vm1910_vm14, %v1908_v3  ;;  %v1973_v52 = vpack.c.bf16 %v1703_v49, %v1703_v49  ;;  %v1867_v51 = vsel %vm1131_vm6, %v1806_v21, 0.0 }
 0x270   : > { %v1868_v26 = vadd.f32 %v1867_v51, %v1866_v53 }
 0x271   : > { %2005 = vst.msk [vmem:[%s3216_s12 + $0x78] sm:$0xf] %vm1910_vm14, %v1973_v52 }
 0x274   : > { %v1577_v59 = vpop.f32.mrf.mxu2  ;;  %v1666_v31 = vpop.f32.mrf.mxu3 }
 0x275   : > { %v1766_v18 = vsel %vm1131_vm6, %v1577_v59, 0.0  ;;  %v1807_v58 = vmul.f32 %v1577_v59, %v1577_v59  ;;  %v1909_v38 = vpack.c.bf16 %v1577_v59, %v1577_v59  ;;  %v1704_v45 = vadd.f32 %v2369_v6, %v1666_v31 }
 0x276   : > { %v1767_v10 = vadd.f32 %v1766_v18, %v1765_v61 }
 0x277   : > { %v1869_v11 = vsel %vm1131_vm6, %v1807_v58, 0.0  ;;  %1942 = vst.msk [vmem:[%s3206_s9 + $0x7c] sm:$0xf] %vm1910_vm14, %v1909_v38  ;;  %v1974_v22 = vpack.c.bf16 %v1704_v45, %v1704_v45 }
 0x278   : > { %v1768_v34 = vrot.slane %v1767_v10, 4  ;;  %v1870_v4 = vadd.f32 %v1869_v11, %v1868_v26 }
 0x279   : > { %2006 = vst.msk [vmem:[%s3216_s12 + $0x7c] sm:$0xf] %vm1910_vm14, %v1974_v22 }
 0x27a   : > { %v1769_v13 = vadd.f32 %v1768_v34, %v1767_v10  ;;  %v1871_v29 = vrot.slane %v1870_v4, 4 }
 0x27c   : > { %v1770_v41 = vrot.slane %v1769_v13, 2  ;;  %v1872_v8 = vadd.f32 %v1871_v29, %v1870_v4 }
 0x27e   : > { %v1771_v47 = vadd.f32 %v1770_v41, %v1769_v13  ;;  %v1873_v14 = vrot.slane %v1872_v8, 2 }
 0x280   : > { %v1772_v17 = vrot.slane %v1771_v47, 1  ;;  %v1874_v0 = vadd.f32 %v1873_v14, %v1872_v8 }
 0x282   : > { %v1773_v33 = vadd.f32 %v1772_v17, %v1771_v47  ;;  %v1875_v48 = vrot.slane %v1874_v0, 1 }
 0x284   : > { %1775 = vst.msk [vmem:[%s247_s28] sm:$0x1] %vm1774_vm15, %v1773_v33  ;;  %v1876_v36 = vadd.f32 %v1875_v48, %v1874_v0 }
 0x286   : > { %1877 = vst.msk [vmem:[%s247_s28 + $0x1] sm:$0x1] %vm1774_vm15, %v1876_v36 }
 0x287 PF: > { %s16_s18 = sadd.s32 1, %s2376_s18  }
 0x288   : > { %p13_p4 = scmp.ge.s32.totalorder %s16_s18, 4  }
 0x28a   :  { %15 = sbr.rel (!%p13_p4) target bundleno = 1 (0x1), region = 86 }

</bundles_post_ra>
